<compile_context>
chip_gen: v7x
topology: tpu7x:2x2x1
jax: 0.10.0
libtpu: 0.0.40
codegen_flags: <defaults>
</compile_context>

<pallas_src>
import functools

import numpy as np
import jax
import jax.numpy as jnp
from jax.experimental import pallas as pl
from jax.experimental.pallas import tpu as pltpu

LRELU_SLOPE = 0.2
BN_EPS = 1e-5
LANE = 128
VMEM_LIMIT = 32 * 1024 * 1024   # explicit scoped-VMEM cap, safe on v5e/v6e/v7x


# ----------------------------- helpers ---------------------------------------
def _round_up(x, m):
    return (x + m - 1) // m * m


def _pick_tm(M):
    """Row tile: <=512 rows (v7x VMEM friendly), multiple of 16, >=2 grid steps."""
    if M <= 16:
        return M
    half = -(-M // 2)                      # ceil(M/2) guarantees at least 2 steps
    return min(512, _round_up(half, 16))


# ------------------------ fused im2col-GEMM kernel ----------------------------
def _gemm_kernel(p_ref, w_ref, sb_ref, o_ref, *, act):
    # bf16 x bf16 -> f32 on the MXU
    acc = jnp.dot(p_ref[...], w_ref[...], preferred_element_type=jnp.float32)
    sb = sb_ref[...]                                   # (2, Npad) f32: [scale; bias]
    y = acc * sb[0:1, :] + sb[1:2, :]                  # conv-bias + BN folded affine
    if act == "lrelu":
        y = jnp.maximum(y, LRELU_SLOPE * y)
    o_ref[...] = y.astype(o_ref.dtype)                 # cast only at the store


def fused_gemm(patches, w, sb, act):
    """patches: (M, K) bf16, w: (K, Npad) bf16, sb: (2, Npad) f32 -> (M, Npad) bf16."""
    M, K = patches.shape
    Npad = w.shape[1]
    tm = _pick_tm(M)
    Mpad = _round_up(M, tm)
    if Mpad != M:
        patches = jnp.pad(patches, ((0, Mpad - M), (0, 0)))
    grid = (Mpad // tm,)

    out = pl.pallas_call(
        functools.partial(_gemm_kernel, act=act),
        out_shape=jax.ShapeDtypeStruct((Mpad, Npad), jnp.bfloat16),
        grid=grid,
        in_specs=[
            pl.BlockSpec((tm, K), lambda i: (i, 0)),
            pl.BlockSpec((K, Npad), lambda i: (0, 0)),
            pl.BlockSpec((2, Npad), lambda i: (0, 0)),
        ],
        out_specs=pl.BlockSpec((tm, Npad), lambda i: (i, 0)),
        compiler_params=pltpu.CompilerParams(
            dimension_semantics=("parallel",),
            vmem_limit_bytes=VMEM_LIMIT),
    )(patches, w, sb)
    return out[:M]


# ------------------------------ XLA glue --------------------------------------
def im2col_nhwc(x, kh, kw, stride, pad):
    """x: (B,H,W,C) -> (B*OH*OW, C*kh*kw) with (c, kh, kw) K-ordering (PyTorch)."""
    B, H, W, C = x.shape
    if pad:
        x = jnp.pad(x, ((0, 0), (pad, pad), (pad, pad), (0, 0)))
    Hp, Wp = H + 2 * pad, W + 2 * pad
    OH = (Hp - kh) // stride + 1
    OW = (Wp - kw) // stride + 1
    cols = []
    for i in range(kh):
        for j in range(kw):
            cols.append(x[:, i:i + stride * (OH - 1) + 1:stride,
                             j:j + stride * (OW - 1) + 1:stride, :])
    p = jnp.stack(cols, axis=3)            # (B, OH, OW, kh*kw, C)
    p = jnp.transpose(p, (0, 1, 2, 4, 3))  # (B, OH, OW, C, kh*kw)
    return p.reshape(B * OH * OW, C * kh * kw), OH, OW


def gemm_conv(x, layer, n, act):
    """One conv4x4 / stride 2 / pad 1 (+ folded BN + optional LeakyReLU). x: NHWC bf16."""
    B = x.shape[0]
    patches, OH, OW = im2col_nhwc(x, 4, 4, 2, 1)
    out = fused_gemm(patches, layer["w"], layer["sb"], act)     # (M, Npad) bf16
    return out[:, :n].reshape(B, OH, OW, n)


# --------------------------- fused tail kernel ---------------------------------
def _tail_kernel(p4_ref, cc_ref,
                 w4_ref, sb4_ref,
                 w20_ref, sb20_ref,
                 s_ref, w21_ref, sb21_ref, w22_ref, sb22_ref,
                 w30c_ref, w30o_ref, sb30_ref,
                 w4d_ref, b4d_ref,
                 out_ref, unc_ref):
    def affine(acc, sb_ref_):
        sb = sb_ref_[...]
        return acc * sb[0:1, :] + sb[1:2, :]

    def lrelu(y):
        return jnp.maximum(y, LRELU_SLOPE * y)

    def conv3x3(h, w_ref_, sb_ref_):
        # 3x3 / pad 1 conv on the 4x4 map: 9 constant shift-matrix matmuls (MXU only).
        cout = w_ref_.shape[2]
        acc = jnp.zeros((16, cout), jnp.float32)
        for t in range(9):
            sh = jnp.dot(s_ref[t], h, preferred_element_type=jnp.float32)      # (16, Cin)
            acc = acc + jnp.dot(sh, w_ref_[t], preferred_element_type=jnp.float32)
        return affine(acc, sb_ref_)

    # d1_4: conv4x4(stride 2) on the 8x8 map (pre-extracted patches) + BN, no activation
    out1 = affine(jnp.dot(p4_ref[0], w4_ref[...],
                          preferred_element_type=jnp.float32), sb4_ref)        # (16, C8)

    # netD_2
    h2 = lrelu(affine(jnp.dot(out1, w20_ref[...],
                              preferred_element_type=jnp.float32), sb20_ref))  # (16, C2)
    h2 = lrelu(conv3x3(h2, w21_ref, sb21_ref))                                 # (16, C2)
    out2 = conv3x3(h2, w22_ref, sb22_ref)                                      # (16, C8)

    # output_3 = lrelu(output_1 + output_2)
    out3 = lrelu(out1 + out2)

    # netD_3: 1x1 conv on concat(c_code, output_3) == c @ Wc + out3 @ Wo, + BN + lrelu
    hc = (jnp.dot(out3, w30o_ref[...], preferred_element_type=jnp.float32)
          + jnp.dot(cc_ref[0], w30c_ref[...], preferred_element_type=jnp.float32))
    hc = lrelu(affine(hc, sb30_ref))

    # netD_4 (shared weights): 4x4 valid conv on the 4x4 map -> weighted full reduce, sigmoid
    w4d = w4d_ref[...]                                                         # (16, C8)
    b4d = b4d_ref[...]                                                         # (1, 1)

    def head(z):
        s = jnp.sum(z * w4d, axis=1, keepdims=True)                            # (16, 1)
        s = jnp.sum(s, axis=0, keepdims=True)                                  # (1, 1)
        return jax.nn.sigmoid(s + b4d)

    out_ref[0] = head(hc)
    unc_ref[0] = head(out3)


def tail_forward(p4, cc, tp):
    """p4: (B, 16, K4) bf16 d1_4 patches. cc: (B, 1, nef) f32. tp: prepared tail params."""
    B, _, K4 = p4.shape
    C8 = tp["w4"].shape[1]
    C2 = tp["w20"].shape[1]
    nef = tp["w30c"].shape[0]

    full2 = lambda b: (0, 0)
    full3 = lambda b: (0, 0, 0)

    out, unc = pl.pallas_call(
        _tail_kernel,
        out_shape=(jax.ShapeDtypeStruct((B, 1, 1), jnp.float32),
                   jax.ShapeDtypeStruct((B, 1, 1), jnp.float32)),
        grid=(B,),
        in_specs=[
            pl.BlockSpec((1, 16, K4), lambda b: (b, 0, 0)),   # d1_4 patches
            pl.BlockSpec((1, 1, nef), lambda b: (b, 0, 0)),   # c_code
            pl.BlockSpec((K4, C8), full2),                    # w4
            pl.BlockSpec((2, C8), full2),                     # sb4
            pl.BlockSpec((C8, C2), full2),                    # w20
            pl.BlockSpec((2, C2), full2),                     # sb20
            pl.BlockSpec((9, 16, 16), full3),                 # shift matrices
            pl.BlockSpec((9, C2, C2), full3),                 # w21 taps
            pl.BlockSpec((2, C2), full2),                     # sb21
            pl.BlockSpec((9, C2, C8), full3),                 # w22 taps
            pl.BlockSpec((2, C8), full2),                     # sb22
            pl.BlockSpec((nef, C8), full2),                   # w30 (c_code part)
            pl.BlockSpec((C8, C8), full2),                    # w30 (out3 part)
            pl.BlockSpec((2, C8), full2),                     # sb30
            pl.BlockSpec((16, C8), full2),                    # netD_4 weight (rearranged)
            pl.BlockSpec((1, 1), full2),                      # netD_4 bias
        ],
        out_specs=(pl.BlockSpec((1, 1, 1), lambda b: (b, 0, 0)),
                   pl.BlockSpec((1, 1, 1), lambda b: (b, 0, 0))),
        compiler_params=pltpu.CompilerParams(
            dimension_semantics=("parallel",),
            vmem_limit_bytes=VMEM_LIMIT),
    )(p4, cc,
      tp["w4"], tp["sb4"], tp["w20"], tp["sb20"],
      tp["shift"], tp["w21"], tp["sb21"], tp["w22"], tp["sb22"],
      tp["w30c"], tp["w30o"], tp["sb30"], tp["w4d"], tp["b4d"])
    return out.reshape(-1), unc.reshape(-1)


# ------------------------------ Parameters ------------------------------------
def init_params(key, ndf, nef, nc=1):
    params = {}
    counter = [0]

    def nk():
        counter[0] += 1
        return jax.random.fold_in(key, counter[0])

    def conv(name, outc, inc, k):
        params[name + "_w"] = 0.05 * jax.random.normal(nk(), (outc, inc, k, k), jnp.float32)
        params[name + "_b"] = 0.05 * jax.random.normal(nk(), (outc,), jnp.float32)

    def bn(name, c):
        params[name] = (
            1.0 + 0.1 * jax.random.normal(nk(), (c,), jnp.float32),   # gamma
            0.1 * jax.random.normal(nk(), (c,), jnp.float32),         # beta
            0.1 * jax.random.normal(nk(), (c,), jnp.float32),         # running_mean
            1.0 + 0.1 * jax.random.uniform(nk(), (c,), jnp.float32),  # running_var
        )

    # netD_1
    conv("d1_0", ndf, nc, 4)
    conv("d1_1", ndf, ndf, 4)
    conv("d1_2", ndf * 2, ndf, 4); bn("d1_bn2", ndf * 2)
    conv("d1_3", ndf * 4, ndf * 2, 4); bn("d1_bn3", ndf * 4)
    conv("d1_4", ndf * 8, ndf * 4, 4); bn("d1_bn4", ndf * 8)
    # netD_2
    conv("d2_0", ndf * 2, ndf * 8, 1); bn("d2_bn0", ndf * 2)
    conv("d2_1", ndf * 2, ndf * 2, 3); bn("d2_bn1", ndf * 2)
    conv("d2_2", ndf * 8, ndf * 2, 3); bn("d2_bn2", ndf * 8)
    # netD_3
    conv("d3_0", ndf * 8, ndf * 8 + nef, 1); bn("d3_bn0", ndf * 8)
    # netD_4
    conv("d4_0", 1, ndf * 8, 4)
    return params


def _bn_fold(gamma, beta, mean, var, conv_b):
    scale = gamma / jnp.sqrt(var + BN_EPS)
    bias = (conv_b - mean) * scale + beta
    return scale, bias


def _gemm_layer(w, conv_b, bn):
    """Fold conv bias + BN, reshape weight to (K, Npad) bf16, pack (scale; bias) as (2, Npad)."""
    outC, inC, kh, kw = w.shape
    K = inC * kh * kw
    if bn is not None:
        scale, bias = _bn_fold(*bn, conv_b)
    else:
        scale = jnp.ones((outC,), jnp.float32)
        bias = conv_b
    Npad = _round_up(outC, LANE)
    w_t = jnp.pad(w.reshape(outC, K).T, ((0, 0), (0, Npad - outC))).astype(jnp.bfloat16)
    sb = jnp.stack([
        jnp.pad(scale, (0, Npad - outC), constant_values=1.0),
        jnp.pad(bias, (0, Npad - outC)),
    ]).astype(jnp.float32)
    return {"w": w_t, "sb": sb}


def _taps_3x3(w):
    # (Cout, Cin, 3, 3) -> (9, Cin, Cout), tap index t = ki*3 + kj
    return jnp.transpose(w, (2, 3, 1, 0)).reshape(9, w.shape[1], w.shape[0]).astype(jnp.float32)


def _shift_matrices():
    # S[t, r, r'] picks input row r' = (i+di)*4 + (j+dj) for output row r = i*4+j.
    s = np.zeros((9, 16, 16), np.float32)
    for t, (di, dj) in enumerate([(di, dj) for di in (-1, 0, 1) for dj in (-1, 0, 1)]):
        for i in range(4):
            for j in range(4):
                ii, jj = i + di, j + dj
                if 0 <= ii < 4 and 0 <= jj < 4:
                    s[t, i * 4 + j, ii * 4 + jj] = 1.0
    return jnp.asarray(s)


def prepare_params(params, ndf, nef):
    """All BN folding / weight reshaping / padding done ONCE, outside the jitted forward."""
    p = params
    prep = {
        "g0": _gemm_layer(p["d1_0_w"], p["d1_0_b"], None),
        "g1": _gemm_layer(p["d1_1_w"], p["d1_1_b"], None),
        "g2": _gemm_layer(p["d1_2_w"], p["d1_2_b"], p["d1_bn2"]),
        "g3": _gemm_layer(p["d1_3_w"], p["d1_3_b"], p["d1_bn3"]),
    }
    C8 = 8 * ndf
    tp = {}
    # d1_4 (conv4x4 s2 + BN), executed inside the tail kernel as a GEMM over patches
    s4, b4 = _bn_fold(*p["d1_bn4"], p["d1_4_b"])
    tp["w4"] = p["d1_4_w"].reshape(C8, -1).T.astype(jnp.bfloat16)          # (K4, C8)
    tp["sb4"] = jnp.stack([s4, b4]).astype(jnp.float32)
    # netD_2
    s20, b20 = _bn_fold(*p["d2_bn0"], p["d2_0_b"])
    tp["w20"] = p["d2_0_w"][:, :, 0, 0].T.astype(jnp.float32)              # (C8, C2)
    tp["sb20"] = jnp.stack([s20, b20]).astype(jnp.float32)
    s21, b21 = _bn_fold(*p["d2_bn1"], p["d2_1_b"])
    tp["w21"] = _taps_3x3(p["d2_1_w"])                                     # (9, C2, C2)
    tp["sb21"] = jnp.stack([s21, b21]).astype(jnp.float32)
    s22, b22 = _bn_fold(*p["d2_bn2"], p["d2_2_b"])
    tp["w22"] = _taps_3x3(p["d2_2_w"])                                     # (9, C2, C8)
    tp["sb22"] = jnp.stack([s22, b22]).astype(jnp.float32)
    tp["shift"] = _shift_matrices()
    # netD_3: split the 1x1 weight over the concat [c_code, out3]
    s30, b30 = _bn_fold(*p["d3_bn0"], p["d3_0_b"])
    w30 = p["d3_0_w"][:, :, 0, 0]                                          # (C8, nef + C8)
    tp["w30c"] = w30[:, :nef].T.astype(jnp.float32)                        # (nef, C8)
    tp["w30o"] = w30[:, nef:].T.astype(jnp.float32)                        # (C8, C8)
    tp["sb30"] = jnp.stack([s30, b30]).astype(jnp.float32)
    # netD_4: 4x4 valid conv on the 4x4 map -> (16, C8) weight + (1,1) bias
    tp["w4d"] = jnp.transpose(p["d4_0_w"][0], (1, 2, 0)).reshape(16, C8).astype(jnp.float32)
    tp["b4d"] = p["d4_0_b"].reshape(1, 1).astype(jnp.float32)
    prep["tail"] = tp
    return prep


# ------------------------------ Forward pass ----------------------------------
def dnet_baw_forward(prep, x_nchw, c_code, *, ndf):
    x = jnp.transpose(x_nchw, (0, 2, 3, 1)).astype(jnp.bfloat16)  # NCHW -> NHWC, bf16
    B = x.shape[0]

    # netD_1 (first 4 layers): fused im2col-GEMM Pallas kernels
    h = gemm_conv(x, prep["g0"], ndf, "lrelu")
    h = gemm_conv(h, prep["g1"], ndf, "lrelu")
    h = gemm_conv(h, prep["g2"], 2 * ndf, "lrelu")
    h = gemm_conv(h, prep["g3"], 4 * ndf, None)                   # (B, 8, 8, 4*ndf)

    # Patches for the last netD_1 conv; everything from here runs in ONE fused kernel.
    p4, OH, OW = im2col_nhwc(h, 4, 4, 2, 1)                       # (B*16, 4*ndf*16)
    p4 = p4.reshape(B, OH * OW, -1)                               # (B, 16, K4) bf16
    cc = c_code.reshape(B, 1, -1).astype(jnp.float32)

    return tail_forward(p4, cc, prep["tail"])


# --------------------------------- main ----------------------------------------
if __name__ == "__main__":
    # 5 stride-2 convs need a 128x128 input to reach the 4x4 feature map that the
    # c_code concat and the 4x4 netD_4 conv assume; channel counts kept small.
    ndf, nef, B = 8, 16, 2
    key = jax.random.PRNGKey(0)

    params = init_params(jax.random.fold_in(key, 100), ndf, nef)
    x = jax.random.normal(jax.random.fold_in(key, 1), (B, 1, 128, 128), jnp.float32)
    c_code = jax.random.normal(jax.random.fold_in(key, 2), (B, nef), jnp.float32)

    prep = prepare_params(params, ndf, nef)        # weight prep hoisted out of jit
    fwd = jax.jit(dnet_baw_forward, static_argnames=("ndf",))
    out, uncond = fwd(prep, x, c_code, ndf=ndf)
    jax.block_until_ready((out, uncond))

    assert out.shape == (B,) and uncond.shape == (B,)
    assert bool(jnp.all((out >= 0) & (out <= 1))) and bool(jnp.all((uncond >= 0) & (uncond <= 1)))
    print("KERNEL_OK")
</pallas_src>

<mosaic_0001>
module attributes {stable_mosaic.version = 11 : i64} {
  func.func @_gemm_kernel(%arg0: i32, %arg1: memref<512x16xbf16, #tpu.memory_space<vmem>>, %arg2: memref<16x128xbf16, #tpu.memory_space<vmem>>, %arg3: memref<2x128xf32, #tpu.memory_space<vmem>>, %arg4: memref<512x128xbf16, #tpu.memory_space<vmem>>) attributes {dimension_semantics = [#tpu.dimension_semantics<parallel>], iteration_bounds = array<i64: 16>, scalar_prefetch = 0 : i64, scratch_operands = 0 : i64, tpu.core_type = #tpu.core_type<tc>, window_params = [{transform_indices = @transform_0, window_bounds = array<i64: 512, 16>}, {pipeline_mode = #tpu.pipeline_mode<synchronous>, transform_indices = @transform_1, window_bounds = array<i64: 16, 128>}, {pipeline_mode = #tpu.pipeline_mode<synchronous>, transform_indices = @transform_2, window_bounds = array<i64: 2, 128>}, {transform_indices = @transform_3, window_bounds = array<i64: 512, 128>}]} {
    %c0 = arith.constant 0 : index
    %c0_0 = arith.constant 0 : index
    %0 = vector.load %arg1[%c0, %c0_0] : memref<512x16xbf16, #tpu.memory_space<vmem>>, vector<512x16xbf16>
    %c0_1 = arith.constant 0 : index
    %c0_2 = arith.constant 0 : index
    %1 = vector.load %arg2[%c0_1, %c0_2] : memref<16x128xbf16, #tpu.memory_space<vmem>>, vector<16x128xbf16>
    %cst = arith.constant dense<0.000000e+00> : vector<512x128xf32>
    %2 = tpu.matmul %0, %1, %cst {dimension_numbers = #tpu.dot_dimension_numbers<[1], [0], [0], [1], [0, 0, 1, 1], [], []>} : vector<512x16xbf16>, vector<16x128xbf16>, vector<512x128xf32> -> vector<512x128xf32>
    %c0_3 = arith.constant 0 : index
    %c0_4 = arith.constant 0 : index
    %3 = vector.load %arg3[%c0_3, %c0_4] : memref<2x128xf32, #tpu.memory_space<vmem>>, vector<2x128xf32>
    %4 = vector.extract_strided_slice %3 {offsets = [0, 0], sizes = [1, 128], strides = [1, 1]} : vector<2x128xf32> to vector<1x128xf32>
    %5 = vector.broadcast %4 : vector<1x128xf32> to vector<512x128xf32>
    %6 = arith.mulf %2, %5 : vector<512x128xf32>
    %7 = vector.extract_strided_slice %3 {offsets = [1, 0], sizes = [1, 128], strides = [1, 1]} : vector<2x128xf32> to vector<1x128xf32>
    %8 = vector.broadcast %7 : vector<1x128xf32> to vector<512x128xf32>
    %9 = arith.addf %6, %8 : vector<512x128xf32>
    %cst_5 = arith.constant 2.000000e-01 : f32
    %10 = vector.broadcast %cst_5 : f32 to vector<512x128xf32>
    %11 = arith.mulf %10, %9 : vector<512x128xf32>
    %12 = arith.maximumf %9, %11 : vector<512x128xf32>
    %13 = arith.truncf %12 : vector<512x128xf32> to vector<512x128xbf16>
    %c0_6 = arith.constant 0 : index
    %c0_7 = arith.constant 0 : index
    %14 = vector.load %arg4[%c0_6, %c0_7] : memref<512x128xbf16, #tpu.memory_space<vmem>>, vector<512x128xbf16>
    tpu.vector_store %arg4[%c0_6, %c0_7], %13 {strides = array<i32>} : memref<512x128xbf16, #tpu.memory_space<vmem>>, vector<512x128xbf16>,
    return
  }
  func.func @transform_0(%arg0: i32) -> (i32, i32) {
    %c0_i32 = arith.constant 0 : i32
    %c0_i32_0 = arith.constant 0 : i32
    return %arg0, %c0_i32 : i32, i32
  }
  func.func @transform_1(%arg0: i32) -> (i32, i32) {
    %c0_i32 = arith.constant 0 : i32
    %c0_i32_0 = arith.constant 0 : i32
    %c0_i32_1 = arith.constant 0 : i32
    return %c0_i32, %c0_i32_0 : i32, i32
  }
  func.func @transform_2(%arg0: i32) -> (i32, i32) {
    %c0_i32 = arith.constant 0 : i32
    %c0_i32_0 = arith.constant 0 : i32
    %c0_i32_1 = arith.constant 0 : i32
    return %c0_i32, %c0_i32_0 : i32, i32
  }
  func.func @transform_3(%arg0: i32) -> (i32, i32) {
    %c0_i32 = arith.constant 0 : i32
    %c0_i32_0 = arith.constant 0 : i32
    return %arg0, %c0_i32 : i32, i32
  }
}

module attributes {stable_mosaic.version = 11 : i64} {
  func.func @_gemm_kernel(%arg0: i32, %arg1: memref<512x128xbf16, #tpu.memory_space<vmem>>, %arg2: memref<128x128xbf16, #tpu.memory_space<vmem>>, %arg3: memref<2x128xf32, #tpu.memory_space<vmem>>, %arg4: memref<512x128xbf16, #tpu.memory_space<vmem>>) attributes {dimension_semantics = [#tpu.dimension_semantics<parallel>], iteration_bounds = array<i64: 4>, scalar_prefetch = 0 : i64, scratch_operands = 0 : i64, tpu.core_type = #tpu.core_type<tc>, window_params = [{transform_indices = @transform_0, window_bounds = array<i64: 512, 128>}, {pipeline_mode = #tpu.pipeline_mode<synchronous>, transform_indices = @transform_1, window_bounds = array<i64: 128, 128>}, {pipeline_mode = #tpu.pipeline_mode<synchronous>, transform_indices = @transform_2, window_bounds = array<i64: 2, 128>}, {transform_indices = @transform_3, window_bounds = array<i64: 512, 128>}]} {
    %c0 = arith.constant 0 : index
    %c0_0 = arith.constant 0 : index
    %0 = vector.load %arg1[%c0, %c0_0] : memref<512x128xbf16, #tpu.memory_space<vmem>>, vector<512x128xbf16>
    %c0_1 = arith.constant 0 : index
    %c0_2 = arith.constant 0 : index
    %1 = vector.load %arg2[%c0_1, %c0_2] : memref<128x128xbf16, #tpu.memory_space<vmem>>, vector<128x128xbf16>
    %cst = arith.constant dense<0.000000e+00> : vector<512x128xf32>
    %2 = tpu.matmul %0, %1, %cst {dimension_numbers = #tpu.dot_dimension_numbers<[1], [0], [0], [1], [0, 0, 1, 1], [], []>} : vector<512x128xbf16>, vector<128x128xbf16>, vector<512x128xf32> -> vector<512x128xf32>
    %c0_3 = arith.constant 0 : index
    %c0_4 = arith.constant 0 : index
    %3 = vector.load %arg3[%c0_3, %c0_4] : memref<2x128xf32, #tpu.memory_space<vmem>>, vector<2x128xf32>
    %4 = vector.extract_strided_slice %3 {offsets = [0, 0], sizes = [1, 128], strides = [1, 1]} : vector<2x128xf32> to vector<1x128xf32>
    %5 = vector.broadcast %4 : vector<1x128xf32> to vector<512x128xf32>
    %6 = arith.mulf %2, %5 : vector<512x128xf32>
    %7 = vector.extract_strided_slice %3 {offsets = [1, 0], sizes = [1, 128], strides = [1, 1]} : vector<2x128xf32> to vector<1x128xf32>
    %8 = vector.broadcast %7 : vector<1x128xf32> to vector<512x128xf32>
    %9 = arith.addf %6, %8 : vector<512x128xf32>
    %cst_5 = arith.constant 2.000000e-01 : f32
    %10 = vector.broadcast %cst_5 : f32 to vector<512x128xf32>
    %11 = arith.mulf %10, %9 : vector<512x128xf32>
    %12 = arith.maximumf %9, %11 : vector<512x128xf32>
    %13 = arith.truncf %12 : vector<512x128xf32> to vector<512x128xbf16>
    %c0_6 = arith.constant 0 : index
    %c0_7 = arith.constant 0 : index
    %14 = vector.load %arg4[%c0_6, %c0_7] : memref<512x128xbf16, #tpu.memory_space<vmem>>, vector<512x128xbf16>
    tpu.vector_store %arg4[%c0_6, %c0_7], %13 {strides = array<i32>} : memref<512x128xbf16, #tpu.memory_space<vmem>>, vector<512x128xbf16>,
    return
  }
  func.func @transform_0(%arg0: i32) -> (i32, i32) {
    %c0_i32 = arith.constant 0 : i32
    %c0_i32_0 = arith.constant 0 : i32
    return %arg0, %c0_i32 : i32, i32
  }
  func.func @transform_1(%arg0: i32) -> (i32, i32) {
    %c0_i32 = arith.constant 0 : i32
    %c0_i32_0 = arith.constant 0 : i32
    %c0_i32_1 = arith.constant 0 : i32
    return %c0_i32, %c0_i32_0 : i32, i32
  }
  func.func @transform_2(%arg0: i32) -> (i32, i32) {
    %c0_i32 = arith.constant 0 : i32
    %c0_i32_0 = arith.constant 0 : i32
    %c0_i32_1 = arith.constant 0 : i32
    return %c0_i32, %c0_i32_0 : i32, i32
  }
  func.func @transform_3(%arg0: i32) -> (i32, i32) {
    %c0_i32 = arith.constant 0 : i32
    %c0_i32_0 = arith.constant 0 : i32
    return %arg0, %c0_i32 : i32, i32
  }
}

module attributes {stable_mosaic.version = 11 : i64} {
  func.func @_gemm_kernel(%arg0: i32, %arg1: memref<256x128xbf16, #tpu.memory_space<vmem>>, %arg2: memref<128x128xbf16, #tpu.memory_space<vmem>>, %arg3: memref<2x128xf32, #tpu.memory_space<vmem>>, %arg4: memref<256x128xbf16, #tpu.memory_space<vmem>>) attributes {dimension_semantics = [#tpu.dimension_semantics<parallel>], iteration_bounds = array<i64: 2>, scalar_prefetch = 0 : i64, scratch_operands = 0 : i64, tpu.core_type = #tpu.core_type<tc>, window_params = [{transform_indices = @transform_0, window_bounds = array<i64: 256, 128>}, {pipeline_mode = #tpu.pipeline_mode<synchronous>, transform_indices = @transform_1, window_bounds = array<i64: 128, 128>}, {pipeline_mode = #tpu.pipeline_mode<synchronous>, transform_indices = @transform_2, window_bounds = array<i64: 2, 128>}, {transform_indices = @transform_3, window_bounds = array<i64: 256, 128>}]} {
    %c0 = arith.constant 0 : index
    %c0_0 = arith.constant 0 : index
    %0 = vector.load %arg1[%c0, %c0_0] : memref<256x128xbf16, #tpu.memory_space<vmem>>, vector<256x128xbf16>
    %c0_1 = arith.constant 0 : index
    %c0_2 = arith.constant 0 : index
    %1 = vector.load %arg2[%c0_1, %c0_2] : memref<128x128xbf16, #tpu.memory_space<vmem>>, vector<128x128xbf16>
    %cst = arith.constant dense<0.000000e+00> : vector<256x128xf32>
    %2 = tpu.matmul %0, %1, %cst {dimension_numbers = #tpu.dot_dimension_numbers<[1], [0], [0], [1], [0, 0, 1, 1], [], []>} : vector<256x128xbf16>, vector<128x128xbf16>, vector<256x128xf32> -> vector<256x128xf32>
    %c0_3 = arith.constant 0 : index
    %c0_4 = arith.constant 0 : index
    %3 = vector.load %arg3[%c0_3, %c0_4] : memref<2x128xf32, #tpu.memory_space<vmem>>, vector<2x128xf32>
    %4 = vector.extract_strided_slice %3 {offsets = [0, 0], sizes = [1, 128], strides = [1, 1]} : vector<2x128xf32> to vector<1x128xf32>
    %5 = vector.broadcast %4 : vector<1x128xf32> to vector<256x128xf32>
    %6 = arith.mulf %2, %5 : vector<256x128xf32>
    %7 = vector.extract_strided_slice %3 {offsets = [1, 0], sizes = [1, 128], strides = [1, 1]} : vector<2x128xf32> to vector<1x128xf32>
    %8 = vector.broadcast %7 : vector<1x128xf32> to vector<256x128xf32>
    %9 = arith.addf %6, %8 : vector<256x128xf32>
    %cst_5 = arith.constant 2.000000e-01 : f32
    %10 = vector.broadcast %cst_5 : f32 to vector<256x128xf32>
    %11 = arith.mulf %10, %9 : vector<256x128xf32>
    %12 = arith.maximumf %9, %11 : vector<256x128xf32>
    %13 = arith.truncf %12 : vector<256x128xf32> to vector<256x128xbf16>
    %c0_6 = arith.constant 0 : index
    %c0_7 = arith.constant 0 : index
    %14 = vector.load %arg4[%c0_6, %c0_7] : memref<256x128xbf16, #tpu.memory_space<vmem>>, vector<256x128xbf16>
    tpu.vector_store %arg4[%c0_6, %c0_7], %13 {strides = array<i32>} : memref<256x128xbf16, #tpu.memory_space<vmem>>, vector<256x128xbf16>,
    return
  }
  func.func @transform_0(%arg0: i32) -> (i32, i32) {
    %c0_i32 = arith.constant 0 : i32
    %c0_i32_0 = arith.constant 0 : i32
    return %arg0, %c0_i32 : i32, i32
  }
  func.func @transform_1(%arg0: i32) -> (i32, i32) {
    %c0_i32 = arith.constant 0 : i32
    %c0_i32_0 = arith.constant 0 : i32
    %c0_i32_1 = arith.constant 0 : i32
    return %c0_i32, %c0_i32_0 : i32, i32
  }
  func.func @transform_2(%arg0: i32) -> (i32, i32) {
    %c0_i32 = arith.constant 0 : i32
    %c0_i32_0 = arith.constant 0 : i32
    %c0_i32_1 = arith.constant 0 : i32
    return %c0_i32, %c0_i32_0 : i32, i32
  }
  func.func @transform_3(%arg0: i32) -> (i32, i32) {
    %c0_i32 = arith.constant 0 : i32
    %c0_i32_0 = arith.constant 0 : i32
    return %arg0, %c0_i32 : i32, i32
  }
}

module attributes {stable_mosaic.version = 11 : i64} {
  func.func @_gemm_kernel(%arg0: i32, %arg1: memref<64x256xbf16, #tpu.memory_space<vmem>>, %arg2: memref<256x128xbf16, #tpu.memory_space<vmem>>, %arg3: memref<2x128xf32, #tpu.memory_space<vmem>>, %arg4: memref<64x128xbf16, #tpu.memory_space<vmem>>) attributes {dimension_semantics = [#tpu.dimension_semantics<parallel>], iteration_bounds = array<i64: 2>, scalar_prefetch = 0 : i64, scratch_operands = 0 : i64, tpu.core_type = #tpu.core_type<tc>, window_params = [{transform_indices = @transform_0, window_bounds = array<i64: 64, 256>}, {pipeline_mode = #tpu.pipeline_mode<synchronous>, transform_indices = @transform_1, window_bounds = array<i64: 256, 128>}, {pipeline_mode = #tpu.pipeline_mode<synchronous>, transform_indices = @transform_2, window_bounds = array<i64: 2, 128>}, {transform_indices = @transform_3, window_bounds = array<i64: 64, 128>}]} {
    %c0 = arith.constant 0 : index
    %c0_0 = arith.constant 0 : index
    %0 = vector.load %arg1[%c0, %c0_0] : memref<64x256xbf16, #tpu.memory_space<vmem>>, vector<64x256xbf16>
    %c0_1 = arith.constant 0 : index
    %c0_2 = arith.constant 0 : index
    %1 = vector.load %arg2[%c0_1, %c0_2] : memref<256x128xbf16, #tpu.memory_space<vmem>>, vector<256x128xbf16>
    %cst = arith.constant dense<0.000000e+00> : vector<64x128xf32>
    %2 = tpu.matmul %0, %1, %cst {dimension_numbers = #tpu.dot_dimension_numbers<[1], [0], [0], [1], [0, 0, 1, 1], [], []>} : vector<64x256xbf16>, vector<256x128xbf16>, vector<64x128xf32> -> vector<64x128xf32>
    %c0_3 = arith.constant 0 : index
    %c0_4 = arith.constant 0 : index
    %3 = vector.load %arg3[%c0_3, %c0_4] : memref<2x128xf32, #tpu.memory_space<vmem>>, vector<2x128xf32>
    %4 = vector.extract_strided_slice %3 {offsets = [0, 0], sizes = [1, 128], strides = [1, 1]} : vector<2x128xf32> to vector<1x128xf32>
    %5 = vector.broadcast %4 : vector<1x128xf32> to vector<64x128xf32>
    %6 = arith.mulf %2, %5 : vector<64x128xf32>
    %7 = vector.extract_strided_slice %3 {offsets = [1, 0], sizes = [1, 128], strides = [1, 1]} : vector<2x128xf32> to vector<1x128xf32>
    %8 = vector.broadcast %7 : vector<1x128xf32> to vector<64x128xf32>
    %9 = arith.addf %6, %8 : vector<64x128xf32>
    %10 = arith.truncf %9 : vector<64x128xf32> to vector<64x128xbf16>
    %c0_5 = arith.constant 0 : index
    %c0_6 = arith.constant 0 : index
    %11 = vector.load %arg4[%c0_5, %c0_6] : memref<64x128xbf16, #tpu.memory_space<vmem>>, vector<64x128xbf16>
    tpu.vector_store %arg4[%c0_5, %c0_6], %10 {strides = array<i32>} : memref<64x128xbf16, #tpu.memory_space<vmem>>, vector<64x128xbf16>,
    return
  }
  func.func @transform_0(%arg0: i32) -> (i32, i32) {
    %c0_i32 = arith.constant 0 : i32
    %c0_i32_0 = arith.constant 0 : i32
    return %arg0, %c0_i32 : i32, i32
  }
  func.func @transform_1(%arg0: i32) -> (i32, i32) {
    %c0_i32 = arith.constant 0 : i32
    %c0_i32_0 = arith.constant 0 : i32
    %c0_i32_1 = arith.constant 0 : i32
    return %c0_i32, %c0_i32_0 : i32, i32
  }
  func.func @transform_2(%arg0: i32) -> (i32, i32) {
    %c0_i32 = arith.constant 0 : i32
    %c0_i32_0 = arith.constant 0 : i32
    %c0_i32_1 = arith.constant 0 : i32
    return %c0_i32, %c0_i32_0 : i32, i32
  }
  func.func @transform_3(%arg0: i32) -> (i32, i32) {
    %c0_i32 = arith.constant 0 : i32
    %c0_i32_0 = arith.constant 0 : i32
    return %arg0, %c0_i32 : i32, i32
  }
}

module attributes {stable_mosaic.version = 11 : i64} {
  func.func @_tail_kernel(%arg0: i32, %arg1: memref<1x16x512xbf16, #tpu.memory_space<vmem>>, %arg2: memref<1x1x16xf32, #tpu.memory_space<vmem>>, %arg3: memref<512x64xbf16, #tpu.memory_space<vmem>>, %arg4: memref<2x64xf32, #tpu.memory_space<vmem>>, %arg5: memref<64x16xf32, #tpu.memory_space<vmem>>, %arg6: memref<2x16xf32, #tpu.memory_space<vmem>>, %arg7: memref<9x16x16xf32, #tpu.memory_space<vmem>>, %arg8: memref<9x16x16xf32, #tpu.memory_space<vmem>>, %arg9: memref<2x16xf32, #tpu.memory_space<vmem>>, %arg10: memref<9x16x64xf32, #tpu.memory_space<vmem>>, %arg11: memref<2x64xf32, #tpu.memory_space<vmem>>, %arg12: memref<16x64xf32, #tpu.memory_space<vmem>>, %arg13: memref<64x64xf32, #tpu.memory_space<vmem>>, %arg14: memref<2x64xf32, #tpu.memory_space<vmem>>, %arg15: memref<16x64xf32, #tpu.memory_space<vmem>>, %arg16: memref<1x1xf32, #tpu.memory_space<vmem>>, %arg17: memref<1x1x1xf32, #tpu.memory_space<vmem>>, %arg18: memref<1x1x1xf32, #tpu.memory_space<vmem>>) attributes {dimension_semantics = [#tpu.dimension_semantics<parallel>], iteration_bounds = array<i64: 2>, scalar_prefetch = 0 : i64, scratch_operands = 0 : i64, tpu.core_type = #tpu.core_type<tc>, window_params = [{transform_indices = @transform_0, window_bounds = array<i64: 1, 16, 512>}, {transform_indices = @transform_1, window_bounds = array<i64: 1, 1, 16>}, {pipeline_mode = #tpu.pipeline_mode<synchronous>, transform_indices = @transform_2, window_bounds = array<i64: 512, 64>}, {pipeline_mode = #tpu.pipeline_mode<synchronous>, transform_indices = @transform_3, window_bounds = array<i64: 2, 64>}, {pipeline_mode = #tpu.pipeline_mode<synchronous>, transform_indices = @transform_4, window_bounds = array<i64: 64, 16>}, {pipeline_mode = #tpu.pipeline_mode<synchronous>, transform_indices = @transform_5, window_bounds = array<i64: 2, 16>}, {pipeline_mode = #tpu.pipeline_mode<synchronous>, transform_indices = @transform_6, window_bounds = array<i64: 9, 16, 16>}, {pipeline_mode = #tpu.pipeline_mode<synchronous>, transform_indices = @transform_7, window_bounds = array<i64: 9, 16, 16>}, {pipeline_mode = #tpu.pipeline_mode<synchronous>, transform_indices = @transform_8, window_bounds = array<i64: 2, 16>}, {pipeline_mode = #tpu.pipeline_mode<synchronous>, transform_indices = @transform_9, window_bounds = array<i64: 9, 16, 64>}, {pipeline_mode = #tpu.pipeline_mode<synchronous>, transform_indices = @transform_10, window_bounds = array<i64: 2, 64>}, {pipeline_mode = #tpu.pipeline_mode<synchronous>, transform_indices = @transform_11, window_bounds = array<i64: 16, 64>}, {pipeline_mode = #tpu.pipeline_mode<synchronous>, transform_indices = @transform_12, window_bounds = array<i64: 64, 64>}, {pipeline_mode = #tpu.pipeline_mode<synchronous>, transform_indices = @transform_13, window_bounds = array<i64: 2, 64>}, {pipeline_mode = #tpu.pipeline_mode<synchronous>, transform_indices = @transform_14, window_bounds = array<i64: 16, 64>}, {pipeline_mode = #tpu.pipeline_mode<synchronous>, transform_indices = @transform_15, window_bounds = array<i64: 1, 1>}, {transform_indices = @transform_16, window_bounds = array<i64: 1, 1, 1>}, {transform_indices = @transform_17, window_bounds = array<i64: 1, 1, 1>}]} {
    %c0 = arith.constant 0 : index
    %c0_0 = arith.constant 0 : index
    %c0_1 = arith.constant 0 : index
    %0 = vector.load %arg1[%c0, %c0_0, %c0_1] : memref<1x16x512xbf16, #tpu.memory_space<vmem>>, vector<1x16x512xbf16>
    %1 = vector.shape_cast %0 : vector<1x16x512xbf16> to vector<16x512xbf16>
    %c0_2 = arith.constant 0 : index
    %c0_3 = arith.constant 0 : index
    %2 = vector.load %arg3[%c0_2, %c0_3] : memref<512x64xbf16, #tpu.memory_space<vmem>>, vector<512x64xbf16>
    %cst = arith.constant dense<0.000000e+00> : vector<16x64xf32>
    %3 = tpu.matmul %1, %2, %cst {dimension_numbers = #tpu.dot_dimension_numbers<[1], [0], [0], [1], [0, 0, 1, 1], [], []>} : vector<16x512xbf16>, vector<512x64xbf16>, vector<16x64xf32> -> vector<16x64xf32>
    %c0_4 = arith.constant 0 : index
    %c0_5 = arith.constant 0 : index
    %4 = vector.load %arg4[%c0_4, %c0_5] : memref<2x64xf32, #tpu.memory_space<vmem>>, vector<2x64xf32>
    %5 = vector.extract_strided_slice %4 {offsets = [0, 0], sizes = [1, 64], strides = [1, 1]} : vector<2x64xf32> to vector<1x64xf32>
    %6 = vector.broadcast %5 : vector<1x64xf32> to vector<16x64xf32>
    %7 = arith.mulf %3, %6 : vector<16x64xf32>
    %8 = vector.extract_strided_slice %4 {offsets = [1, 0], sizes = [1, 64], strides = [1, 1]} : vector<2x64xf32> to vector<1x64xf32>
    %9 = vector.broadcast %8 : vector<1x64xf32> to vector<16x64xf32>
    %10 = arith.addf %7, %9 : vector<16x64xf32>
    %c0_6 = arith.constant 0 : index
    %c0_7 = arith.constant 0 : index
    %11 = vector.load %arg5[%c0_6, %c0_7] : memref<64x16xf32, #tpu.memory_space<vmem>>, vector<64x16xf32>
    %cst_8 = arith.constant dense<0.000000e+00> : vector<16x16xf32>
    %12 = tpu.matmul %10, %11, %cst_8 {dimension_numbers = #tpu.dot_dimension_numbers<[1], [0], [0], [1], [0, 0, 1, 1], [], []>} : vector<16x64xf32>, vector<64x16xf32>, vector<16x16xf32> -> vector<16x16xf32>
    %c0_9 = arith.constant 0 : index
    %c0_10 = arith.constant 0 : index
    %13 = vector.load %arg6[%c0_9, %c0_10] : memref<2x16xf32, #tpu.memory_space<vmem>>, vector<2x16xf32>
    %14 = vector.extract_strided_slice %13 {offsets = [0, 0], sizes = [1, 16], strides = [1, 1]} : vector<2x16xf32> to vector<1x16xf32>
    %15 = vector.broadcast %14 : vector<1x16xf32> to vector<16x16xf32>
    %16 = arith.mulf %12, %15 : vector<16x16xf32>
    %17 = vector.extract_strided_slice %13 {offsets = [1, 0], sizes = [1, 16], strides = [1, 1]} : vector<2x16xf32> to vector<1x16xf32>
    %18 = vector.broadcast %17 : vector<1x16xf32> to vector<16x16xf32>
    %19 = arith.addf %16, %18 : vector<16x16xf32>
    %cst_11 = arith.constant 2.000000e-01 : f32
    %20 = vector.broadcast %cst_11 : f32 to vector<16x16xf32>
    %21 = arith.mulf %20, %19 : vector<16x16xf32>
    %22 = arith.maximumf %19, %21 : vector<16x16xf32>
    %cst_12 = arith.constant 0.000000e+00 : f32
    %23 = vector.broadcast %cst_12 : f32 to vector<16x16xf32>
    %c0_13 = arith.constant 0 : index
    %c0_14 = arith.constant 0 : index
    %c0_15 = arith.constant 0 : index
    %24 = vector.load %arg7[%c0_13, %c0_14, %c0_15] : memref<9x16x16xf32, #tpu.memory_space<vmem>>, vector<1x16x16xf32>
    %25 = vector.shape_cast %24 : vector<1x16x16xf32> to vector<16x16xf32>
    %cst_16 = arith.constant dense<0.000000e+00> : vector<16x16xf32>
    %26 = tpu.matmul %25, %22, %cst_16 {dimension_numbers = #tpu.dot_dimension_numbers<[1], [0], [0], [1], [0, 0, 1, 1], [], []>} : vector<16x16xf32>, vector<16x16xf32>, vector<16x16xf32> -> vector<16x16xf32>
    %c0_17 = arith.constant 0 : index
    %c0_18 = arith.constant 0 : index
    %c0_19 = arith.constant 0 : index
    %27 = vector.load %arg8[%c0_17, %c0_18, %c0_19] : memref<9x16x16xf32, #tpu.memory_space<vmem>>, vector<1x16x16xf32>
    %28 = vector.shape_cast %27 : vector<1x16x16xf32> to vector<16x16xf32>
    %cst_20 = arith.constant dense<0.000000e+00> : vector<16x16xf32>
    %29 = tpu.matmul %26, %28, %cst_20 {dimension_numbers = #tpu.dot_dimension_numbers<[1], [0], [0], [1], [0, 0, 1, 1], [], []>} : vector<16x16xf32>, vector<16x16xf32>, vector<16x16xf32> -> vector<16x16xf32>
    %30 = arith.addf %23, %29 : vector<16x16xf32>
    %c1 = arith.constant 1 : index
    %c0_21 = arith.constant 0 : index
    %c0_22 = arith.constant 0 : index
    %31 = vector.load %arg7[%c1, %c0_21, %c0_22] : memref<9x16x16xf32, #tpu.memory_space<vmem>>, vector<1x16x16xf32>
    %32 = vector.shape_cast %31 : vector<1x16x16xf32> to vector<16x16xf32>
    %cst_23 = arith.constant dense<0.000000e+00> : vector<16x16xf32>
    %33 = tpu.matmul %32, %22, %cst_23 {dimension_numbers = #tpu.dot_dimension_numbers<[1], [0], [0], [1], [0, 0, 1, 1], [], []>} : vector<16x16xf32>, vector<16x16xf32>, vector<16x16xf32> -> vector<16x16xf32>
    %c1_24 = arith.constant 1 : index
    %c0_25 = arith.constant 0 : index
    %c0_26 = arith.constant 0 : index
    %34 = vector.load %arg8[%c1_24, %c0_25, %c0_26] : memref<9x16x16xf32, #tpu.memory_space<vmem>>, vector<1x16x16xf32>
    %35 = vector.shape_cast %34 : vector<1x16x16xf32> to vector<16x16xf32>
    %cst_27 = arith.constant dense<0.000000e+00> : vector<16x16xf32>
    %36 = tpu.matmul %33, %35, %cst_27 {dimension_numbers = #tpu.dot_dimension_numbers<[1], [0], [0], [1], [0, 0, 1, 1], [], []>} : vector<16x16xf32>, vector<16x16xf32>, vector<16x16xf32> -> vector<16x16xf32>
    %37 = arith.addf %30, %36 : vector<16x16xf32>
    %c2 = arith.constant 2 : index
    %c0_28 = arith.constant 0 : index
    %c0_29 = arith.constant 0 : index
    %38 = vector.load %arg7[%c2, %c0_28, %c0_29] : memref<9x16x16xf32, #tpu.memory_space<vmem>>, vector<1x16x16xf32>
    %39 = vector.shape_cast %38 : vector<1x16x16xf32> to vector<16x16xf32>
    %cst_30 = arith.constant dense<0.000000e+00> : vector<16x16xf32>
    %40 = tpu.matmul %39, %22, %cst_30 {dimension_numbers = #tpu.dot_dimension_numbers<[1], [0], [0], [1], [0, 0, 1, 1], [], []>} : vector<16x16xf32>, vector<16x16xf32>, vector<16x16xf32> -> vector<16x16xf32>
    %c2_31 = arith.constant 2 : index
    %c0_32 = arith.constant 0 : index
    %c0_33 = arith.constant 0 : index
    %41 = vector.load %arg8[%c2_31, %c0_32, %c0_33] : memref<9x16x16xf32, #tpu.memory_space<vmem>>, vector<1x16x16xf32>
    %42 = vector.shape_cast %41 : vector<1x16x16xf32> to vector<16x16xf32>
    %cst_34 = arith.constant dense<0.000000e+00> : vector<16x16xf32>
    %43 = tpu.matmul %40, %42, %cst_34 {dimension_numbers = #tpu.dot_dimension_numbers<[1], [0], [0], [1], [0, 0, 1, 1], [], []>} : vector<16x16xf32>, vector<16x16xf32>, vector<16x16xf32> -> vector<16x16xf32>
    %44 = arith.addf %37, %43 : vector<16x16xf32>
    %c3 = arith.constant 3 : index
    %c0_35 = arith.constant 0 : index
    %c0_36 = arith.constant 0 : index
    %45 = vector.load %arg7[%c3, %c0_35, %c0_36] : memref<9x16x16xf32, #tpu.memory_space<vmem>>, vector<1x16x16xf32>
    %46 = vector.shape_cast %45 : vector<1x16x16xf32> to vector<16x16xf32>
    %cst_37 = arith.constant dense<0.000000e+00> : vector<16x16xf32>
    %47 = tpu.matmul %46, %22, %cst_37 {dimension_numbers = #tpu.dot_dimension_numbers<[1], [0], [0], [1], [0, 0, 1, 1], [], []>} : vector<16x16xf32>, vector<16x16xf32>, vector<16x16xf32> -> vector<16x16xf32>
    %c3_38 = arith.constant 3 : index
    %c0_39 = arith.constant 0 : index
    %c0_40 = arith.constant 0 : index
    %48 = vector.load %arg8[%c3_38, %c0_39, %c0_40] : memref<9x16x16xf32, #tpu.memory_space<vmem>>, vector<1x16x16xf32>
    %49 = vector.shape_cast %48 : vector<1x16x16xf32> to vector<16x16xf32>
    %cst_41 = arith.constant dense<0.000000e+00> : vector<16x16xf32>
    %50 = tpu.matmul %47, %49, %cst_41 {dimension_numbers = #tpu.dot_dimension_numbers<[1], [0], [0], [1], [0, 0, 1, 1], [], []>} : vector<16x16xf32>, vector<16x16xf32>, vector<16x16xf32> -> vector<16x16xf32>
    %51 = arith.addf %44, %50 : vector<16x16xf32>
    %c4 = arith.constant 4 : index
    %c0_42 = arith.constant 0 : index
    %c0_43 = arith.constant 0 : index
    %52 = vector.load %arg7[%c4, %c0_42, %c0_43] : memref<9x16x16xf32, #tpu.memory_space<vmem>>, vector<1x16x16xf32>
    %53 = vector.shape_cast %52 : vector<1x16x16xf32> to vector<16x16xf32>
    %cst_44 = arith.constant dense<0.000000e+00> : vector<16x16xf32>
    %54 = tpu.matmul %53, %22, %cst_44 {dimension_numbers = #tpu.dot_dimension_numbers<[1], [0], [0], [1], [0, 0, 1, 1], [], []>} : vector<16x16xf32>, vector<16x16xf32>, vector<16x16xf32> -> vector<16x16xf32>
    %c4_45 = arith.constant 4 : index
    %c0_46 = arith.constant 0 : index
    %c0_47 = arith.constant 0 : index
    %55 = vector.load %arg8[%c4_45, %c0_46, %c0_47] : memref<9x16x16xf32, #tpu.memory_space<vmem>>, vector<1x16x16xf32>
    %56 = vector.shape_cast %55 : vector<1x16x16xf32> to vector<16x16xf32>
    %cst_48 = arith.constant dense<0.000000e+00> : vector<16x16xf32>
    %57 = tpu.matmul %54, %56, %cst_48 {dimension_numbers = #tpu.dot_dimension_numbers<[1], [0], [0], [1], [0, 0, 1, 1], [], []>} : vector<16x16xf32>, vector<16x16xf32>, vector<16x16xf32> -> vector<16x16xf32>
    %58 = arith.addf %51, %57 : vector<16x16xf32>
    %c5 = arith.constant 5 : index
    %c0_49 = arith.constant 0 : index
    %c0_50 = arith.constant 0 : index
    %59 = vector.load %arg7[%c5, %c0_49, %c0_50] : memref<9x16x16xf32, #tpu.memory_space<vmem>>, vector<1x16x16xf32>
    %60 = vector.shape_cast %59 : vector<1x16x16xf32> to vector<16x16xf32>
    %cst_51 = arith.constant dense<0.000000e+00> : vector<16x16xf32>
    %61 = tpu.matmul %60, %22, %cst_51 {dimension_numbers = #tpu.dot_dimension_numbers<[1], [0], [0], [1], [0, 0, 1, 1], [], []>} : vector<16x16xf32>, vector<16x16xf32>, vector<16x16xf32> -> vector<16x16xf32>
    %c5_52 = arith.constant 5 : index
    %c0_53 = arith.constant 0 : index
    %c0_54 = arith.constant 0 : index
    %62 = vector.load %arg8[%c5_52, %c0_53, %c0_54] : memref<9x16x16xf32, #tpu.memory_space<vmem>>, vector<1x16x16xf32>
    %63 = vector.shape_cast %62 : vector<1x16x16xf32> to vector<16x16xf32>
    %cst_55 = arith.constant dense<0.000000e+00> : vector<16x16xf32>
    %64 = tpu.matmul %61, %63, %cst_55 {dimension_numbers = #tpu.dot_dimension_numbers<[1], [0], [0], [1], [0, 0, 1, 1], [], []>} : vector<16x16xf32>, vector<16x16xf32>, vector<16x16xf32> -> vector<16x16xf32>
    %65 = arith.addf %58, %64 : vector<16x16xf32>
    %c6 = arith.constant 6 : index
    %c0_56 = arith.constant 0 : index
    %c0_57 = arith.constant 0 : index
    %66 = vector.load %arg7[%c6, %c0_56, %c0_57] : memref<9x16x16xf32, #tpu.memory_space<vmem>>, vector<1x16x16xf32>
    %67 = vector.shape_cast %66 : vector<1x16x16xf32> to vector<16x16xf32>
    %cst_58 = arith.constant dense<0.000000e+00> : vector<16x16xf32>
    %68 = tpu.matmul %67, %22, %cst_58 {dimension_numbers = #tpu.dot_dimension_numbers<[1], [0], [0], [1], [0, 0, 1, 1], [], []>} : vector<16x16xf32>, vector<16x16xf32>, vector<16x16xf32> -> vector<16x16xf32>
    %c6_59 = arith.constant 6 : index
    %c0_60 = arith.constant 0 : index
    %c0_61 = arith.constant 0 : index
    %69 = vector.load %arg8[%c6_59, %c0_60, %c0_61] : memref<9x16x16xf32, #tpu.memory_space<vmem>>, vector<1x16x16xf32>
    %70 = vector.shape_cast %69 : vector<1x16x16xf32> to vector<16x16xf32>
    %cst_62 = arith.constant dense<0.000000e+00> : vector<16x16xf32>
    %71 = tpu.matmul %68, %70, %cst_62 {dimension_numbers = #tpu.dot_dimension_numbers<[1], [0], [0], [1], [0, 0, 1, 1], [], []>} : vector<16x16xf32>, vector<16x16xf32>, vector<16x16xf32> -> vector<16x16xf32>
    %72 = arith.addf %65, %71 : vector<16x16xf32>
    %c7 = arith.constant 7 : index
    %c0_63 = arith.constant 0 : index
    %c0_64 = arith.constant 0 : index
    %73 = vector.load %arg7[%c7, %c0_63, %c0_64] : memref<9x16x16xf32, #tpu.memory_space<vmem>>, vector<1x16x16xf32>
    %74 = vector.shape_cast %73 : vector<1x16x16xf32> to vector<16x16xf32>
    %cst_65 = arith.constant dense<0.000000e+00> : vector<16x16xf32>
    %75 = tpu.matmul %74, %22, %cst_65 {dimension_numbers = #tpu.dot_dimension_numbers<[1], [0], [0], [1], [0, 0, 1, 1], [], []>} : vector<16x16xf32>, vector<16x16xf32>, vector<16x16xf32> -> vector<16x16xf32>
    %c7_66 = arith.constant 7 : index
    %c0_67 = arith.constant 0 : index
    %c0_68 = arith.constant 0 : index
    %76 = vector.load %arg8[%c7_66, %c0_67, %c0_68] : memref<9x16x16xf32, #tpu.memory_space<vmem>>, vector<1x16x16xf32>
    %77 = vector.shape_cast %76 : vector<1x16x16xf32> to vector<16x16xf32>
    %cst_69 = arith.constant dense<0.000000e+00> : vector<16x16xf32>
    %78 = tpu.matmul %75, %77, %cst_69 {dimension_numbers = #tpu.dot_dimension_numbers<[1], [0], [0], [1], [0, 0, 1, 1], [], []>} : vector<16x16xf32>, vector<16x16xf32>, vector<16x16xf32> -> vector<16x16xf32>
    %79 = arith.addf %72, %78 : vector<16x16xf32>
    %c8 = arith.constant 8 : index
    %c0_70 = arith.constant 0 : index
    %c0_71 = arith.constant 0 : index
    %80 = vector.load %arg7[%c8, %c0_70, %c0_71] : memref<9x16x16xf32, #tpu.memory_space<vmem>>, vector<1x16x16xf32>
    %81 = vector.shape_cast %80 : vector<1x16x16xf32> to vector<16x16xf32>
    %cst_72 = arith.constant dense<0.000000e+00> : vector<16x16xf32>
    %82 = tpu.matmul %81, %22, %cst_72 {dimension_numbers = #tpu.dot_dimension_numbers<[1], [0], [0], [1], [0, 0, 1, 1], [], []>} : vector<16x16xf32>, vector<16x16xf32>, vector<16x16xf32> -> vector<16x16xf32>
    %c8_73 = arith.constant 8 : index
    %c0_74 = arith.constant 0 : index
    %c0_75 = arith.constant 0 : index
    %83 = vector.load %arg8[%c8_73, %c0_74, %c0_75] : memref<9x16x16xf32, #tpu.memory_space<vmem>>, vector<1x16x16xf32>
    %84 = vector.shape_cast %83 : vector<1x16x16xf32> to vector<16x16xf32>
    %cst_76 = arith.constant dense<0.000000e+00> : vector<16x16xf32>
    %85 = tpu.matmul %82, %84, %cst_76 {dimension_numbers = #tpu.dot_dimension_numbers<[1], [0], [0], [1], [0, 0, 1, 1], [], []>} : vector<16x16xf32>, vector<16x16xf32>, vector<16x16xf32> -> vector<16x16xf32>
    %86 = arith.addf %79, %85 : vector<16x16xf32>
    %c0_77 = arith.constant 0 : index
    %c0_78 = arith.constant 0 : index
    %87 = vector.load %arg9[%c0_77, %c0_78] : memref<2x16xf32, #tpu.memory_space<vmem>>, vector<2x16xf32>
    %88 = vector.extract_strided_slice %87 {offsets = [0, 0], sizes = [1, 16], strides = [1, 1]} : vector<2x16xf32> to vector<1x16xf32>
    %89 = vector.broadcast %88 : vector<1x16xf32> to vector<16x16xf32>
    %90 = arith.mulf %86, %89 : vector<16x16xf32>
    %91 = vector.extract_strided_slice %87 {offsets = [1, 0], sizes = [1, 16], strides = [1, 1]} : vector<2x16xf32> to vector<1x16xf32>
    %92 = vector.broadcast %91 : vector<1x16xf32> to vector<16x16xf32>
    %93 = arith.addf %90, %92 : vector<16x16xf32>
    %cst_79 = arith.constant 2.000000e-01 : f32
    %94 = vector.broadcast %cst_79 : f32 to vector<16x16xf32>
    %95 = arith.mulf %94, %93 : vector<16x16xf32>
    %96 = arith.maximumf %93, %95 : vector<16x16xf32>
    %cst_80 = arith.constant 0.000000e+00 : f32
    %97 = vector.broadcast %cst_80 : f32 to vector<16x64xf32>
    %c0_81 = arith.constant 0 : index
    %c0_82 = arith.constant 0 : index
    %c0_83 = arith.constant 0 : index
    %98 = vector.load %arg7[%c0_81, %c0_82, %c0_83] : memref<9x16x16xf32, #tpu.memory_space<vmem>>, vector<1x16x16xf32>
    %99 = vector.shape_cast %98 : vector<1x16x16xf32> to vector<16x16xf32>
    %cst_84 = arith.constant dense<0.000000e+00> : vector<16x16xf32>
    %100 = tpu.matmul %99, %96, %cst_84 {dimension_numbers = #tpu.dot_dimension_numbers<[1], [0], [0], [1], [0, 0, 1, 1], [], []>} : vector<16x16xf32>, vector<16x16xf32>, vector<16x16xf32> -> vector<16x16xf32>
    %c0_85 = arith.constant 0 : index
    %c0_86 = arith.constant 0 : index
    %c0_87 = arith.constant 0 : index
    %101 = vector.load %arg10[%c0_85, %c0_86, %c0_87] : memref<9x16x64xf32, #tpu.memory_space<vmem>>, vector<1x16x64xf32>
    %102 = vector.shape_cast %101 : vector<1x16x64xf32> to vector<16x64xf32>
    %cst_88 = arith.constant dense<0.000000e+00> : vector<16x64xf32>
    %103 = tpu.matmul %100, %102, %cst_88 {dimension_numbers = #tpu.dot_dimension_numbers<[1], [0], [0], [1], [0, 0, 1, 1], [], []>} : vector<16x16xf32>, vector<16x64xf32>, vector<16x64xf32> -> vector<16x64xf32>
    %104 = arith.addf %97, %103 : vector<16x64xf32>
    %c1_89 = arith.constant 1 : index
    %c0_90 = arith.constant 0 : index
    %c0_91 = arith.constant 0 : index
    %105 = vector.load %arg7[%c1_89, %c0_90, %c0_91] : memref<9x16x16xf32, #tpu.memory_space<vmem>>, vector<1x16x16xf32>
    %106 = vector.shape_cast %105 : vector<1x16x16xf32> to vector<16x16xf32>
    %cst_92 = arith.constant dense<0.000000e+00> : vector<16x16xf32>
    %107 = tpu.matmul %106, %96, %cst_92 {dimension_numbers = #tpu.dot_dimension_numbers<[1], [0], [0], [1], [0, 0, 1, 1], [], []>} : vector<16x16xf32>, vector<16x16xf32>, vector<16x16xf32> -> vector<16x16xf32>
    %c1_93 = arith.constant 1 : index
    %c0_94 = arith.constant 0 : index
    %c0_95 = arith.constant 0 : index
    %108 = vector.load %arg10[%c1_93, %c0_94, %c0_95] : memref<9x16x64xf32, #tpu.memory_space<vmem>>, vector<1x16x64xf32>
    %109 = vector.shape_cast %108 : vector<1x16x64xf32> to vector<16x64xf32>
    %cst_96 = arith.constant dense<0.000000e+00> : vector<16x64xf32>
    %110 = tpu.matmul %107, %109, %cst_96 {dimension_numbers = #tpu.dot_dimension_numbers<[1], [0], [0], [1], [0, 0, 1, 1], [], []>} : vector<16x16xf32>, vector<16x64xf32>, vector<16x64xf32> -> vector<16x64xf32>
    %111 = arith.addf %104, %110 : vector<16x64xf32>
    %c2_97 = arith.constant 2 : index
    %c0_98 = arith.constant 0 : index
    %c0_99 = arith.constant 0 : index
    %112 = vector.load %arg7[%c2_97, %c0_98, %c0_99] : memref<9x16x16xf32, #tpu.memory_space<vmem>>, vector<1x16x16xf32>
    %113 = vector.shape_cast %112 : vector<1x16x16xf32> to vector<16x16xf32>
    %cst_100 = arith.constant dense<0.000000e+00> : vector<16x16xf32>
    %114 = tpu.matmul %113, %96, %cst_100 {dimension_numbers = #tpu.dot_dimension_numbers<[1], [0], [0], [1], [0, 0, 1, 1], [], []>} : vector<16x16xf32>, vector<16x16xf32>, vector<16x16xf32> -> vector<16x16xf32>
    %c2_101 = arith.constant 2 : index
    %c0_102 = arith.constant 0 : index
    %c0_103 = arith.constant 0 : index
    %115 = vector.load %arg10[%c2_101, %c0_102, %c0_103] : memref<9x16x64xf32, #tpu.memory_space<vmem>>, vector<1x16x64xf32>
    %116 = vector.shape_cast %115 : vector<1x16x64xf32> to vector<16x64xf32>
    %cst_104 = arith.constant dense<0.000000e+00> : vector<16x64xf32>
    %117 = tpu.matmul %114, %116, %cst_104 {dimension_numbers = #tpu.dot_dimension_numbers<[1], [0], [0], [1], [0, 0, 1, 1], [], []>} : vector<16x16xf32>, vector<16x64xf32>, vector<16x64xf32> -> vector<16x64xf32>
    %118 = arith.addf %111, %117 : vector<16x64xf32>
    %c3_105 = arith.constant 3 : index
    %c0_106 = arith.constant 0 : index
    %c0_107 = arith.constant 0 : index
    %119 = vector.load %arg7[%c3_105, %c0_106, %c0_107] : memref<9x16x16xf32, #tpu.memory_space<vmem>>, vector<1x16x16xf32>
    %120 = vector.shape_cast %119 : vector<1x16x16xf32> to vector<16x16xf32>
    %cst_108 = arith.constant dense<0.000000e+00> : vector<16x16xf32>
    %121 = tpu.matmul %120, %96, %cst_108 {dimension_numbers = #tpu.dot_dimension_numbers<[1], [0], [0], [1], [0, 0, 1, 1], [], []>} : vector<16x16xf32>, vector<16x16xf32>, vector<16x16xf32> -> vector<16x16xf32>
    %c3_109 = arith.constant 3 : index
    %c0_110 = arith.constant 0 : index
    %c0_111 = arith.constant 0 : index
    %122 = vector.load %arg10[%c3_109, %c0_110, %c0_111] : memref<9x16x64xf32, #tpu.memory_space<vmem>>, vector<1x16x64xf32>
    %123 = vector.shape_cast %122 : vector<1x16x64xf32> to vector<16x64xf32>
    %cst_112 = arith.constant dense<0.000000e+00> : vector<16x64xf32>
    %124 = tpu.matmul %121, %123, %cst_112 {dimension_numbers = #tpu.dot_dimension_numbers<[1], [0], [0], [1], [0, 0, 1, 1], [], []>} : vector<16x16xf32>, vector<16x64xf32>, vector<16x64xf32> -> vector<16x64xf32>
    %125 = arith.addf %118, %124 : vector<16x64xf32>
    %c4_113 = arith.constant 4 : index
    %c0_114 = arith.constant 0 : index
    %c0_115 = arith.constant 0 : index
    %126 = vector.load %arg7[%c4_113, %c0_114, %c0_115] : memref<9x16x16xf32, #tpu.memory_space<vmem>>, vector<1x16x16xf32>
    %127 = vector.shape_cast %126 : vector<1x16x16xf32> to vector<16x16xf32>
    %cst_116 = arith.constant dense<0.000000e+00> : vector<16x16xf32>
    %128 = tpu.matmul %127, %96, %cst_116 {dimension_numbers = #tpu.dot_dimension_numbers<[1], [0], [0], [1], [0, 0, 1, 1], [], []>} : vector<16x16xf32>, vector<16x16xf32>, vector<16x16xf32> -> vector<16x16xf32>
    %c4_117 = arith.constant 4 : index
    %c0_118 = arith.constant 0 : index
    %c0_119 = arith.constant 0 : index
    %129 = vector.load %arg10[%c4_117, %c0_118, %c0_119] : memref<9x16x64xf32, #tpu.memory_space<vmem>>, vector<1x16x64xf32>
    %130 = vector.shape_cast %129 : vector<1x16x64xf32> to vector<16x64xf32>
    %cst_120 = arith.constant dense<0.000000e+00> : vector<16x64xf32>
    %131 = tpu.matmul %128, %130, %cst_120 {dimension_numbers = #tpu.dot_dimension_numbers<[1], [0], [0], [1], [0, 0, 1, 1], [], []>} : vector<16x16xf32>, vector<16x64xf32>, vector<16x64xf32> -> vector<16x64xf32>
    %132 = arith.addf %125, %131 : vector<16x64xf32>
    %c5_121 = arith.constant 5 : index
    %c0_122 = arith.constant 0 : index
    %c0_123 = arith.constant 0 : index
    %133 = vector.load %arg7[%c5_121, %c0_122, %c0_123] : memref<9x16x16xf32, #tpu.memory_space<vmem>>, vector<1x16x16xf32>
    %134 = vector.shape_cast %133 : vector<1x16x16xf32> to vector<16x16xf32>
    %cst_124 = arith.constant dense<0.000000e+00> : vector<16x16xf32>
    %135 = tpu.matmul %134, %96, %cst_124 {dimension_numbers = #tpu.dot_dimension_numbers<[1], [0], [0], [1], [0, 0, 1, 1], [], []>} : vector<16x16xf32>, vector<16x16xf32>, vector<16x16xf32> -> vector<16x16xf32>
    %c5_125 = arith.constant 5 : index
    %c0_126 = arith.constant 0 : index
    %c0_127 = arith.constant 0 : index
    %136 = vector.load %arg10[%c5_125, %c0_126, %c0_127] : memref<9x16x64xf32, #tpu.memory_space<vmem>>, vector<1x16x64xf32>
    %137 = vector.shape_cast %136 : vector<1x16x64xf32> to vector<16x64xf32>
    %cst_128 = arith.constant dense<0.000000e+00> : vector<16x64xf32>
    %138 = tpu.matmul %135, %137, %cst_128 {dimension_numbers = #tpu.dot_dimension_numbers<[1], [0], [0], [1], [0, 0, 1, 1], [], []>} : vector<16x16xf32>, vector<16x64xf32>, vector<16x64xf32> -> vector<16x64xf32>
    %139 = arith.addf %132, %138 : vector<16x64xf32>
    %c6_129 = arith.constant 6 : index
    %c0_130 = arith.constant 0 : index
    %c0_131 = arith.constant 0 : index
    %140 = vector.load %arg7[%c6_129, %c0_130, %c0_131] : memref<9x16x16xf32, #tpu.memory_space<vmem>>, vector<1x16x16xf32>
    %141 = vector.shape_cast %140 : vector<1x16x16xf32> to vector<16x16xf32>
    %cst_132 = arith.constant dense<0.000000e+00> : vector<16x16xf32>
    %142 = tpu.matmul %141, %96, %cst_132 {dimension_numbers = #tpu.dot_dimension_numbers<[1], [0], [0], [1], [0, 0, 1, 1], [], []>} : vector<16x16xf32>, vector<16x16xf32>, vector<16x16xf32> -> vector<16x16xf32>
    %c6_133 = arith.constant 6 : index
    %c0_134 = arith.constant 0 : index
    %c0_135 = arith.constant 0 : index
    %143 = vector.load %arg10[%c6_133, %c0_134, %c0_135] : memref<9x16x64xf32, #tpu.memory_space<vmem>>, vector<1x16x64xf32>
    %144 = vector.shape_cast %143 : vector<1x16x64xf32> to vector<16x64xf32>
    %cst_136 = arith.constant dense<0.000000e+00> : vector<16x64xf32>
    %145 = tpu.matmul %142, %144, %cst_136 {dimension_numbers = #tpu.dot_dimension_numbers<[1], [0], [0], [1], [0, 0, 1, 1], [], []>} : vector<16x16xf32>, vector<16x64xf32>, vector<16x64xf32> -> vector<16x64xf32>
    %146 = arith.addf %139, %145 : vector<16x64xf32>
    %c7_137 = arith.constant 7 : index
    %c0_138 = arith.constant 0 : index
    %c0_139 = arith.constant 0 : index
    %147 = vector.load %arg7[%c7_137, %c0_138, %c0_139] : memref<9x16x16xf32, #tpu.memory_space<vmem>>, vector<1x16x16xf32>
    %148 = vector.shape_cast %147 : vector<1x16x16xf32> to vector<16x16xf32>
    %cst_140 = arith.constant dense<0.000000e+00> : vector<16x16xf32>
    %149 = tpu.matmul %148, %96, %cst_140 {dimension_numbers = #tpu.dot_dimension_numbers<[1], [0], [0], [1], [0, 0, 1, 1], [], []>} : vector<16x16xf32>, vector<16x16xf32>, vector<16x16xf32> -> vector<16x16xf32>
    %c7_141 = arith.constant 7 : index
    %c0_142 = arith.constant 0 : index
    %c0_143 = arith.constant 0 : index
    %150 = vector.load %arg10[%c7_141, %c0_142, %c0_143] : memref<9x16x64xf32, #tpu.memory_space<vmem>>, vector<1x16x64xf32>
    %151 = vector.shape_cast %150 : vector<1x16x64xf32> to vector<16x64xf32>
    %cst_144 = arith.constant dense<0.000000e+00> : vector<16x64xf32>
    %152 = tpu.matmul %149, %151, %cst_144 {dimension_numbers = #tpu.dot_dimension_numbers<[1], [0], [0], [1], [0, 0, 1, 1], [], []>} : vector<16x16xf32>, vector<16x64xf32>, vector<16x64xf32> -> vector<16x64xf32>
    %153 = arith.addf %146, %152 : vector<16x64xf32>
    %c8_145 = arith.constant 8 : index
    %c0_146 = arith.constant 0 : index
    %c0_147 = arith.constant 0 : index
    %154 = vector.load %arg7[%c8_145, %c0_146, %c0_147] : memref<9x16x16xf32, #tpu.memory_space<vmem>>, vector<1x16x16xf32>
    %155 = vector.shape_cast %154 : vector<1x16x16xf32> to vector<16x16xf32>
    %cst_148 = arith.constant dense<0.000000e+00> : vector<16x16xf32>
    %156 = tpu.matmul %155, %96, %cst_148 {dimension_numbers = #tpu.dot_dimension_numbers<[1], [0], [0], [1], [0, 0, 1, 1], [], []>} : vector<16x16xf32>, vector<16x16xf32>, vector<16x16xf32> -> vector<16x16xf32>
    %c8_149 = arith.constant 8 : index
    %c0_150 = arith.constant 0 : index
    %c0_151 = arith.constant 0 : index
    %157 = vector.load %arg10[%c8_149, %c0_150, %c0_151] : memref<9x16x64xf32, #tpu.memory_space<vmem>>, vector<1x16x64xf32>
    %158 = vector.shape_cast %157 : vector<1x16x64xf32> to vector<16x64xf32>
    %cst_152 = arith.constant dense<0.000000e+00> : vector<16x64xf32>
    %159 = tpu.matmul %156, %158, %cst_152 {dimension_numbers = #tpu.dot_dimension_numbers<[1], [0], [0], [1], [0, 0, 1, 1], [], []>} : vector<16x16xf32>, vector<16x64xf32>, vector<16x64xf32> -> vector<16x64xf32>
    %160 = arith.addf %153, %159 : vector<16x64xf32>
    %c0_153 = arith.constant 0 : index
    %c0_154 = arith.constant 0 : index
    %161 = vector.load %arg11[%c0_153, %c0_154] : memref<2x64xf32, #tpu.memory_space<vmem>>, vector<2x64xf32>
    %162 = vector.extract_strided_slice %161 {offsets = [0, 0], sizes = [1, 64], strides = [1, 1]} : vector<2x64xf32> to vector<1x64xf32>
    %163 = vector.broadcast %162 : vector<1x64xf32> to vector<16x64xf32>
    %164 = arith.mulf %160, %163 : vector<16x64xf32>
    %165 = vector.extract_strided_slice %161 {offsets = [1, 0], sizes = [1, 64], strides = [1, 1]} : vector<2x64xf32> to vector<1x64xf32>
    %166 = vector.broadcast %165 : vector<1x64xf32> to vector<16x64xf32>
    %167 = arith.addf %164, %166 : vector<16x64xf32>
    %168 = arith.addf %10, %167 : vector<16x64xf32>
    %cst_155 = arith.constant 2.000000e-01 : f32
    %169 = vector.broadcast %cst_155 : f32 to vector<16x64xf32>
    %170 = arith.mulf %169, %168 : vector<16x64xf32>
    %171 = arith.maximumf %168, %170 : vector<16x64xf32>
    %c0_156 = arith.constant 0 : index
    %c0_157 = arith.constant 0 : index
    %172 = vector.load %arg13[%c0_156, %c0_157] : memref<64x64xf32, #tpu.memory_space<vmem>>, vector<64x64xf32>
    %cst_158 = arith.constant dense<0.000000e+00> : vector<16x64xf32>
    %173 = tpu.matmul %171, %172, %cst_158 {dimension_numbers = #tpu.dot_dimension_numbers<[1], [0], [0], [1], [0, 0, 1, 1], [], []>} : vector<16x64xf32>, vector<64x64xf32>, vector<16x64xf32> -> vector<16x64xf32>
    %c0_159 = arith.constant 0 : index
    %c0_160 = arith.constant 0 : index
    %c0_161 = arith.constant 0 : index
    %174 = vector.load %arg2[%c0_159, %c0_160, %c0_161] : memref<1x1x16xf32, #tpu.memory_space<vmem>>, vector<1x1x16xf32>
    %175 = vector.shape_cast %174 : vector<1x1x16xf32> to vector<1x16xf32>
    %c0_162 = arith.constant 0 : index
    %c0_163 = arith.constant 0 : index
    %176 = vector.load %arg12[%c0_162, %c0_163] : memref<16x64xf32, #tpu.memory_space<vmem>>, vector<16x64xf32>
    %cst_164 = arith.constant dense<0.000000e+00> : vector<1x64xf32>
    %177 = tpu.matmul %175, %176, %cst_164 {dimension_numbers = #tpu.dot_dimension_numbers<[1], [0], [0], [1], [0, 0, 1, 1], [], []>} : vector<1x16xf32>, vector<16x64xf32>, vector<1x64xf32> -> vector<1x64xf32>
    %178 = vector.broadcast %177 : vector<1x64xf32> to vector<16x64xf32>
    %179 = arith.addf %173, %178 : vector<16x64xf32>
    %c0_165 = arith.constant 0 : index
    %c0_166 = arith.constant 0 : index
    %180 = vector.load %arg14[%c0_165, %c0_166] : memref<2x64xf32, #tpu.memory_space<vmem>>, vector<2x64xf32>
    %181 = vector.extract_strided_slice %180 {offsets = [0, 0], sizes = [1, 64], strides = [1, 1]} : vector<2x64xf32> to vector<1x64xf32>
    %182 = vector.broadcast %181 : vector<1x64xf32> to vector<16x64xf32>
    %183 = arith.mulf %179, %182 : vector<16x64xf32>
    %184 = vector.extract_strided_slice %180 {offsets = [1, 0], sizes = [1, 64], strides = [1, 1]} : vector<2x64xf32> to vector<1x64xf32>
    %185 = vector.broadcast %184 : vector<1x64xf32> to vector<16x64xf32>
    %186 = arith.addf %183, %185 : vector<16x64xf32>
    %cst_167 = arith.constant 2.000000e-01 : f32
    %187 = vector.broadcast %cst_167 : f32 to vector<16x64xf32>
    %188 = arith.mulf %187, %186 : vector<16x64xf32>
    %189 = arith.maximumf %186, %188 : vector<16x64xf32>
    %c0_168 = arith.constant 0 : index
    %c0_169 = arith.constant 0 : index
    %190 = vector.load %arg15[%c0_168, %c0_169] : memref<16x64xf32, #tpu.memory_space<vmem>>, vector<16x64xf32>
    %c0_170 = arith.constant 0 : index
    %c0_171 = arith.constant 0 : index
    %191 = vector.load %arg16[%c0_170, %c0_171] : memref<1x1xf32, #tpu.memory_space<vmem>>, vector<1x1xf32>
    %192 = arith.mulf %189, %190 : vector<16x64xf32>
    %cst_172 = arith.constant dense<0.000000e+00> : vector<16xf32>
    %193 = vector.multi_reduction <add>, %192, %cst_172 [1] : vector<16x64xf32> to vector<16xf32>
    %194 = vector.shape_cast %193 : vector<16xf32> to vector<16x1xf32>
    %cst_173 = arith.constant dense<0.000000e+00> : vector<1xf32>
    %195 = vector.multi_reduction <add>, %194, %cst_173 [0] : vector<16x1xf32> to vector<1xf32>
    %196 = vector.shape_cast %195 : vector<1xf32> to vector<1x1xf32>
    %197 = arith.addf %196, %191 : vector<1x1xf32>
    %198 = arith.negf %197 : vector<1x1xf32>
    %199 = math.exp %198 : vector<1x1xf32>
    %cst_174 = arith.constant 1.000000e+00 : f32
    %200 = vector.broadcast %cst_174 : f32 to vector<1x1xf32>
    %201 = arith.addf %200, %199 : vector<1x1xf32>
    %202 = arith.divf %200, %201 : vector<1x1xf32>
    %c0_175 = arith.constant 0 : index
    %c0_176 = arith.constant 0 : index
    %c0_177 = arith.constant 0 : index
    %203 = vector.load %arg17[%c0_175, %c0_176, %c0_177] : memref<1x1x1xf32, #tpu.memory_space<vmem>>, vector<1x1x1xf32>
    %204 = vector.shape_cast %203 : vector<1x1x1xf32> to vector<1x1xf32>
    %205 = vector.shape_cast %202 : vector<1x1xf32> to vector<1x1x1xf32>
    tpu.vector_store %arg17[%c0_175, %c0_176, %c0_177], %205 {strides = array<i32>} : memref<1x1x1xf32, #tpu.memory_space<vmem>>, vector<1x1x1xf32>,
    %206 = arith.mulf %171, %190 : vector<16x64xf32>
    %cst_178 = arith.constant dense<0.000000e+00> : vector<16xf32>
    %207 = vector.multi_reduction <add>, %206, %cst_178 [1] : vector<16x64xf32> to vector<16xf32>
    %208 = vector.shape_cast %207 : vector<16xf32> to vector<16x1xf32>
    %cst_179 = arith.constant dense<0.000000e+00> : vector<1xf32>
    %209 = vector.multi_reduction <add>, %208, %cst_179 [0] : vector<16x1xf32> to vector<1xf32>
    %210 = vector.shape_cast %209 : vector<1xf32> to vector<1x1xf32>
    %211 = arith.addf %210, %191 : vector<1x1xf32>
    %212 = arith.negf %211 : vector<1x1xf32>
    %213 = math.exp %212 : vector<1x1xf32>
    %cst_180 = arith.constant 1.000000e+00 : f32
    %214 = vector.broadcast %cst_180 : f32 to vector<1x1xf32>
    %215 = arith.addf %214, %213 : vector<1x1xf32>
    %216 = arith.divf %214, %215 : vector<1x1xf32>
    %c0_181 = arith.constant 0 : index
    %c0_182 = arith.constant 0 : index
    %c0_183 = arith.constant 0 : index
    %217 = vector.load %arg18[%c0_181, %c0_182, %c0_183] : memref<1x1x1xf32, #tpu.memory_space<vmem>>, vector<1x1x1xf32>
    %218 = vector.shape_cast %217 : vector<1x1x1xf32> to vector<1x1xf32>
    %219 = vector.shape_cast %216 : vector<1x1xf32> to vector<1x1x1xf32>
    tpu.vector_store %arg18[%c0_181, %c0_182, %c0_183], %219 {strides = array<i32>} : memref<1x1x1xf32, #tpu.memory_space<vmem>>, vector<1x1x1xf32>,
    return
  }
  func.func @transform_0(%arg0: i32) -> (i32, i32, i32) {
    %c0_i32 = arith.constant 0 : i32
    %c0_i32_0 = arith.constant 0 : i32
    %c0_i32_1 = arith.constant 0 : i32
    return %arg0, %c0_i32, %c0_i32_0 : i32, i32, i32
  }
  func.func @transform_1(%arg0: i32) -> (i32, i32, i32) {
    %c0_i32 = arith.constant 0 : i32
    %c0_i32_0 = arith.constant 0 : i32
    %c0_i32_1 = arith.constant 0 : i32
    return %arg0, %c0_i32, %c0_i32_0 : i32, i32, i32
  }
  func.func @transform_2(%arg0: i32) -> (i32, i32) {
    %c0_i32 = arith.constant 0 : i32
    %c0_i32_0 = arith.constant 0 : i32
    %c0_i32_1 = arith.constant 0 : i32
    return %c0_i32, %c0_i32_0 : i32, i32
  }
  func.func @transform_3(%arg0: i32) -> (i32, i32) {
    %c0_i32 = arith.constant 0 : i32
    %c0_i32_0 = arith.constant 0 : i32
    %c0_i32_1 = arith.constant 0 : i32
    return %c0_i32, %c0_i32_0 : i32, i32
  }
  func.func @transform_4(%arg0: i32) -> (i32, i32) {
    %c0_i32 = arith.constant 0 : i32
    %c0_i32_0 = arith.constant 0 : i32
    %c0_i32_1 = arith.constant 0 : i32
    return %c0_i32, %c0_i32_0 : i32, i32
  }
  func.func @transform_5(%arg0: i32) -> (i32, i32) {
    %c0_i32 = arith.constant 0 : i32
    %c0_i32_0 = arith.constant 0 : i32
    %c0_i32_1 = arith.constant 0 : i32
    return %c0_i32, %c0_i32_0 : i32, i32
  }
  func.func @transform_6(%arg0: i32) -> (i32, i32, i32) {
    %c0_i32 = arith.constant 0 : i32
    %c0_i32_0 = arith.constant 0 : i32
    %c0_i32_1 = arith.constant 0 : i32
    %c0_i32_2 = arith.constant 0 : i32
    return %c0_i32, %c0_i32_0, %c0_i32_1 : i32, i32, i32
  }
  func.func @transform_7(%arg0: i32) -> (i32, i32, i32) {
    %c0_i32 = arith.constant 0 : i32
    %c0_i32_0 = arith.constant 0 : i32
    %c0_i32_1 = arith.constant 0 : i32
    %c0_i32_2 = arith.constant 0 : i32
    return %c0_i32, %c0_i32_0, %c0_i32_1 : i32, i32, i32
  }
  func.func @transform_8(%arg0: i32) -> (i32, i32) {
    %c0_i32 = arith.constant 0 : i32
    %c0_i32_0 = arith.constant 0 : i32
    %c0_i32_1 = arith.constant 0 : i32
    return %c0_i32, %c0_i32_0 : i32, i32
  }
  func.func @transform_9(%arg0: i32) -> (i32, i32, i32) {
    %c0_i32 = arith.constant 0 : i32
    %c0_i32_0 = arith.constant 0 : i32
    %c0_i32_1 = arith.constant 0 : i32
    %c0_i32_2 = arith.constant 0 : i32
    return %c0_i32, %c0_i32_0, %c0_i32_1 : i32, i32, i32
  }
  func.func @transform_10(%arg0: i32) -> (i32, i32) {
    %c0_i32 = arith.constant 0 : i32
    %c0_i32_0 = arith.constant 0 : i32
    %c0_i32_1 = arith.constant 0 : i32
    return %c0_i32, %c0_i32_0 : i32, i32
  }
  func.func @transform_11(%arg0: i32) -> (i32, i32) {
    %c0_i32 = arith.constant 0 : i32
    %c0_i32_0 = arith.constant 0 : i32
    %c0_i32_1 = arith.constant 0 : i32
    return %c0_i32, %c0_i32_0 : i32, i32
  }
  func.func @transform_12(%arg0: i32) -> (i32, i32) {
    %c0_i32 = arith.constant 0 : i32
    %c0_i32_0 = arith.constant 0 : i32
    %c0_i32_1 = arith.constant 0 : i32
    return %c0_i32, %c0_i32_0 : i32, i32
  }
  func.func @transform_13(%arg0: i32) -> (i32, i32) {
    %c0_i32 = arith.constant 0 : i32
    %c0_i32_0 = arith.constant 0 : i32
    %c0_i32_1 = arith.constant 0 : i32
    return %c0_i32, %c0_i32_0 : i32, i32
  }
  func.func @transform_14(%arg0: i32) -> (i32, i32) {
    %c0_i32 = arith.constant 0 : i32
    %c0_i32_0 = arith.constant 0 : i32
    %c0_i32_1 = arith.constant 0 : i32
    return %c0_i32, %c0_i32_0 : i32, i32
  }
  func.func @transform_15(%arg0: i32) -> (i32, i32) {
    %c0_i32 = arith.constant 0 : i32
    %c0_i32_0 = arith.constant 0 : i32
    %c0_i32_1 = arith.constant 0 : i32
    return %c0_i32, %c0_i32_0 : i32, i32
  }
  func.func @transform_16(%arg0: i32) -> (i32, i32, i32) {
    %c0_i32 = arith.constant 0 : i32
    %c0_i32_0 = arith.constant 0 : i32
    %c0_i32_1 = arith.constant 0 : i32
    return %arg0, %c0_i32, %c0_i32_0 : i32, i32, i32
  }
  func.func @transform_17(%arg0: i32) -> (i32, i32, i32) {
    %c0_i32 = arith.constant 0 : i32
    %c0_i32_0 = arith.constant 0 : i32
    %c0_i32_1 = arith.constant 0 : i32
    return %arg0, %c0_i32, %c0_i32_0 : i32, i32, i32
  }
}

</mosaic_0001>

<bundles_post_ra>
// kernel: dnet_baw_forward.5
= control target key start
LH: loop header
LB: loop body
LE: loop exit
PB: predicated region body
PF: predicated region fallthrough
CT: control target
= control target key end

     0   :  { %s1999_s12 = smov 0   ;;  %s2316_s0 = inlined_call_operand.vmem [shape: bf16[8192,16], index: 0, kind: input, shape index: {}]   ;;  %s2317_s1 = inlined_call_operand.vmem [shape: bf16[16,128], index: 1, kind: input, shape index: {}]   ;;  %s2318_s2 = inlined_call_operand.vmem [shape: f32[2,128], index: 2, kind: input, shape index: {}]   ;;  %s2319_s3 = inlined_call_operand.vmem [shape: bf16[8192,128], index: 3, kind: output, shape index: {}]  }
   0x1 LB: > { %s1434_s13 = sadd.s32 4294967295, %s1977_s12   ;;  %p1438_p0 = scmp.ge.s32.totalorder %s1977_s12, 1  ;;  %s1977_s12 = sphi %s1999_s12, %s13_s12  }
   0x2   : > { %p138_p1 = scmp.lt.s32.totalorder %s1977_s12, 17 }
   0x4   : > { %p139_p2 = pnand %p1438_p0, %p138_p1 }
   0x5   : > { %v1938_v0 = vld [vmem:[%s2317_s1] sm:$0xff] (!%p139_p2)   ;;  %s1439_s16 = sshll.u32 (!%p139_p2), %s1434_s13, 6  ;;  %vm407_vm0 = vcmask (!%p139_p2), 130048   ;;  %v794_v33 = vlaneseq (!%p139_p2) }
   0x6   : > { %142 = sbr.rel (%p139_p2) target bundleno = 309 (0x135), region = 32  ;;  %p163_p3 = scmp.lt.s32.totalorder (!%p139_p2), %s1439_s16, 1023  ;;  %1862 = vmatprep.subr.bf16.mxu0 (!%p139_p2), %v1938_v0  ;;  %1928 = vmatprep.subr.bf16.mxu1 (!%p139_p2), %v1938_v0  ;;  %v793_v36 = vld [vmem:[%s2318_s2] sm:$0x3] (!%p139_p2) }
   0x7   : > { %1863 = vmatpush3.bf16.msra.mxu0 (!%p139_p2), %v1938_v0  ;;  %1929 = vmatpush3.bf16.msra.mxu1 (!%p139_p2), %v1938_v0  ;;  %v795_v34 = vshrl.u32 (!%p139_p2), %v794_v33, 7 }
   0x9   : > { %v796_v35 = vsub.s32 (!%p139_p2), 0, %v795_v34  ;;  %v864_v37 = vsub.s32 (!%p139_p2), 1, %v795_v34 }
   0xb   : > { %v2087_v38 = vrot.slane (!%p139_p2), %v793_v36, %v796_v35  ;;  %v2089_v39 = vrot.slane (!%p139_p2), %v793_v36, %v864_v37 }
   0xd   : > { %s2321_s16 = smov (!%p163_p3, %s1439_s16), 1023 }
   0xe   : > { %s1440_s17 = sshll.u32 %s2321_s16, 2 }
   0xf   : > { %s2018_s20 = scalar_lea.vmem %s2316_s0, %s1440_s17  ;;  %s2113_s25 = scalar_lea.vmem %s2319_s3, %s1440_s17 }
  0x10   : > { %v1939_v1 = vld [vmem:[%s2018_s20] sm:$0xff]   ;;  %v1941_v3 = vld [vmem:[%s2018_s20 + $0x8] sm:$0xff]   ;;  %v1943_v5 = vld [vmem:[%s2018_s20 + $0x10] sm:$0xff]  }
  0x11   : > { %v1940_v2 = vld [vmem:[%s2018_s20 + $0x80] sm:$0xff]   ;;  %1864 = vmatprep.mubr.msk.bf16.mxu0 %vm407_vm0, %v1939_v1  ;;  %v1942_v4 = vld [vmem:[%s2018_s20 + $0x88] sm:$0xff]   ;;  %v1944_v6 = vld [vmem:[%s2018_s20 + $0x90] sm:$0xff]  }
  0x12   : > { %1896 = vmatprep.mubr.msk.bf16.mxu1 %vm407_vm0, %v1940_v2  ;;  %1865 = vmatmul.mubr.msk.bf16.vlgmr.msra.gmra.mrb[0].mxu0 %vm407_vm0, %v1941_v3  ;;  %v1945_v7 = vld [vmem:[%s2018_s20 + $0x18] sm:$0xff]   ;;  %v1947_v9 = vld [vmem:[%s2018_s20 + $0x20] sm:$0xff]   ;;  %v1949_v11 = vld [vmem:[%s2018_s20 + $0x28] sm:$0xff]  }
  0x13   : > { %1897 = vmatmul.mubr.msk.bf16.vlgmr.msra.gmra.mrb[0].mxu1 %vm407_vm0, %v1942_v4  ;;  %1868 = vmatprep.mubr.msk.bf16.mxu0 %vm407_vm0, %v1943_v5  ;;  %v1946_v8 = vld [vmem:[%s2018_s20 + $0x98] sm:$0xff]   ;;  %v1948_v10 = vld [vmem:[%s2018_s20 + $0xa0] sm:$0xff]   ;;  %v1950_v12 = vld [vmem:[%s2018_s20 + $0xa8] sm:$0xff]  }
  0x14   : > { %1900 = vmatprep.mubr.msk.bf16.mxu1 %vm407_vm0, %v1944_v6  ;;  %v1951_v13 = vld [vmem:[%s2018_s20 + $0x30] sm:$0xff]   ;;  %v1953_v15 = vld [vmem:[%s2018_s20 + $0x38] sm:$0xff]   ;;  %v1955_v17 = vld [vmem:[%s2018_s20 + $0x40] sm:$0xff]  }
  0x15   : > { %v1952_v14 = vld [vmem:[%s2018_s20 + $0xb0] sm:$0xff]   ;;  %v1954_v16 = vld [vmem:[%s2018_s20 + $0xb8] sm:$0xff]   ;;  %v1956_v18 = vld [vmem:[%s2018_s20 + $0xc0] sm:$0xff]  }
  0x16   : > { %v1957_v19 = vld [vmem:[%s2018_s20 + $0x48] sm:$0xff]   ;;  %v1959_v21 = vld [vmem:[%s2018_s20 + $0x50] sm:$0xff]   ;;  %v1961_v23 = vld [vmem:[%s2018_s20 + $0x58] sm:$0xff]  }
  0x17   : > { %v1958_v20 = vld [vmem:[%s2018_s20 + $0xc8] sm:$0xff]   ;;  %v1960_v22 = vld [vmem:[%s2018_s20 + $0xd0] sm:$0xff]   ;;  %v1962_v24 = vld [vmem:[%s2018_s20 + $0xd8] sm:$0xff]  }
  0x18   : > { %v1963_v25 = vld [vmem:[%s2018_s20 + $0x60] sm:$0xff]   ;;  %v1965_v27 = vld [vmem:[%s2018_s20 + $0x68] sm:$0xff]   ;;  %v1967_v29 = vld [vmem:[%s2018_s20 + $0x70] sm:$0xff]  }
  0x19   : > { %v1964_v26 = vld [vmem:[%s2018_s20 + $0xe0] sm:$0xff]   ;;  %v1966_v28 = vld [vmem:[%s2018_s20 + $0xe8] sm:$0xff]   ;;  %v1968_v30 = vld [vmem:[%s2018_s20 + $0xf0] sm:$0xff]  }
  0x1a   : > { %1869 = vmatmul.mubr.msk.bf16.gmra.mrb[4].mxu0 %vm407_vm0, %v1945_v7  ;;  %v1969_v31 = vld [vmem:[%s2018_s20 + $0x78] sm:$0xff]  }
  0x1b   : > { %1901 = vmatmul.mubr.msk.bf16.gmra.mrb[4].mxu1 %vm407_vm0, %v1946_v8  ;;  %1872 = vmatprep.mubr.msk.bf16.mxu0 %vm407_vm0, %v1947_v9  ;;  %v1970_v32 = vld [vmem:[%s2018_s20 + $0xf8] sm:$0xff]  }
  0x1c   : > { %1904 = vmatprep.mubr.msk.bf16.mxu1 %vm407_vm0, %v1948_v10 }
  0x22   : > { %1873 = vmatmul.mubr.msk.bf16.gmra.mrb[8].mxu0 %vm407_vm0, %v1949_v11 }
  0x23   : > { %1905 = vmatmul.mubr.msk.bf16.gmra.mrb[8].mxu1 %vm407_vm0, %v1950_v12  ;;  %1876 = vmatprep.mubr.msk.bf16.mxu0 %vm407_vm0, %v1951_v13 }
  0x24   : > { %1908 = vmatprep.mubr.msk.bf16.mxu1 %vm407_vm0, %v1952_v14 }
  0x2a   : > { %1877 = vmatmul.mubr.msk.bf16.gmra.mrb[12].mxu0 %vm407_vm0, %v1953_v15 }
  0x2b   : > { %1909 = vmatmul.mubr.msk.bf16.gmra.mrb[12].mxu1 %vm407_vm0, %v1954_v16  ;;  %1880 = vmatprep.mubr.msk.bf16.mxu0 %vm407_vm0, %v1955_v17 }
  0x2c   : > { %1912 = vmatprep.mubr.msk.bf16.mxu1 %vm407_vm0, %v1956_v18 }
  0x32   : > { %1881 = vmatmul.mubr.msk.bf16.gmra.mrb[16].mxu0 %vm407_vm0, %v1957_v19 }
  0x33   : > { %1913 = vmatmul.mubr.msk.bf16.gmra.mrb[16].mxu1 %vm407_vm0, %v1958_v20  ;;  %1884 = vmatprep.mubr.msk.bf16.mxu0 %vm407_vm0, %v1959_v21 }
  0x34   : > { %1916 = vmatprep.mubr.msk.bf16.mxu1 %vm407_vm0, %v1960_v22 }
  0x3a   : > { %1885 = vmatmul.mubr.msk.bf16.gmra.mrb[20].mxu0 %vm407_vm0, %v1961_v23 }
  0x3b   : > { %1917 = vmatmul.mubr.msk.bf16.gmra.mrb[20].mxu1 %vm407_vm0, %v1962_v24  ;;  %1888 = vmatprep.mubr.msk.bf16.mxu0 %vm407_vm0, %v1963_v25 }
  0x3c   : > { %1920 = vmatprep.mubr.msk.bf16.mxu1 %vm407_vm0, %v1964_v26 }
  0x42   : > { %1889 = vmatmul.mubr.msk.bf16.gmra.mrb[24].mxu0 %vm407_vm0, %v1965_v27 }
  0x43   : > { %1921 = vmatmul.mubr.msk.bf16.gmra.mrb[24].mxu1 %vm407_vm0, %v1966_v28  ;;  %1892 = vmatprep.mubr.msk.bf16.mxu0 %vm407_vm0, %v1967_v29 }
  0x44   : > { %1924 = vmatprep.mubr.msk.bf16.mxu1 %vm407_vm0, %v1968_v30 }
  0x4a   : > { %1893 = vmatmul.mubr.msk.bf16.gmra.mrb[28].mxu0 %vm407_vm0, %v1969_v31 }
  0x4b   : > { %1925 = vmatmul.mubr.msk.bf16.gmra.mrb[28].mxu1 %vm407_vm0, %v1970_v32 }
  0xe5   : > { %v1866_v40 = vpop.f32.mrb[0].mxu0 }
  0xe6   : > { %v800_v41 = vmul.f32 %v1866_v40, %v2087_v38  ;;  %v1898_v42 = vpop.f32.mrb[0].mxu1  ;;  %v538_v43 = vpop.f32.mrb[1].mxu0 }
  0xe7   : > { %v832_v44 = vmul.f32 %v1898_v42, %v2087_v38  ;;  %v798_v45 = vmul.f32 %v2087_v38, %v538_v43  ;;  %v666_v46 = vpop.f32.mrb[1].mxu1  ;;  %v1867_v47 = vpop.f32.mrb[2].mxu0 }
  0xe8   : > { %v868_v48 = vadd.f32 %v2089_v39, %v800_v41  ;;  %v830_v49 = vmul.f32 %v2087_v38, %v666_v46  ;;  %v801_v50 = vmul.f32 %v1867_v47, %v2087_v38  ;;  %v1899_v51 = vpop.f32.mrb[2].mxu1  ;;  %v541_v52 = vpop.f32.mrb[3].mxu0 }
  0xe9   : > { %v900_v53 = vadd.f32 %v2089_v39, %v832_v44  ;;  %v866_v54 = vadd.f32 %v2089_v39, %v798_v45  ;;  %v833_v55 = vmul.f32 %v1899_v51, %v2087_v38  ;;  %v799_v56 = vmul.f32 %v2087_v38, %v541_v52  ;;  %v669_v57 = vpop.f32.mrb[3].mxu1 }
  0xea   : > { %v932_v58 = vmul.f32 0.2, %v868_v48  ;;  %v898_v59 = vadd.f32 %v2089_v39, %v830_v49  ;;  %v869_v60 = vadd.f32 %v2089_v39, %v801_v50  ;;  %v831_v61 = vmul.f32 %v2087_v38, %v669_v57 }
  0xeb   : > { %v964_v62 = vmul.f32 0.2, %v900_v53  ;;  %v930_v63 = vmul.f32 0.2, %v866_v54  ;;  %v901_v0 = vadd.f32 %v2089_v39, %v833_v55  ;;  %v867_v1 = vadd.f32 %v2089_v39, %v799_v56 }
  0xec   : > { %v996_v2 = vmax.f32 %v868_v48, %v932_v58  ;;  %v962_v3 = vmul.f32 0.2, %v898_v59  ;;  %v933_v4 = vmul.f32 0.2, %v869_v60  ;;  %v899_v5 = vadd.f32 %v2089_v39, %v831_v61 }
  0xed   : > { %v1028_v6 = vmax.f32 %v900_v53, %v964_v62  ;;  %v994_v7 = vmax.f32 %v866_v54, %v930_v63  ;;  %v965_v8 = vmul.f32 0.2, %v901_v0  ;;  %v931_v9 = vmul.f32 0.2, %v867_v1  ;;  %v1870_v10 = vpop.f32.mrb[4].mxu0 }
  0xee   : > { %v1026_v11 = vmax.f32 %v898_v59, %v962_v3  ;;  %v997_v12 = vmax.f32 %v869_v60, %v933_v4  ;;  %v963_v13 = vmul.f32 0.2, %v899_v5  ;;  %v804_v14 = vmul.f32 %v1870_v10, %v2087_v38  ;;  %v1902_v15 = vpop.f32.mrb[4].mxu1  ;;  %v554_v16 = vpop.f32.mrb[5].mxu0 }
  0xef   : > { %v1029_v17 = vmax.f32 %v901_v0, %v965_v8  ;;  %v995_v18 = vmax.f32 %v867_v1, %v931_v9  ;;  %v836_v19 = vmul.f32 %v1902_v15, %v2087_v38  ;;  %v802_v20 = vmul.f32 %v2087_v38, %v554_v16  ;;  %v682_v21 = vpop.f32.mrb[5].mxu1  ;;  %v1871_v22 = vpop.f32.mrb[6].mxu0 }
  0xf0   : > { %v1646_v23 = vpack.c.bf16 %v997_v12, %v996_v2  ;;  %v1027_v24 = vmax.f32 %v899_v5, %v963_v13  ;;  %v872_v25 = vadd.f32 %v2089_v39, %v804_v14  ;;  %v834_v26 = vmul.f32 %v2087_v38, %v682_v21  ;;  %v1903_v27 = vpop.f32.mrb[6].mxu1  ;;  %v557_v28 = vpop.f32.mrb[7].mxu0 }
  0xf1   : > { %v1726_v29 = vpack.c.bf16 %v1029_v17, %v1028_v6  ;;  %v1641_v30 = vpack.c.bf16 %v995_v18, %v994_v7  ;;  %v904_v31 = vadd.f32 %v2089_v39, %v836_v19  ;;  %v870_v32 = vadd.f32 %v2089_v39, %v802_v20  ;;  %v685_v33 = vpop.f32.mrb[7].mxu1 }
  0xf2   : > { %1798 = vst [vmem:[%s2113_s25 + $0x8] sm:$0xff] %v1646_v23   ;;  %v1721_v34 = vpack.c.bf16 %v1027_v24, %v1026_v11  ;;  %v936_v35 = vmul.f32 0.2, %v872_v25  ;;  %v902_v36 = vadd.f32 %v2089_v39, %v834_v26  ;;  %v805_v37 = vmul.f32 %v1871_v22, %v2087_v38 }
  0xf3   : > { %1814 = vst [vmem:[%s2113_s25 + $0x88] sm:$0xff] %v1726_v29   ;;  %1642 = vst [vmem:[%s2113_s25] sm:$0xff] %v1641_v30   ;;  %v968_v40 = vmul.f32 0.2, %v904_v31  ;;  %v934_v41 = vmul.f32 0.2, %v870_v32  ;;  %v837_v42 = vmul.f32 %v1903_v27, %v2087_v38  ;;  %v803_v43 = vmul.f32 %v2087_v38, %v557_v28 }
  0xf4   : > { %1813 = vst [vmem:[%s2113_s25 + $0x80] sm:$0xff] %v1721_v34   ;;  %v1000_v44 = vmax.f32 %v872_v25, %v936_v35  ;;  %v966_v45 = vmul.f32 0.2, %v902_v36  ;;  %v873_v46 = vadd.f32 %v2089_v39, %v805_v37  ;;  %v835_v47 = vmul.f32 %v2087_v38, %v685_v33 }
  0xf5   : > { %v1032_v48 = vmax.f32 %v904_v31, %v968_v40  ;;  %v998_v49 = vmax.f32 %v870_v32, %v934_v41  ;;  %v905_v50 = vadd.f32 %v2089_v39, %v837_v42  ;;  %v871_v51 = vadd.f32 %v2089_v39, %v803_v43  ;;  %v1874_v52 = vpop.f32.mrb[8].mxu0 }
  0xf6   : > { %v1030_v53 = vmax.f32 %v902_v36, %v966_v45  ;;  %v937_v54 = vmul.f32 0.2, %v873_v46  ;;  %v903_v55 = vadd.f32 %v2089_v39, %v835_v47  ;;  %v808_v56 = vmul.f32 %v1874_v52, %v2087_v38  ;;  %v1906_v57 = vpop.f32.mrb[8].mxu1  ;;  %v570_v58 = vpop.f32.mrb[9].mxu0 }
  0xf7   : > { %v969_v59 = vmul.f32 0.2, %v905_v50  ;;  %v935_v60 = vmul.f32 0.2, %v871_v51  ;;  %v840_v61 = vmul.f32 %v1906_v57, %v2087_v38  ;;  %v806_v62 = vmul.f32 %v2087_v38, %v570_v58  ;;  %v698_v63 = vpop.f32.mrb[9].mxu1  ;;  %v1875_v0 = vpop.f32.mrb[10].mxu0 }
  0xf8   : > { %v1001_v1 = vmax.f32 %v873_v46, %v937_v54  ;;  %v967_v2 = vmul.f32 0.2, %v903_v55  ;;  %v876_v3 = vadd.f32 %v2089_v39, %v808_v56  ;;  %v838_v4 = vmul.f32 %v2087_v38, %v698_v63  ;;  %v1907_v5 = vpop.f32.mrb[10].mxu1  ;;  %v573_v6 = vpop.f32.mrb[11].mxu0 }
  0xf9   : > { %v1033_v7 = vmax.f32 %v905_v50, %v969_v59  ;;  %v999_v8 = vmax.f32 %v871_v51, %v935_v60  ;;  %v908_v9 = vadd.f32 %v2089_v39, %v840_v61  ;;  %v874_v10 = vadd.f32 %v2089_v39, %v806_v62  ;;  %v701_v11 = vpop.f32.mrb[11].mxu1 }
  0xfa   : > { %v1656_v12 = vpack.c.bf16 %v1001_v1, %v1000_v44  ;;  %v1031_v13 = vmax.f32 %v903_v55, %v967_v2  ;;  %v940_v14 = vmul.f32 0.2, %v876_v3  ;;  %v906_v15 = vadd.f32 %v2089_v39, %v838_v4 }
  0xfb   : > { %v1736_v16 = vpack.c.bf16 %v1033_v7, %v1032_v48  ;;  %v1651_v17 = vpack.c.bf16 %v999_v8, %v998_v49  ;;  %v972_v18 = vmul.f32 0.2, %v908_v9  ;;  %v938_v20 = vmul.f32 0.2, %v874_v10 }
  0xfc   : > { %1800 = vst [vmem:[%s2113_s25 + $0x18] sm:$0xff] %v1656_v12   ;;  %v1731_v19 = vpack.c.bf16 %v1031_v13, %v1030_v53  ;;  %v809_v21 = vmul.f32 %v1875_v0, %v2087_v38  ;;  %v1004_v22 = vmax.f32 %v876_v3, %v940_v14  ;;  %v970_v23 = vmul.f32 0.2, %v906_v15 }
  0xfd   : > { %1816 = vst [vmem:[%s2113_s25 + $0x98] sm:$0xff] %v1736_v16   ;;  %1799 = vst [vmem:[%s2113_s25 + $0x10] sm:$0xff] %v1651_v17   ;;  %v841_v24 = vmul.f32 %v1907_v5, %v2087_v38  ;;  %v807_v25 = vmul.f32 %v2087_v38, %v573_v6  ;;  %v1878_v26 = vpop.f32.mrb[12].mxu0  ;;  %v1036_v27 = vmax.f32 %v908_v9, %v972_v18 }
  0xfe   : > { %1815 = vst [vmem:[%s2113_s25 + $0x90] sm:$0xff] %v1731_v19   ;;  %v877_v28 = vadd.f32 %v2089_v39, %v809_v21  ;;  %v839_v29 = vmul.f32 %v2087_v38, %v701_v11  ;;  %v812_v30 = vmul.f32 %v1878_v26, %v2087_v38  ;;  %v1910_v31 = vpop.f32.mrb[12].mxu1  ;;  %v586_v32 = vpop.f32.mrb[13].mxu0  ;;  %v1002_v56 = vmax.f32 %v874_v10, %v938_v20 }
  0xff   : > { %v909_v33 = vadd.f32 %v2089_v39, %v841_v24  ;;  %v875_v34 = vadd.f32 %v2089_v39, %v807_v25  ;;  %v844_v35 = vmul.f32 %v1910_v31, %v2087_v38  ;;  %v810_v36 = vmul.f32 %v2087_v38, %v586_v32  ;;  %v714_v37 = vpop.f32.mrb[13].mxu1  ;;  %v1879_v40 = vpop.f32.mrb[14].mxu0 }
 0x100   : > { %v941_v41 = vmul.f32 0.2, %v877_v28  ;;  %v907_v42 = vadd.f32 %v2089_v39, %v839_v29  ;;  %v2158_v43 = vadd.f32 %v2089_v39, %v812_v30  ;;  %v842_v44 = vmul.f32 %v2087_v38, %v714_v37  ;;  %v1911_v45 = vpop.f32.mrb[14].mxu1  ;;  %v589_v46 = vpop.f32.mrb[15].mxu0 }
 0x101   : > { %v973_v47 = vmul.f32 0.2, %v909_v33  ;;  %v939_v48 = vmul.f32 0.2, %v875_v34  ;;  %v2162_v49 = vadd.f32 %v2089_v39, %v844_v35  ;;  %v2165_v50 = vadd.f32 %v2089_v39, %v810_v36  ;;  %v717_v51 = vpop.f32.mrb[15].mxu1 }
 0x102   : > { %v1005_v52 = vmax.f32 %v877_v28, %v941_v41  ;;  %v971_v53 = vmul.f32 0.2, %v907_v42  ;;  %v944_v54 = vmul.f32 0.2, %v2158_v43  ;;  %v2169_v55 = vadd.f32 %v2089_v39, %v842_v44 }
 0x103   : > { %v1037_v57 = vmax.f32 %v909_v33, %v973_v47  ;;  %v1003_v58 = vmax.f32 %v875_v34, %v939_v48  ;;  %v976_v59 = vmul.f32 0.2, %v2162_v49  ;;  %v1034_v60 = vmax.f32 %v906_v15, %v970_v23 }
 0x104   : > { %v1666_v61 = vpack.c.bf16 %v1005_v52, %v1004_v22  ;;  %v1035_v62 = vmax.f32 %v907_v42, %v971_v53  ;;  %v942_v63 = vmul.f32 0.2, %v2165_v50  ;;  %v1008_v2 = vmax.f32 %v2158_v43, %v944_v54 }
 0x105   : > { %v1746_v0 = vpack.c.bf16 %v1037_v57, %v1036_v27  ;;  %v1661_v1 = vpack.c.bf16 %v1003_v58, %v1002_v56  ;;  %v974_v3 = vmul.f32 0.2, %v2169_v55  ;;  %v1882_v4 = vpop.f32.mrb[16].mxu0  ;;  %v1040_v6 = vmax.f32 %v2162_v49, %v976_v59 }
 0x106   : > { %1802 = vst [vmem:[%s2113_s25 + $0x28] sm:$0xff] %v1666_v61   ;;  %v1741_v5 = vpack.c.bf16 %v1035_v62, %v1034_v60  ;;  %v813_v7 = vmul.f32 %v1879_v40, %v2087_v38  ;;  %v845_v8 = vmul.f32 %v1911_v45, %v2087_v38  ;;  %v1914_v9 = vpop.f32.mrb[16].mxu1  ;;  %v602_v10 = vpop.f32.mrb[17].mxu0  ;;  %v811_v11 = vmul.f32 %v2087_v38, %v589_v46 }
 0x107   : > { %1818 = vst [vmem:[%s2113_s25 + $0xa8] sm:$0xff] %v1746_v0   ;;  %1801 = vst [vmem:[%s2113_s25 + $0x20] sm:$0xff] %v1661_v1   ;;  %v843_v12 = vmul.f32 %v2087_v38, %v717_v51  ;;  %v816_v13 = vmul.f32 %v1882_v4, %v2087_v38  ;;  %v848_v14 = vmul.f32 %v1914_v9, %v2087_v38  ;;  %v730_v15 = vpop.f32.mrb[17].mxu1  ;;  %v1883_v16 = vpop.f32.mrb[18].mxu0 }
 0x108   : > { %1817 = vst [vmem:[%s2113_s25 + $0xa0] sm:$0xff] %v1741_v5   ;;  %v881_v17 = vadd.f32 %v2089_v39, %v813_v7  ;;  %v913_v18 = vadd.f32 %v2089_v39, %v845_v8  ;;  %v814_v19 = vmul.f32 %v2087_v38, %v602_v10  ;;  %v846_v20 = vmul.f32 %v2087_v38, %v730_v15  ;;  %v1915_v21 = vpop.f32.mrb[18].mxu1  ;;  %v605_v22 = vpop.f32.mrb[19].mxu0 }
 0x109   : > { %v879_v23 = vadd.f32 %v2089_v39, %v811_v11  ;;  %v911_v24 = vadd.f32 %v2089_v39, %v843_v12  ;;  %v884_v25 = vadd.f32 %v2089_v39, %v816_v13  ;;  %v2194_v26 = vadd.f32 %v2089_v39, %v848_v14  ;;  %v733_v27 = vpop.f32.mrb[19].mxu1 }
 0x10a   : > { %v945_v28 = vmul.f32 0.2, %v881_v17  ;;  %v977_v29 = vmul.f32 0.2, %v913_v18  ;;  %v2197_v30 = vadd.f32 %v2089_v39, %v814_v19  ;;  %v2200_v31 = vadd.f32 %v2089_v39, %v846_v20 }
 0x10b   : > { %v943_v32 = vmul.f32 0.2, %v879_v23  ;;  %v975_v33 = vmul.f32 0.2, %v911_v24  ;;  %v948_v34 = vmul.f32 0.2, %v884_v25  ;;  %v817_v35 = vmul.f32 %v1883_v16, %v2087_v38 }
 0x10c   : > { %v1006_v36 = vmax.f32 %v2165_v50, %v942_v63  ;;  %v1009_v37 = vmax.f32 %v881_v17, %v945_v28  ;;  %v1041_v40 = vmax.f32 %v913_v18, %v977_v29  ;;  %v2205_v41 = vmul.f32 0.2, %v2194_v26 }
 0x10d   : > { %v1038_v42 = vmax.f32 %v2169_v55, %v974_v3  ;;  %v1007_v43 = vmax.f32 %v879_v23, %v943_v32  ;;  %v1039_v44 = vmax.f32 %v911_v24, %v975_v33  ;;  %v946_v45 = vmul.f32 0.2, %v2197_v30  ;;  %v1886_v46 = vpop.f32.mrb[20].mxu0 }
 0x10e   : > { %v1676_v47 = vpack.c.bf16 %v1009_v37, %v1008_v2  ;;  %v1756_v48 = vpack.c.bf16 %v1041_v40, %v1040_v6  ;;  %v1012_v49 = vmax.f32 %v884_v25, %v948_v34  ;;  %v978_v51 = vmul.f32 0.2, %v2200_v31  ;;  %v1918_v50 = vpop.f32.mrb[20].mxu1  ;;  %v618_v52 = vpop.f32.mrb[21].mxu0 }
 0x10f   : > { %v1671_v53 = vpack.c.bf16 %v1007_v43, %v1006_v36  ;;  %v1751_v54 = vpack.c.bf16 %v1039_v44, %v1038_v42  ;;  %v1044_v55 = vmax.f32 %v2194_v26, %v2205_v41  ;;  %v885_v56 = vadd.f32 %v2089_v39, %v817_v35  ;;  %v746_v57 = vpop.f32.mrb[21].mxu1  ;;  %v1887_v58 = vpop.f32.mrb[22].mxu0 }
 0x110   : > { %1804 = vst [vmem:[%s2113_s25 + $0x38] sm:$0xff] %v1676_v47   ;;  %1820 = vst [vmem:[%s2113_s25 + $0xb8] sm:$0xff] %v1756_v48   ;;  %v849_v59 = vmul.f32 %v1915_v21, %v2087_v38  ;;  %v815_v60 = vmul.f32 %v2087_v38, %v605_v22  ;;  %v847_v61 = vmul.f32 %v2087_v38, %v733_v27  ;;  %v1919_v63 = vpop.f32.mrb[22].mxu1  ;;  %v621_v0 = vpop.f32.mrb[23].mxu0 }
 0x111   : > { %v820_v62 = vmul.f32 %v1886_v46, %v2087_v38  ;;  %1803 = vst [vmem:[%s2113_s25 + $0x30] sm:$0xff] %v1671_v53   ;;  %1819 = vst [vmem:[%s2113_s25 + $0xb0] sm:$0xff] %v1751_v54   ;;  %v949_v1 = vmul.f32 0.2, %v885_v56  ;;  %v852_v2 = vmul.f32 %v1918_v50, %v2087_v38  ;;  %v818_v3 = vmul.f32 %v2087_v38, %v618_v52  ;;  %v749_v5 = vpop.f32.mrb[23].mxu1 }
 0x112   : > { %v850_v4 = vmul.f32 %v2087_v38, %v746_v57  ;;  %v917_v6 = vadd.f32 %v2089_v39, %v849_v59  ;;  %v883_v7 = vadd.f32 %v2089_v39, %v815_v60  ;;  %v915_v8 = vadd.f32 %v2089_v39, %v847_v61 }
 0x113   : > { %v888_v9 = vadd.f32 %v2089_v39, %v820_v62  ;;  %v1013_v10 = vmax.f32 %v885_v56, %v949_v1  ;;  %v2229_v11 = vadd.f32 %v2089_v39, %v852_v2  ;;  %v2232_v12 = vadd.f32 %v2089_v39, %v818_v3 }
 0x114   : > { %v2235_v13 = vadd.f32 %v2089_v39, %v850_v4  ;;  %v981_v14 = vmul.f32 0.2, %v917_v6  ;;  %v947_v15 = vmul.f32 0.2, %v883_v7  ;;  %v979_v16 = vmul.f32 0.2, %v915_v8 }
 0x115   : > { %v821_v17 = vmul.f32 %v1887_v58, %v2087_v38  ;;  %v1010_v18 = vmax.f32 %v2197_v30, %v946_v45  ;;  %v1686_v19 = vpack.c.bf16 %v1013_v10, %v1012_v49  ;;  %v952_v20 = vmul.f32 0.2, %v888_v9  ;;  %v1890_v26 = vpop.f32.mrb[24].mxu0 }
 0x116   : > { %v984_v21 = vmul.f32 0.2, %v2229_v11  ;;  %v1042_v22 = vmax.f32 %v2200_v31, %v978_v51  ;;  %v1045_v23 = vmax.f32 %v917_v6, %v981_v14  ;;  %v1011_v24 = vmax.f32 %v883_v7, %v947_v15  ;;  %v1922_v27 = vpop.f32.mrb[24].mxu1  ;;  %v634_v33 = vpop.f32.mrb[25].mxu0 }
 0x117   : > { %v1043_v25 = vmax.f32 %v915_v8, %v979_v16  ;;  %1806 = vst [vmem:[%s2113_s25 + $0x48] sm:$0xff] %v1686_v19   ;;  %v1016_v28 = vmax.f32 %v888_v9, %v952_v20  ;;  %v950_v29 = vmul.f32 0.2, %v2232_v12  ;;  %v982_v32 = vmul.f32 0.2, %v2235_v13  ;;  %v762_v34 = vpop.f32.mrb[25].mxu1 }
 0x118   : > { %v889_v30 = vadd.f32 %v2089_v39, %v821_v17  ;;  %v1766_v35 = vpack.c.bf16 %v1045_v23, %v1044_v55  ;;  %v1681_v31 = vpack.c.bf16 %v1011_v24, %v1010_v18  ;;  %v1048_v37 = vmax.f32 %v2229_v11, %v984_v21  ;;  %v1891_v40 = vpop.f32.mrb[26].mxu0  ;;  %v1923_v41 = vpop.f32.mrb[26].mxu1 }
 0x119   : > { %v1761_v36 = vpack.c.bf16 %v1043_v25, %v1042_v22  ;;  %v853_v43 = vmul.f32 %v1919_v63, %v2087_v38  ;;  %v819_v44 = vmul.f32 %v2087_v38, %v621_v0  ;;  %v851_v45 = vmul.f32 %v2087_v38, %v749_v5  ;;  %v637_v46 = vpop.f32.mrb[27].mxu0  ;;  %v765_v47 = vpop.f32.mrb[27].mxu1 }
 0x11a   : > { %v953_v42 = vmul.f32 0.2, %v889_v30  ;;  %1822 = vst [vmem:[%s2113_s25 + $0xc8] sm:$0xff] %v1766_v35   ;;  %1805 = vst [vmem:[%s2113_s25 + $0x40] sm:$0xff] %v1681_v31   ;;  %v824_v48 = vmul.f32 %v1890_v26, %v2087_v38  ;;  %v856_v49 = vmul.f32 %v1922_v27, %v2087_v38  ;;  %v822_v51 = vmul.f32 %v2087_v38, %v634_v33 }
 0x11b   : > { %1821 = vst [vmem:[%s2113_s25 + $0xc0] sm:$0xff] %v1761_v36   ;;  %v854_v50 = vmul.f32 %v2087_v38, %v762_v34  ;;  %v921_v53 = vadd.f32 %v2089_v39, %v853_v43  ;;  %v887_v54 = vadd.f32 %v2089_v39, %v819_v44  ;;  %v919_v55 = vadd.f32 %v2089_v39, %v851_v45 }
 0x11c   : > { %v1017_v52 = vmax.f32 %v889_v30, %v953_v42  ;;  %v892_v56 = vadd.f32 %v2089_v39, %v824_v48  ;;  %v2261_v57 = vadd.f32 %v2089_v39, %v856_v49  ;;  %v2264_v58 = vadd.f32 %v2089_v39, %v822_v51 }
 0x11d   : > { %v2267_v59 = vadd.f32 %v2089_v39, %v854_v50  ;;  %v985_v61 = vmul.f32 0.2, %v921_v53  ;;  %v951_v62 = vmul.f32 0.2, %v887_v54  ;;  %v983_v63 = vmul.f32 0.2, %v919_v55 }
 0x11e   : > { %v1696_v60 = vpack.c.bf16 %v1017_v52, %v1016_v28  ;;  %v1014_v0 = vmax.f32 %v2232_v12, %v950_v29  ;;  %v1046_v1 = vmax.f32 %v2235_v13, %v982_v32  ;;  %v956_v2 = vmul.f32 0.2, %v892_v56  ;;  %v1894_v8 = vpop.f32.mrb[28].mxu0  ;;  %v1926_v9 = vpop.f32.mrb[28].mxu1 }
 0x11f   : > { %v825_v3 = vmul.f32 %v1891_v40, %v2087_v38  ;;  %v1049_v4 = vmax.f32 %v921_v53, %v985_v61  ;;  %v1015_v5 = vmax.f32 %v887_v54, %v951_v62  ;;  %v1047_v6 = vmax.f32 %v919_v55, %v983_v63  ;;  %v650_v13 = vpop.f32.mrb[29].mxu0  ;;  %v778_v14 = vpop.f32.mrb[29].mxu1 }
 0x120   : > { %1808 = vst [vmem:[%s2113_s25 + $0x58] sm:$0xff] %v1696_v60   ;;  %v988_v7 = vmul.f32 0.2, %v2261_v57  ;;  %v954_v10 = vmul.f32 0.2, %v2264_v58  ;;  %v1020_v18 = vmax.f32 %v892_v56, %v956_v2  ;;  %v1895_v19 = vpop.f32.mrb[30].mxu0  ;;  %v857_v22 = vmul.f32 %v1923_v41, %v2087_v38 }
 0x121   : > { %v986_v11 = vmul.f32 0.2, %v2267_v59  ;;  %v893_v12 = vadd.f32 %v2089_v39, %v825_v3  ;;  %v1776_v15 = vpack.c.bf16 %v1049_v4, %v1048_v37  ;;  %v1691_v16 = vpack.c.bf16 %v1015_v5, %v1014_v0  ;;  %v1927_v20 = vpop.f32.mrb[30].mxu1  ;;  %v653_v25 = vpop.f32.mrb[31].mxu0 }
 0x122   : > { %v1771_v17 = vpack.c.bf16 %v1047_v6, %v1046_v1  ;;  %v823_v23 = vmul.f32 %v2087_v38, %v637_v46  ;;  %v855_v24 = vmul.f32 %v2087_v38, %v765_v47  ;;  %v781_v26 = vpop.f32.mrb[31].mxu1  ;;  %v828_v27 = vmul.f32 %v1894_v8, %v2087_v38 }
 0x123   : > { %v957_v21 = vmul.f32 0.2, %v893_v12  ;;  %1824 = vst [vmem:[%s2113_s25 + $0xd8] sm:$0xff] %v1776_v15   ;;  %1807 = vst [vmem:[%s2113_s25 + $0x50] sm:$0xff] %v1691_v16   ;;  %v860_v28 = vmul.f32 %v1926_v9, %v2087_v38  ;;  %v826_v29 = vmul.f32 %v2087_v38, %v650_v13  ;;  %v858_v32 = vmul.f32 %v2087_v38, %v778_v14 }
 0x124   : > { %1823 = vst [vmem:[%s2113_s25 + $0xd0] sm:$0xff] %v1771_v17   ;;  %v925_v33 = vadd.f32 %v2089_v39, %v857_v22  ;;  %v891_v34 = vadd.f32 %v2089_v39, %v823_v23  ;;  %v923_v35 = vadd.f32 %v2089_v39, %v855_v24  ;;  %v1052_v31 = vmax.f32 %v2261_v57, %v988_v7 }
 0x125   : > { %v1021_v30 = vmax.f32 %v893_v12, %v957_v21  ;;  %v1018_v36 = vmax.f32 %v2264_v58, %v954_v10  ;;  %v1050_v37 = vmax.f32 %v2267_v59, %v986_v11  ;;  %v896_v40 = vadd.f32 %v2089_v39, %v828_v27 }
 0x126   : > { %v989_v42 = vmul.f32 0.2, %v925_v33  ;;  %v955_v43 = vmul.f32 0.2, %v891_v34  ;;  %v987_v44 = vmul.f32 0.2, %v923_v35  ;;  %v928_v45 = vadd.f32 %v2089_v39, %v860_v28 }
 0x127   : > { %v1706_v41 = vpack.c.bf16 %v1021_v30, %v1020_v18  ;;  %v894_v46 = vadd.f32 %v2089_v39, %v826_v29  ;;  %v926_v47 = vadd.f32 %v2089_v39, %v858_v32  ;;  %v829_v48 = vmul.f32 %v1895_v19, %v2087_v38 }
 0x128   : > { %v1053_v49 = vmax.f32 %v925_v33, %v989_v42  ;;  %v1019_v51 = vmax.f32 %v891_v34, %v955_v43  ;;  %v1051_v50 = vmax.f32 %v923_v35, %v987_v44  ;;  %v960_v52 = vmul.f32 0.2, %v896_v40 }
 0x129   : > { %1810 = vst [vmem:[%s2113_s25 + $0x68] sm:$0xff] %v1706_v41   ;;  %v897_v53 = vadd.f32 %v2089_v39, %v829_v48  ;;  %v861_v58 = vmul.f32 %v1927_v20, %v2087_v38  ;;  %v827_v59 = vmul.f32 %v2087_v38, %v653_v25  ;;  %v859_v60 = vmul.f32 %v2087_v38, %v781_v26 }
 0x12a   : > { %v1786_v54 = vpack.c.bf16 %v1053_v49, %v1052_v31  ;;  %v1701_v55 = vpack.c.bf16 %v1019_v51, %v1018_v36  ;;  %v1781_v56 = vpack.c.bf16 %v1051_v50, %v1050_v37  ;;  %v1024_v61 = vmax.f32 %v896_v40, %v960_v52 }
 0x12b   : > { %v961_v57 = vmul.f32 0.2, %v897_v53  ;;  %v992_v62 = vmul.f32 0.2, %v928_v45  ;;  %v958_v63 = vmul.f32 0.2, %v894_v46  ;;  %v929_v2 = vadd.f32 %v2089_v39, %v861_v58 }
 0x12c   : > { %1826 = vst [vmem:[%s2113_s25 + $0xe8] sm:$0xff] %v1786_v54   ;;  %1809 = vst [vmem:[%s2113_s25 + $0x60] sm:$0xff] %v1701_v55   ;;  %v990_v0 = vmul.f32 0.2, %v926_v47  ;;  %v895_v3 = vadd.f32 %v2089_v39, %v827_v59  ;;  %v927_v4 = vadd.f32 %v2089_v39, %v859_v60 }
 0x12d   : > { %1825 = vst [vmem:[%s2113_s25 + $0xe0] sm:$0xff] %v1781_v56   ;;  %v1025_v1 = vmax.f32 %v897_v53, %v961_v57  ;;  %v993_v38 = vmul.f32 0.2, %v929_v2  ;;  %v1056_v8 = vmax.f32 %v928_v45, %v992_v62  ;;  %v1022_v9 = vmax.f32 %v894_v46, %v958_v63 }
 0x12e   : > { %v959_v6 = vmul.f32 0.2, %v895_v3  ;;  %v991_v7 = vmul.f32 0.2, %v927_v4  ;;  %v1054_v10 = vmax.f32 %v926_v47, %v990_v0 }
 0x12f   : > { %v1716_v5 = vpack.c.bf16 %v1025_v1, %v1024_v61  ;;  %v1057_v11 = vmax.f32 %v929_v2, %v993_v38 }
 0x130   : > { %v1023_v12 = vmax.f32 %v895_v3, %v959_v6  ;;  %v1055_v13 = vmax.f32 %v927_v4, %v991_v7 }
 0x131   : > { %1812 = vst [vmem:[%s2113_s25 + $0x78] sm:$0xff] %v1716_v5   ;;  %v1796_v14 = vpack.c.bf16 %v1057_v11, %v1056_v8 }
 0x132   : > { %v1711_v15 = vpack.c.bf16 %v1023_v12, %v1022_v9  ;;  %v1791_v16 = vpack.c.bf16 %v1055_v13, %v1054_v10 }
 0x133   : > { %1828 = vst [vmem:[%s2113_s25 + $0xf8] sm:$0xff] %v1796_v14  }
 0x134   : > { %1811 = vst [vmem:[%s2113_s25 + $0x70] sm:$0xff] %v1711_v15   ;;  %1827 = vst [vmem:[%s2113_s25 + $0xf0] sm:$0xff] %v1791_v16  }
 0x135 PF: > { %s13_s12 = sadd.s32 1, %s1977_s12  }
 0x136   : > { %p10_p4 = scmp.ge.s32.totalorder %s13_s12, 18  }
 0x138   :  { %12 = sbr.rel (!%p10_p4) target bundleno = 1 (0x1), region = 62 }

// kernel: dnet_baw_forward.6
= control target key start
LH: loop header
LB: loop body
LE: loop exit
PB: predicated region body
PF: predicated region fallthrough
CT: control target
= control target key end

     0   :  { %s2007_s12 = smov 0   ;;  %s2294_s0 = inlined_call_operand.vmem [shape: bf16[2048,128], index: 0, kind: input, shape index: {}]   ;;  %s2295_s1 = inlined_call_operand.vmem [shape: bf16[128,128], index: 1, kind: input, shape index: {}]   ;;  %s2296_s2 = inlined_call_operand.vmem [shape: f32[2,128], index: 2, kind: input, shape index: {}]   ;;  %s2297_s3 = inlined_call_operand.vmem [shape: bf16[2048,128], index: 3, kind: output, shape index: {}]  }
   0x1 LB: > { %s1425_s13 = sadd.s32 4294967295, %s1985_s12   ;;  %p1429_p0 = scmp.ge.s32.totalorder %s1985_s12, 1  ;;  %s1985_s12 = sphi %s2007_s12, %s13_s12  }
   0x2   : > { %p138_p1 = scmp.lt.s32.totalorder %s1985_s12, 5 }
   0x4   : > { %p139_p2 = pnand %p1429_p0, %p138_p1 }
   0x5   : > { %v1939_v0 = vld [vmem:[%s2295_s1] sm:$0xff] (!%p139_p2)   ;;  %s1430_s16 = sshll.u32 (!%p139_p2), %s1425_s13, 6  ;;  %v1940_v1 = vld [vmem:[%s2295_s1 + $0x8] sm:$0xff] (!%p139_p2)   ;;  %v1941_v2 = vld [vmem:[%s2295_s1 + $0x10] sm:$0xff] (!%p139_p2)   ;;  %v785_v40 = vlaneseq (!%p139_p2) }
   0x6   : > { %142 = sbr.rel (%p139_p2) target bundleno = 329 (0x149), region = 32  ;;  %p163_p3 = scmp.lt.s32.totalorder (!%p139_p2), %s1430_s16, 255  ;;  %1835 = vmatprep.subr.bf16.mxu0 (!%p139_p2), %v1939_v0  ;;  %1915 = vmatprep.subr.bf16.mxu1 (!%p139_p2), %v1939_v0  ;;  %v1942_v3 = vld [vmem:[%s2295_s1 + $0x18] sm:$0xff] (!%p139_p2)   ;;  %v1943_v6 = vld [vmem:[%s2295_s1 + $0x20] sm:$0xff] (!%p139_p2)   ;;  %v1944_v7 = vld [vmem:[%s2295_s1 + $0x28] sm:$0xff] (!%p139_p2)  }
   0x7   : > { %1836 = vmatpush3.bf16.msra.mxu0 (!%p139_p2), %v1939_v0  ;;  %1923 = vmatpush3.bf16.msra.mxu1 (!%p139_p2), %v1939_v0  ;;  %v1945_v8 = vld [vmem:[%s2295_s1 + $0x30] sm:$0xff] (!%p139_p2)   ;;  %v1946_v9 = vld [vmem:[%s2295_s1 + $0x38] sm:$0xff] (!%p139_p2)   ;;  %v786_v41 = vshrl.u32 (!%p139_p2), %v785_v40, 7  ;;  %v784_v43 = vld [vmem:[%s2296_s2] sm:$0x3] (!%p139_p2) }
   0x8   : > { %1837 = vmatprep.subr.bf16.mxu0 (!%p139_p2), %v1940_v1  ;;  %1916 = vmatprep.subr.bf16.mxu1 (!%p139_p2), %v1940_v1 }
   0x9   : > { %v787_v42 = vsub.s32 (!%p139_p2), 0, %v786_v41  ;;  %v855_v44 = vsub.s32 (!%p139_p2), 1, %v786_v41 }
   0xb   : > { %1838 = vmatpush3.bf16.msra.mxu0 (!%p139_p2), %v1940_v1  ;;  %1924 = vmatpush3.bf16.msra.mxu1 (!%p139_p2), %v1940_v1  ;;  %v2084_v45 = vrot.slane (!%p139_p2), %v784_v43, %v787_v42  ;;  %v2086_v46 = vrot.slane (!%p139_p2), %v784_v43, %v855_v44 }
   0xc   : > { %1839 = vmatprep.subr.bf16.mxu0 (!%p139_p2), %v1941_v2  ;;  %1917 = vmatprep.subr.bf16.mxu1 (!%p139_p2), %v1941_v2 }
   0xd   : > { %s2299_s16 = smov (!%p163_p3, %s1430_s16), 255 }
   0xe   : > { %s1431_s21 = sshll.u32 %s2299_s16, 2 }
   0xf   : > { %s2032_s24 = scalar_lea.vmem %s2294_s0, %s1431_s21  ;;  %1840 = vmatpush3.bf16.msra.mxu0 %v1941_v2  ;;  %1925 = vmatpush3.bf16.msra.mxu1 %v1941_v2  ;;  %s2111_s13 = scalar_lea.vmem %s2297_s3, %s1431_s21 }
  0x10   : > { %v1947_v4 = vld [vmem:[%s2032_s24] sm:$0xff]   ;;  %1841 = vmatprep.subr.bf16.mxu0 %v1942_v3  ;;  %1918 = vmatprep.subr.bf16.mxu1 %v1942_v3  ;;  %v1949_v10 = vld [vmem:[%s2032_s24 + $0x8] sm:$0xff]   ;;  %v1951_v12 = vld [vmem:[%s2032_s24 + $0x10] sm:$0xff]  }
  0x11   : > { %v1948_v5 = vld [vmem:[%s2032_s24 + $0x80] sm:$0xff]   ;;  %1851 = vmatprep.mubr.bf16.mxu0 %v1947_v4  ;;  %v1950_v11 = vld [vmem:[%s2032_s24 + $0x88] sm:$0xff]   ;;  %v1952_v13 = vld [vmem:[%s2032_s24 + $0x90] sm:$0xff]  }
  0x12   : > { %1883 = vmatprep.mubr.bf16.mxu1 %v1948_v5  ;;  %v1953_v14 = vld [vmem:[%s2032_s24 + $0x18] sm:$0xff]   ;;  %v1955_v16 = vld [vmem:[%s2032_s24 + $0x20] sm:$0xff]   ;;  %v1957_v18 = vld [vmem:[%s2032_s24 + $0x28] sm:$0xff]  }
  0x13   : > { %1842 = vmatpush3.bf16.msra.mxu0 %v1942_v3  ;;  %1926 = vmatpush3.bf16.msra.mxu1 %v1942_v3  ;;  %v1954_v15 = vld [vmem:[%s2032_s24 + $0x98] sm:$0xff]   ;;  %v1956_v17 = vld [vmem:[%s2032_s24 + $0xa0] sm:$0xff]   ;;  %v1958_v19 = vld [vmem:[%s2032_s24 + $0xa8] sm:$0xff]  }
  0x14   : > { %1843 = vmatprep.subr.bf16.mxu0 %v1943_v6  ;;  %1919 = vmatprep.subr.bf16.mxu1 %v1943_v6  ;;  %v1959_v20 = vld [vmem:[%s2032_s24 + $0x30] sm:$0xff]   ;;  %v1961_v22 = vld [vmem:[%s2032_s24 + $0x38] sm:$0xff]   ;;  %v1963_v24 = vld [vmem:[%s2032_s24 + $0x40] sm:$0xff]  }
  0x15   : > { %v1960_v21 = vld [vmem:[%s2032_s24 + $0xb0] sm:$0xff]   ;;  %v1962_v23 = vld [vmem:[%s2032_s24 + $0xb8] sm:$0xff]   ;;  %v1964_v25 = vld [vmem:[%s2032_s24 + $0xc0] sm:$0xff]  }
  0x16   : > { %v1965_v26 = vld [vmem:[%s2032_s24 + $0x48] sm:$0xff]   ;;  %v1967_v28 = vld [vmem:[%s2032_s24 + $0x50] sm:$0xff]   ;;  %v1969_v30 = vld [vmem:[%s2032_s24 + $0x58] sm:$0xff]  }
  0x17   : > { %1844 = vmatpush3.bf16.msra.mxu0 %v1943_v6  ;;  %1927 = vmatpush3.bf16.msra.mxu1 %v1943_v6  ;;  %v1966_v27 = vld [vmem:[%s2032_s24 + $0xc8] sm:$0xff]   ;;  %v1968_v29 = vld [vmem:[%s2032_s24 + $0xd0] sm:$0xff]   ;;  %v1970_v31 = vld [vmem:[%s2032_s24 + $0xd8] sm:$0xff]  }
  0x18   : > { %1845 = vmatprep.subr.bf16.mxu0 %v1944_v7  ;;  %1920 = vmatprep.subr.bf16.mxu1 %v1944_v7  ;;  %v1971_v32 = vld [vmem:[%s2032_s24 + $0x60] sm:$0xff]   ;;  %v1973_v34 = vld [vmem:[%s2032_s24 + $0x68] sm:$0xff]   ;;  %v1975_v36 = vld [vmem:[%s2032_s24 + $0x70] sm:$0xff]  }
  0x19   : > { %v1972_v33 = vld [vmem:[%s2032_s24 + $0xe0] sm:$0xff]   ;;  %v1974_v35 = vld [vmem:[%s2032_s24 + $0xe8] sm:$0xff]   ;;  %v1976_v37 = vld [vmem:[%s2032_s24 + $0xf0] sm:$0xff]  }
  0x1a   : > { %v1977_v38 = vld [vmem:[%s2032_s24 + $0x78] sm:$0xff]  }
  0x1b   : > { %1846 = vmatpush3.bf16.msra.mxu0 %v1944_v7  ;;  %1928 = vmatpush3.bf16.msra.mxu1 %v1944_v7  ;;  %v1978_v39 = vld [vmem:[%s2032_s24 + $0xf8] sm:$0xff]  }
  0x1c   : > { %1847 = vmatprep.subr.bf16.mxu0 %v1945_v8  ;;  %1921 = vmatprep.subr.bf16.mxu1 %v1945_v8 }
  0x1f   : > { %1848 = vmatpush3.bf16.msra.mxu0 %v1945_v8  ;;  %1929 = vmatpush3.bf16.msra.mxu1 %v1945_v8 }
  0x20   : > { %1849 = vmatprep.subr.bf16.mxu0 %v1946_v9  ;;  %1922 = vmatprep.subr.bf16.mxu1 %v1946_v9 }
  0x23   : > { %1850 = vmatpush3.bf16.msra.mxu0 %v1946_v9  ;;  %1930 = vmatpush3.bf16.msra.mxu1 %v1946_v9 }
  0x26   : > { %1852 = vmatmul.mubr.bf16.vlgmr.msra.gmra.mrb[0].mxu0 %v1949_v10  ;;  %1884 = vmatmul.mubr.bf16.vlgmr.msra.gmra.mrb[0].mxu1 %v1950_v11 }
  0x27   : > { %1855 = vmatprep.mubr.bf16.mxu0 %v1951_v12  ;;  %1887 = vmatprep.mubr.bf16.mxu1 %v1952_v13 }
  0x2e   : > { %1856 = vmatmul.mubr.bf16.gmra.mrb[4].mxu0 %v1953_v14  ;;  %1888 = vmatmul.mubr.bf16.gmra.mrb[4].mxu1 %v1954_v15 }
  0x2f   : > { %1859 = vmatprep.mubr.bf16.mxu0 %v1955_v16  ;;  %1891 = vmatprep.mubr.bf16.mxu1 %v1956_v17 }
  0x36   : > { %1860 = vmatmul.mubr.bf16.gmra.mrb[8].mxu0 %v1957_v18  ;;  %1892 = vmatmul.mubr.bf16.gmra.mrb[8].mxu1 %v1958_v19 }
  0x37   : > { %1863 = vmatprep.mubr.bf16.mxu0 %v1959_v20  ;;  %1895 = vmatprep.mubr.bf16.mxu1 %v1960_v21 }
  0x3e   : > { %1864 = vmatmul.mubr.bf16.gmra.mrb[12].mxu0 %v1961_v22  ;;  %1896 = vmatmul.mubr.bf16.gmra.mrb[12].mxu1 %v1962_v23 }
  0x3f   : > { %1867 = vmatprep.mubr.bf16.mxu0 %v1963_v24  ;;  %1899 = vmatprep.mubr.bf16.mxu1 %v1964_v25 }
  0x46   : > { %1868 = vmatmul.mubr.bf16.gmra.mrb[16].mxu0 %v1965_v26  ;;  %1900 = vmatmul.mubr.bf16.gmra.mrb[16].mxu1 %v1966_v27 }
  0x47   : > { %1871 = vmatprep.mubr.bf16.mxu0 %v1967_v28  ;;  %1903 = vmatprep.mubr.bf16.mxu1 %v1968_v29 }
  0x4e   : > { %1872 = vmatmul.mubr.bf16.gmra.mrb[20].mxu0 %v1969_v30  ;;  %1904 = vmatmul.mubr.bf16.gmra.mrb[20].mxu1 %v1970_v31 }
  0x4f   : > { %1875 = vmatprep.mubr.bf16.mxu0 %v1971_v32  ;;  %1907 = vmatprep.mubr.bf16.mxu1 %v1972_v33 }
  0x56   : > { %1876 = vmatmul.mubr.bf16.gmra.mrb[24].mxu0 %v1973_v34  ;;  %1908 = vmatmul.mubr.bf16.gmra.mrb[24].mxu1 %v1974_v35 }
  0x57   : > { %1879 = vmatprep.mubr.bf16.mxu0 %v1975_v36  ;;  %1911 = vmatprep.mubr.bf16.mxu1 %v1976_v37 }
  0x5e   : > { %1880 = vmatmul.mubr.bf16.gmra.mrb[28].mxu0 %v1977_v38  ;;  %1912 = vmatmul.mubr.bf16.gmra.mrb[28].mxu1 %v1978_v39 }
  0xf9   : > { %v1853_v47 = vpop.f32.mrb[0].mxu0  ;;  %v1885_v48 = vpop.f32.mrb[0].mxu1 }
  0xfa   : > { %v791_v49 = vmul.f32 %v1853_v47, %v2084_v45  ;;  %v823_v50 = vmul.f32 %v1885_v48, %v2084_v45  ;;  %v529_v51 = vpop.f32.mrb[1].mxu0  ;;  %v657_v52 = vpop.f32.mrb[1].mxu1 }
  0xfb   : > { %v789_v53 = vmul.f32 %v2084_v45, %v529_v51  ;;  %v821_v54 = vmul.f32 %v2084_v45, %v657_v52  ;;  %v1854_v55 = vpop.f32.mrb[2].mxu0  ;;  %v1886_v56 = vpop.f32.mrb[2].mxu1 }
  0xfc   : > { %v859_v57 = vadd.f32 %v2086_v46, %v791_v49  ;;  %v891_v58 = vadd.f32 %v2086_v46, %v823_v50  ;;  %v792_v59 = vmul.f32 %v1854_v55, %v2084_v45  ;;  %v824_v60 = vmul.f32 %v1886_v56, %v2084_v45  ;;  %v532_v61 = vpop.f32.mrb[3].mxu0  ;;  %v660_v62 = vpop.f32.mrb[3].mxu1 }
  0xfd   : > { %v857_v63 = vadd.f32 %v2086_v46, %v789_v53  ;;  %v889_v0 = vadd.f32 %v2086_v46, %v821_v54  ;;  %v790_v1 = vmul.f32 %v2084_v45, %v532_v61  ;;  %v822_v2 = vmul.f32 %v2084_v45, %v660_v62 }
  0xfe   : > { %v923_v3 = vmul.f32 0.2, %v859_v57  ;;  %v955_v4 = vmul.f32 0.2, %v891_v58  ;;  %v860_v5 = vadd.f32 %v2086_v46, %v792_v59  ;;  %v892_v6 = vadd.f32 %v2086_v46, %v824_v60 }
  0xff   : > { %v921_v7 = vmul.f32 0.2, %v857_v63  ;;  %v953_v8 = vmul.f32 0.2, %v889_v0  ;;  %v858_v9 = vadd.f32 %v2086_v46, %v790_v1  ;;  %v890_v10 = vadd.f32 %v2086_v46, %v822_v2 }
 0x100   : > { %v987_v11 = vmax.f32 %v859_v57, %v923_v3  ;;  %v1019_v12 = vmax.f32 %v891_v58, %v955_v4  ;;  %v924_v13 = vmul.f32 0.2, %v860_v5  ;;  %v956_v14 = vmul.f32 0.2, %v892_v6 }
 0x101   : > { %v985_v15 = vmax.f32 %v857_v63, %v921_v7  ;;  %v1017_v16 = vmax.f32 %v889_v0, %v953_v8  ;;  %v922_v17 = vmul.f32 0.2, %v858_v9  ;;  %v954_v18 = vmul.f32 0.2, %v890_v10  ;;  %v1857_v19 = vpop.f32.mrb[4].mxu0  ;;  %v1889_v20 = vpop.f32.mrb[4].mxu1 }
 0x102   : > { %v988_v21 = vmax.f32 %v860_v5, %v924_v13  ;;  %v1020_v22 = vmax.f32 %v892_v6, %v956_v14  ;;  %v795_v23 = vmul.f32 %v1857_v19, %v2084_v45  ;;  %v827_v24 = vmul.f32 %v1889_v20, %v2084_v45  ;;  %v545_v25 = vpop.f32.mrb[5].mxu0  ;;  %v673_v26 = vpop.f32.mrb[5].mxu1 }
 0x103   : > { %v986_v27 = vmax.f32 %v858_v9, %v922_v17  ;;  %v1018_v28 = vmax.f32 %v890_v10, %v954_v18  ;;  %v793_v29 = vmul.f32 %v2084_v45, %v545_v25  ;;  %v825_v30 = vmul.f32 %v2084_v45, %v673_v26  ;;  %v1858_v31 = vpop.f32.mrb[6].mxu0  ;;  %v1890_v32 = vpop.f32.mrb[6].mxu1 }
 0x104   : > { %v1612_v33 = vpack.c.bf16 %v988_v21, %v987_v11  ;;  %v1692_v34 = vpack.c.bf16 %v1020_v22, %v1019_v12  ;;  %v863_v35 = vadd.f32 %v2086_v46, %v795_v23  ;;  %v895_v36 = vadd.f32 %v2086_v46, %v827_v24  ;;  %v548_v37 = vpop.f32.mrb[7].mxu0  ;;  %v676_v38 = vpop.f32.mrb[7].mxu1 }
 0x105   : > { %v1607_v39 = vpack.c.bf16 %v986_v27, %v985_v15  ;;  %v1687_v40 = vpack.c.bf16 %v1018_v28, %v1017_v16  ;;  %v861_v41 = vadd.f32 %v2086_v46, %v793_v29  ;;  %v893_v42 = vadd.f32 %v2086_v46, %v825_v30 }
 0x106   : > { %1764 = vst [vmem:[%s2111_s13 + $0x8] sm:$0xff] %v1612_v33   ;;  %1780 = vst [vmem:[%s2111_s13 + $0x88] sm:$0xff] %v1692_v34   ;;  %v927_v43 = vmul.f32 0.2, %v863_v35  ;;  %v959_v44 = vmul.f32 0.2, %v895_v36  ;;  %v796_v47 = vmul.f32 %v1858_v31, %v2084_v45  ;;  %v828_v48 = vmul.f32 %v1890_v32, %v2084_v45 }
 0x107   : > { %1608 = vst [vmem:[%s2111_s13] sm:$0xff] %v1607_v39   ;;  %1779 = vst [vmem:[%s2111_s13 + $0x80] sm:$0xff] %v1687_v40   ;;  %v925_v49 = vmul.f32 0.2, %v861_v41  ;;  %v957_v50 = vmul.f32 0.2, %v893_v42  ;;  %v794_v51 = vmul.f32 %v2084_v45, %v548_v37  ;;  %v826_v52 = vmul.f32 %v2084_v45, %v676_v38 }
 0x108   : > { %v991_v53 = vmax.f32 %v863_v35, %v927_v43  ;;  %v1023_v54 = vmax.f32 %v895_v36, %v959_v44  ;;  %v864_v55 = vadd.f32 %v2086_v46, %v796_v47  ;;  %v896_v56 = vadd.f32 %v2086_v46, %v828_v48 }
 0x109   : > { %v989_v57 = vmax.f32 %v861_v41, %v925_v49  ;;  %v1021_v58 = vmax.f32 %v893_v42, %v957_v50  ;;  %v862_v59 = vadd.f32 %v2086_v46, %v794_v51  ;;  %v894_v60 = vadd.f32 %v2086_v46, %v826_v52  ;;  %v1861_v61 = vpop.f32.mrb[8].mxu0  ;;  %v1893_v62 = vpop.f32.mrb[8].mxu1 }
 0x10a   : > { %v928_v63 = vmul.f32 0.2, %v864_v55  ;;  %v960_v0 = vmul.f32 0.2, %v896_v56  ;;  %v799_v1 = vmul.f32 %v1861_v61, %v2084_v45  ;;  %v831_v2 = vmul.f32 %v1893_v62, %v2084_v45  ;;  %v561_v3 = vpop.f32.mrb[9].mxu0  ;;  %v689_v4 = vpop.f32.mrb[9].mxu1 }
 0x10b   : > { %v926_v5 = vmul.f32 0.2, %v862_v59  ;;  %v958_v6 = vmul.f32 0.2, %v894_v60  ;;  %v797_v7 = vmul.f32 %v2084_v45, %v561_v3  ;;  %v829_v8 = vmul.f32 %v2084_v45, %v689_v4  ;;  %v1862_v9 = vpop.f32.mrb[10].mxu0  ;;  %v1894_v10 = vpop.f32.mrb[10].mxu1 }
 0x10c   : > { %v992_v11 = vmax.f32 %v864_v55, %v928_v63  ;;  %v1024_v12 = vmax.f32 %v896_v56, %v960_v0  ;;  %v867_v13 = vadd.f32 %v2086_v46, %v799_v1  ;;  %v899_v14 = vadd.f32 %v2086_v46, %v831_v2  ;;  %v564_v15 = vpop.f32.mrb[11].mxu0  ;;  %v692_v16 = vpop.f32.mrb[11].mxu1 }
 0x10d   : > { %v990_v17 = vmax.f32 %v862_v59, %v926_v5  ;;  %v1022_v18 = vmax.f32 %v894_v60, %v958_v6  ;;  %v865_v19 = vadd.f32 %v2086_v46, %v797_v7  ;;  %v897_v20 = vadd.f32 %v2086_v46, %v829_v8 }
 0x10e   : > { %v1622_v21 = vpack.c.bf16 %v992_v11, %v991_v53  ;;  %v1702_v22 = vpack.c.bf16 %v1024_v12, %v1023_v54  ;;  %v931_v23 = vmul.f32 0.2, %v867_v13  ;;  %v963_v24 = vmul.f32 0.2, %v899_v14 }
 0x10f   : > { %v1617_v25 = vpack.c.bf16 %v990_v17, %v989_v57  ;;  %v1697_v26 = vpack.c.bf16 %v1022_v18, %v1021_v58  ;;  %v929_v27 = vmul.f32 0.2, %v865_v19  ;;  %v961_v28 = vmul.f32 0.2, %v897_v20 }
 0x110   : > { %1766 = vst [vmem:[%s2111_s13 + $0x18] sm:$0xff] %v1622_v21   ;;  %1782 = vst [vmem:[%s2111_s13 + $0x98] sm:$0xff] %v1702_v22   ;;  %v800_v29 = vmul.f32 %v1862_v9, %v2084_v45  ;;  %v832_v30 = vmul.f32 %v1894_v10, %v2084_v45  ;;  %v995_v31 = vmax.f32 %v867_v13, %v931_v23 }
 0x111   : > { %1765 = vst [vmem:[%s2111_s13 + $0x10] sm:$0xff] %v1617_v25   ;;  %1781 = vst [vmem:[%s2111_s13 + $0x90] sm:$0xff] %v1697_v26   ;;  %v1027_v32 = vmax.f32 %v899_v14, %v963_v24  ;;  %v798_v33 = vmul.f32 %v2084_v45, %v564_v15  ;;  %v830_v34 = vmul.f32 %v2084_v45, %v692_v16  ;;  %v1865_v35 = vpop.f32.mrb[12].mxu0  ;;  %v1897_v36 = vpop.f32.mrb[12].mxu1 }
 0x112   : > { %v868_v37 = vadd.f32 %v2086_v46, %v800_v29  ;;  %v900_v38 = vadd.f32 %v2086_v46, %v832_v30  ;;  %v803_v39 = vmul.f32 %v1865_v35, %v2084_v45  ;;  %v835_v40 = vmul.f32 %v1897_v36, %v2084_v45  ;;  %v577_v41 = vpop.f32.mrb[13].mxu0  ;;  %v705_v42 = vpop.f32.mrb[13].mxu1 }
 0x113   : > { %v866_v43 = vadd.f32 %v2086_v46, %v798_v33  ;;  %v898_v44 = vadd.f32 %v2086_v46, %v830_v34  ;;  %v801_v47 = vmul.f32 %v2084_v45, %v577_v41  ;;  %v833_v48 = vmul.f32 %v2084_v45, %v705_v42  ;;  %v1866_v49 = vpop.f32.mrb[14].mxu0  ;;  %v1898_v50 = vpop.f32.mrb[14].mxu1 }
 0x114   : > { %v932_v51 = vmul.f32 0.2, %v868_v37  ;;  %v964_v52 = vmul.f32 0.2, %v900_v38  ;;  %v2156_v53 = vadd.f32 %v2086_v46, %v803_v39  ;;  %v2159_v54 = vadd.f32 %v2086_v46, %v835_v40  ;;  %v580_v55 = vpop.f32.mrb[15].mxu0  ;;  %v708_v56 = vpop.f32.mrb[15].mxu1 }
 0x115   : > { %v930_v57 = vmul.f32 0.2, %v866_v43  ;;  %v962_v58 = vmul.f32 0.2, %v898_v44  ;;  %v2162_v59 = vadd.f32 %v2086_v46, %v801_v47  ;;  %v2165_v60 = vadd.f32 %v2086_v46, %v833_v48 }
 0x116   : > { %v996_v61 = vmax.f32 %v868_v37, %v932_v51  ;;  %v1028_v62 = vmax.f32 %v900_v38, %v964_v52  ;;  %v935_v63 = vmul.f32 0.2, %v2156_v53  ;;  %v967_v0 = vmul.f32 0.2, %v2159_v54 }
 0x117   : > { %v993_v1 = vmax.f32 %v865_v19, %v929_v27  ;;  %v1025_v2 = vmax.f32 %v897_v20, %v961_v28  ;;  %v994_v3 = vmax.f32 %v866_v43, %v930_v57  ;;  %v1026_v4 = vmax.f32 %v898_v44, %v962_v58 }
 0x118   : > { %v1632_v5 = vpack.c.bf16 %v996_v61, %v995_v31  ;;  %v1712_v6 = vpack.c.bf16 %v1028_v62, %v1027_v32  ;;  %v933_v7 = vmul.f32 0.2, %v2162_v59  ;;  %v965_v8 = vmul.f32 0.2, %v2165_v60 }
 0x119   : > { %v1627_v9 = vpack.c.bf16 %v994_v3, %v993_v1  ;;  %v1707_v10 = vpack.c.bf16 %v1026_v4, %v1025_v2  ;;  %v999_v11 = vmax.f32 %v2156_v53, %v935_v63  ;;  %v1031_v12 = vmax.f32 %v2159_v54, %v967_v0  ;;  %v1869_v13 = vpop.f32.mrb[16].mxu0  ;;  %v1901_v14 = vpop.f32.mrb[16].mxu1 }
 0x11a   : > { %1768 = vst [vmem:[%s2111_s13 + $0x28] sm:$0xff] %v1632_v5   ;;  %1784 = vst [vmem:[%s2111_s13 + $0xa8] sm:$0xff] %v1712_v6   ;;  %v804_v15 = vmul.f32 %v1866_v49, %v2084_v45  ;;  %v836_v16 = vmul.f32 %v1898_v50, %v2084_v45  ;;  %v802_v17 = vmul.f32 %v2084_v45, %v580_v55  ;;  %v593_v19 = vpop.f32.mrb[17].mxu0  ;;  %v721_v20 = vpop.f32.mrb[17].mxu1 }
 0x11b   : > { %v834_v18 = vmul.f32 %v2084_v45, %v708_v56  ;;  %1767 = vst [vmem:[%s2111_s13 + $0x20] sm:$0xff] %v1627_v9   ;;  %1783 = vst [vmem:[%s2111_s13 + $0xa0] sm:$0xff] %v1707_v10   ;;  %v807_v21 = vmul.f32 %v1869_v13, %v2084_v45  ;;  %v839_v22 = vmul.f32 %v1901_v14, %v2084_v45  ;;  %v1870_v25 = vpop.f32.mrb[18].mxu0  ;;  %v1902_v26 = vpop.f32.mrb[18].mxu1 }
 0x11c   : > { %v805_v23 = vmul.f32 %v2084_v45, %v593_v19  ;;  %v837_v24 = vmul.f32 %v2084_v45, %v721_v20  ;;  %v872_v27 = vadd.f32 %v2086_v46, %v804_v15  ;;  %v904_v28 = vadd.f32 %v2086_v46, %v836_v16  ;;  %v596_v31 = vpop.f32.mrb[19].mxu0  ;;  %v724_v32 = vpop.f32.mrb[19].mxu1 }
 0x11d   : > { %v870_v29 = vadd.f32 %v2086_v46, %v802_v17  ;;  %v902_v30 = vadd.f32 %v2086_v46, %v834_v18  ;;  %v875_v33 = vadd.f32 %v2086_v46, %v807_v21  ;;  %v907_v34 = vadd.f32 %v2086_v46, %v839_v22 }
 0x11e   : > { %v2192_v35 = vadd.f32 %v2086_v46, %v805_v23  ;;  %v2195_v36 = vadd.f32 %v2086_v46, %v837_v24  ;;  %v936_v37 = vmul.f32 0.2, %v872_v27  ;;  %v968_v38 = vmul.f32 0.2, %v904_v28 }
 0x11f   : > { %v934_v39 = vmul.f32 0.2, %v870_v29  ;;  %v808_v40 = vmul.f32 %v1870_v25, %v2084_v45  ;;  %v966_v41 = vmul.f32 0.2, %v902_v30  ;;  %v939_v42 = vmul.f32 0.2, %v875_v33 }
 0x120   : > { %v971_v43 = vmul.f32 0.2, %v907_v34  ;;  %v840_v44 = vmul.f32 %v1902_v26, %v2084_v45  ;;  %v997_v47 = vmax.f32 %v2162_v59, %v933_v7  ;;  %v1000_v48 = vmax.f32 %v872_v27, %v936_v37 }
 0x121   : > { %v1032_v49 = vmax.f32 %v904_v28, %v968_v38  ;;  %v998_v50 = vmax.f32 %v870_v29, %v934_v39  ;;  %v1029_v51 = vmax.f32 %v2165_v60, %v965_v8  ;;  %v1030_v52 = vmax.f32 %v902_v30, %v966_v41  ;;  %v1873_v55 = vpop.f32.mrb[20].mxu0  ;;  %v1905_v56 = vpop.f32.mrb[20].mxu1 }
 0x122   : > { %v1003_v53 = vmax.f32 %v875_v33, %v939_v42  ;;  %v937_v54 = vmul.f32 0.2, %v2192_v35  ;;  %v1642_v57 = vpack.c.bf16 %v1000_v48, %v999_v11  ;;  %v1035_v62 = vmax.f32 %v907_v34, %v971_v43  ;;  %v609_v63 = vpop.f32.mrb[21].mxu0  ;;  %v737_v59 = vpop.f32.mrb[21].mxu1 }
 0x123   : > { %v1722_v58 = vpack.c.bf16 %v1032_v49, %v1031_v12  ;;  %v1637_v61 = vpack.c.bf16 %v998_v50, %v997_v47  ;;  %v1717_v0 = vpack.c.bf16 %v1030_v52, %v1029_v51  ;;  %v969_v1 = vmul.f32 0.2, %v2195_v36  ;;  %v1874_v3 = vpop.f32.mrb[22].mxu0  ;;  %v1906_v4 = vpop.f32.mrb[22].mxu1 }
 0x124   : > { %v876_v60 = vadd.f32 %v2086_v46, %v808_v40  ;;  %v908_v2 = vadd.f32 %v2086_v46, %v840_v44  ;;  %1770 = vst [vmem:[%s2111_s13 + $0x38] sm:$0xff] %v1642_v57   ;;  %v806_v5 = vmul.f32 %v2084_v45, %v596_v31  ;;  %v838_v6 = vmul.f32 %v2084_v45, %v724_v32  ;;  %v612_v9 = vpop.f32.mrb[23].mxu0  ;;  %v740_v10 = vpop.f32.mrb[23].mxu1 }
 0x125   : > { %1786 = vst [vmem:[%s2111_s13 + $0xb8] sm:$0xff] %v1722_v58   ;;  %1769 = vst [vmem:[%s2111_s13 + $0x30] sm:$0xff] %v1637_v61   ;;  %v811_v7 = vmul.f32 %v1873_v55, %v2084_v45  ;;  %v843_v8 = vmul.f32 %v1905_v56, %v2084_v45  ;;  %v809_v13 = vmul.f32 %v2084_v45, %v609_v63 }
 0x126   : > { %1785 = vst [vmem:[%s2111_s13 + $0xb0] sm:$0xff] %v1717_v0   ;;  %v940_v11 = vmul.f32 0.2, %v876_v60  ;;  %v972_v12 = vmul.f32 0.2, %v908_v2  ;;  %v841_v14 = vmul.f32 %v2084_v45, %v737_v59  ;;  %v874_v15 = vadd.f32 %v2086_v46, %v806_v5 }
 0x127   : > { %v906_v16 = vadd.f32 %v2086_v46, %v838_v6  ;;  %v879_v17 = vadd.f32 %v2086_v46, %v811_v7  ;;  %v2219_v18 = vadd.f32 %v2086_v46, %v843_v8  ;;  %v2222_v21 = vadd.f32 %v2086_v46, %v809_v13 }
 0x128   : > { %v1004_v19 = vmax.f32 %v876_v60, %v940_v11  ;;  %v1036_v20 = vmax.f32 %v908_v2, %v972_v12  ;;  %v2225_v22 = vadd.f32 %v2086_v46, %v841_v14  ;;  %v938_v23 = vmul.f32 0.2, %v874_v15 }
 0x129   : > { %v970_v24 = vmul.f32 0.2, %v906_v16  ;;  %v943_v25 = vmul.f32 0.2, %v879_v17  ;;  %v812_v26 = vmul.f32 %v1874_v3, %v2084_v45  ;;  %v1001_v27 = vmax.f32 %v2192_v35, %v937_v54  ;;  %v1877_v30 = vpop.f32.mrb[24].mxu0  ;;  %v1909_v31 = vpop.f32.mrb[24].mxu1 }
 0x12a   : > { %v1652_v28 = vpack.c.bf16 %v1004_v19, %v1003_v53  ;;  %v1732_v29 = vpack.c.bf16 %v1036_v20, %v1035_v62  ;;  %v1033_v32 = vmax.f32 %v2195_v36, %v969_v1  ;;  %v1002_v33 = vmax.f32 %v874_v15, %v938_v23  ;;  %v625_v38 = vpop.f32.mrb[25].mxu0  ;;  %v753_v39 = vpop.f32.mrb[25].mxu1 }
 0x12b   : > { %v1034_v34 = vmax.f32 %v906_v16, %v970_v24  ;;  %v975_v37 = vmul.f32 0.2, %v2219_v18  ;;  %v1007_v40 = vmax.f32 %v879_v17, %v943_v25  ;;  %v941_v41 = vmul.f32 0.2, %v2222_v21  ;;  %v1878_v43 = vpop.f32.mrb[26].mxu0  ;;  %v1910_v44 = vpop.f32.mrb[26].mxu1 }
 0x12c   : > { %1772 = vst [vmem:[%s2111_s13 + $0x48] sm:$0xff] %v1652_v28   ;;  %1788 = vst [vmem:[%s2111_s13 + $0xc8] sm:$0xff] %v1732_v29   ;;  %v880_v35 = vadd.f32 %v2086_v46, %v812_v26  ;;  %v844_v42 = vmul.f32 %v1906_v4, %v2084_v45  ;;  %v1647_v36 = vpack.c.bf16 %v1002_v33, %v1001_v27  ;;  %v973_v48 = vmul.f32 0.2, %v2225_v22  ;;  %v628_v50 = vpop.f32.mrb[27].mxu0  ;;  %v756_v51 = vpop.f32.mrb[27].mxu1 }
 0x12d   : > { %v1727_v47 = vpack.c.bf16 %v1034_v34, %v1033_v32  ;;  %v810_v49 = vmul.f32 %v2084_v45, %v612_v9  ;;  %v842_v54 = vmul.f32 %v2084_v45, %v740_v10  ;;  %v815_v55 = vmul.f32 %v1877_v30, %v2084_v45 }
 0x12e   : > { %v944_v52 = vmul.f32 0.2, %v880_v35  ;;  %v912_v53 = vadd.f32 %v2086_v46, %v844_v42  ;;  %1771 = vst [vmem:[%s2111_s13 + $0x40] sm:$0xff] %v1647_v36   ;;  %v847_v57 = vmul.f32 %v1909_v31, %v2084_v45  ;;  %v813_v58 = vmul.f32 %v2084_v45, %v625_v38 }
 0x12f   : > { %1787 = vst [vmem:[%s2111_s13 + $0xc0] sm:$0xff] %v1727_v47   ;;  %v878_v56 = vadd.f32 %v2086_v46, %v810_v49  ;;  %v845_v61 = vmul.f32 %v2084_v45, %v753_v39  ;;  %v910_v59 = vadd.f32 %v2086_v46, %v842_v54  ;;  %v883_v0 = vadd.f32 %v2086_v46, %v815_v55 }
 0x130   : > { %v1008_v62 = vmax.f32 %v880_v35, %v944_v52  ;;  %v976_v63 = vmul.f32 0.2, %v912_v53  ;;  %v1039_v1 = vmax.f32 %v2219_v18, %v975_v37  ;;  %v915_v2 = vadd.f32 %v2086_v46, %v847_v57 }
 0x131   : > { %v942_v60 = vmul.f32 0.2, %v878_v56  ;;  %v1005_v3 = vmax.f32 %v2222_v21, %v941_v41  ;;  %v974_v6 = vmul.f32 0.2, %v910_v59  ;;  %v1881_v7 = vpop.f32.mrb[28].mxu0  ;;  %v1913_v8 = vpop.f32.mrb[28].mxu1  ;;  %v1037_v9 = vmax.f32 %v2225_v22, %v973_v48 }
 0x132   : > { %v1662_v4 = vpack.c.bf16 %v1008_v62, %v1007_v40  ;;  %v1040_v5 = vmax.f32 %v912_v53, %v976_v63  ;;  %v881_v11 = vadd.f32 %v2086_v46, %v813_v58  ;;  %v913_v12 = vadd.f32 %v2086_v46, %v845_v61  ;;  %v641_v17 = vpop.f32.mrb[29].mxu0  ;;  %v769_v18 = vpop.f32.mrb[29].mxu1 }
 0x133   : > { %v1006_v10 = vmax.f32 %v878_v56, %v942_v60  ;;  %v1038_v14 = vmax.f32 %v910_v59, %v974_v6  ;;  %v947_v15 = vmul.f32 0.2, %v883_v0  ;;  %v816_v16 = vmul.f32 %v1878_v43, %v2084_v45  ;;  %v1882_v21 = vpop.f32.mrb[30].mxu0  ;;  %v1914_v23 = vpop.f32.mrb[30].mxu1 }
 0x134   : > { %1774 = vst [vmem:[%s2111_s13 + $0x58] sm:$0xff] %v1662_v4   ;;  %v1742_v13 = vpack.c.bf16 %v1040_v5, %v1039_v1  ;;  %v979_v20 = vmul.f32 0.2, %v915_v2  ;;  %v848_v25 = vmul.f32 %v1910_v44, %v2084_v45  ;;  %v814_v26 = vmul.f32 %v2084_v45, %v628_v50  ;;  %v644_v27 = vpop.f32.mrb[31].mxu0  ;;  %v772_v28 = vpop.f32.mrb[31].mxu1 }
 0x135   : > { %v1657_v19 = vpack.c.bf16 %v1006_v10, %v1005_v3  ;;  %v1737_v22 = vpack.c.bf16 %v1038_v14, %v1037_v9  ;;  %v884_v24 = vadd.f32 %v2086_v46, %v816_v16  ;;  %v945_v29 = vmul.f32 0.2, %v881_v11 }
 0x136   : > { %1790 = vst [vmem:[%s2111_s13 + $0xd8] sm:$0xff] %v1742_v13   ;;  %v977_v30 = vmul.f32 0.2, %v913_v12  ;;  %v846_v31 = vmul.f32 %v2084_v45, %v756_v51  ;;  %v819_v32 = vmul.f32 %v1881_v7, %v2084_v45  ;;  %v1011_v33 = vmax.f32 %v883_v0, %v947_v15 }
 0x137   : > { %1773 = vst [vmem:[%s2111_s13 + $0x50] sm:$0xff] %v1657_v19   ;;  %1789 = vst [vmem:[%s2111_s13 + $0xd0] sm:$0xff] %v1737_v22   ;;  %v948_v34 = vmul.f32 0.2, %v884_v24  ;;  %v916_v37 = vadd.f32 %v2086_v46, %v848_v25  ;;  %v882_v38 = vadd.f32 %v2086_v46, %v814_v26  ;;  %v851_v40 = vmul.f32 %v1913_v8, %v2084_v45 }
 0x138   : > { %v914_v39 = vadd.f32 %v2086_v46, %v846_v31  ;;  %v817_v41 = vmul.f32 %v2084_v45, %v641_v17  ;;  %v849_v35 = vmul.f32 %v2084_v45, %v769_v18  ;;  %v887_v36 = vadd.f32 %v2086_v46, %v819_v32 }
 0x139   : > { %v1012_v42 = vmax.f32 %v884_v24, %v948_v34  ;;  %v980_v43 = vmul.f32 0.2, %v916_v37  ;;  %v946_v44 = vmul.f32 0.2, %v882_v38  ;;  %v1043_v47 = vmax.f32 %v915_v2, %v979_v20 }
 0x13a   : > { %v1009_v48 = vmax.f32 %v881_v11, %v945_v29  ;;  %v978_v49 = vmul.f32 0.2, %v914_v39  ;;  %v820_v50 = vmul.f32 %v1882_v21, %v2084_v45  ;;  %v1041_v51 = vmax.f32 %v913_v12, %v977_v30 }
 0x13b   : > { %v1672_v52 = vpack.c.bf16 %v1012_v42, %v1011_v33  ;;  %v1044_v53 = vmax.f32 %v916_v37, %v980_v43  ;;  %v1010_v54 = vmax.f32 %v882_v38, %v946_v44  ;;  %v919_v56 = vadd.f32 %v2086_v46, %v851_v40 }
 0x13c   : > { %v1042_v55 = vmax.f32 %v914_v39, %v978_v49  ;;  %v885_v57 = vadd.f32 %v2086_v46, %v817_v41  ;;  %v917_v58 = vadd.f32 %v2086_v46, %v849_v35  ;;  %v951_v63 = vmul.f32 0.2, %v887_v36 }
 0x13d   : > { %1776 = vst [vmem:[%s2111_s13 + $0x68] sm:$0xff] %v1672_v52   ;;  %v1752_v61 = vpack.c.bf16 %v1044_v53, %v1043_v47  ;;  %v1667_v62 = vpack.c.bf16 %v1010_v54, %v1009_v48  ;;  %v888_v59 = vadd.f32 %v2086_v46, %v820_v50  ;;  %v852_v1 = vmul.f32 %v1914_v23, %v2084_v45 }
 0x13e   : > { %v1747_v0 = vpack.c.bf16 %v1042_v55, %v1041_v51  ;;  %v818_v60 = vmul.f32 %v2084_v45, %v644_v27  ;;  %v850_v3 = vmul.f32 %v2084_v45, %v772_v28  ;;  %v983_v4 = vmul.f32 0.2, %v919_v56 }
 0x13f   : > { %1792 = vst [vmem:[%s2111_s13 + $0xe8] sm:$0xff] %v1752_v61   ;;  %1775 = vst [vmem:[%s2111_s13 + $0x60] sm:$0xff] %v1667_v62   ;;  %v952_v2 = vmul.f32 0.2, %v888_v59  ;;  %v949_v5 = vmul.f32 0.2, %v885_v57  ;;  %v920_v6 = vadd.f32 %v2086_v46, %v852_v1  ;;  %v1015_v8 = vmax.f32 %v887_v36, %v951_v63 }
 0x140   : > { %1791 = vst [vmem:[%s2111_s13 + $0xe0] sm:$0xff] %v1747_v0   ;;  %v886_v7 = vadd.f32 %v2086_v46, %v818_v60  ;;  %v981_v9 = vmul.f32 0.2, %v917_v58  ;;  %v918_v11 = vadd.f32 %v2086_v46, %v850_v3  ;;  %v1047_v15 = vmax.f32 %v919_v56, %v983_v4 }
 0x141   : > { %v1016_v10 = vmax.f32 %v888_v59, %v952_v2  ;;  %v984_v12 = vmul.f32 0.2, %v920_v6  ;;  %v1013_v16 = vmax.f32 %v885_v57, %v949_v5 }
 0x142   : > { %v950_v13 = vmul.f32 0.2, %v886_v7  ;;  %v982_v45 = vmul.f32 0.2, %v918_v11  ;;  %v1045_v19 = vmax.f32 %v917_v58, %v981_v9 }
 0x143   : > { %v1682_v14 = vpack.c.bf16 %v1016_v10, %v1015_v8  ;;  %v1048_v17 = vmax.f32 %v920_v6, %v984_v12 }
 0x144   : > { %v1014_v18 = vmax.f32 %v886_v7, %v950_v13  ;;  %v1046_v20 = vmax.f32 %v918_v11, %v982_v45 }
 0x145   : > { %1778 = vst [vmem:[%s2111_s13 + $0x78] sm:$0xff] %v1682_v14   ;;  %v1762_v21 = vpack.c.bf16 %v1048_v17, %v1047_v15 }
 0x146   : > { %v1677_v23 = vpack.c.bf16 %v1014_v18, %v1013_v16  ;;  %v1757_v22 = vpack.c.bf16 %v1046_v20, %v1045_v19 }
 0x147   : > { %1794 = vst [vmem:[%s2111_s13 + $0xf8] sm:$0xff] %v1762_v21  }
 0x148   : > { %1777 = vst [vmem:[%s2111_s13 + $0x70] sm:$0xff] %v1677_v23   ;;  %1793 = vst [vmem:[%s2111_s13 + $0xf0] sm:$0xff] %v1757_v22  }
 0x149 PF: > { %s13_s12 = sadd.s32 1, %s1985_s12  }
 0x14a   : > { %p10_p4 = scmp.ge.s32.totalorder %s13_s12, 6  }
 0x14c   :  { %12 = sbr.rel (!%p10_p4) target bundleno = 1 (0x1), region = 62 }

// kernel: dnet_baw_forward.7
= control target key start
LH: loop header
LB: loop body
LE: loop exit
PB: predicated region body
PF: predicated region fallthrough
CT: control target
= control target key end

     0   :  { %s1223_s12 = smov 0   ;;  %s1378_s0 = inlined_call_operand.vmem [shape: bf16[512,128], index: 0, kind: input, shape index: {}]   ;;  %s1379_s1 = inlined_call_operand.vmem [shape: bf16[128,128], index: 1, kind: input, shape index: {}]   ;;  %s1380_s2 = inlined_call_operand.vmem [shape: f32[2,128], index: 2, kind: input, shape index: {}]   ;;  %s1381_s3 = inlined_call_operand.vmem [shape: bf16[512,128], index: 3, kind: output, shape index: {}]  }
   0x1 LB: > { %s881_s13 = sadd.s32 4294967295, %s1201_s12   ;;  %p885_p0 = scmp.ge.s32.totalorder %s1201_s12, 1  ;;  %s1201_s12 = sphi %s1223_s12, %s13_s12  }
   0x2   : > { %p138_p1 = scmp.lt.s32.totalorder %s1201_s12, 3 }
   0x4   : > { %p139_p2 = pnand %p885_p0, %p138_p1 }
   0x5   : > { %v1171_v0 = vld [vmem:[%s1379_s1] sm:$0xff] (!%p139_p2)   ;;  %s886_s16 = sshll.u32 (!%p139_p2), %s881_s13, 5  ;;  %v1172_v1 = vld [vmem:[%s1379_s1 + $0x8] sm:$0xff] (!%p139_p2)   ;;  %v1173_v2 = vld [vmem:[%s1379_s1 + $0x10] sm:$0xff] (!%p139_p2)   ;;  %v529_v24 = vlaneseq (!%p139_p2) }
   0x6   : > { %142 = sbr.rel (%p139_p2) target bundleno = 292 (0x124), region = 32  ;;  %p163_p3 = scmp.lt.s32.totalorder (!%p139_p2), %s886_s16, 63  ;;  %1099 = vmatprep.subr.bf16.mxu0 (!%p139_p2), %v1171_v0  ;;  %1147 = vmatprep.subr.bf16.mxu1 (!%p139_p2), %v1171_v0  ;;  %v1174_v3 = vld [vmem:[%s1379_s1 + $0x18] sm:$0xff] (!%p139_p2)   ;;  %v1175_v6 = vld [vmem:[%s1379_s1 + $0x20] sm:$0xff] (!%p139_p2)   ;;  %v1176_v7 = vld [vmem:[%s1379_s1 + $0x28] sm:$0xff] (!%p139_p2)  }
   0x7   : > { %1100 = vmatpush3.bf16.msra.mxu0 (!%p139_p2), %v1171_v0  ;;  %1155 = vmatpush3.bf16.msra.mxu1 (!%p139_p2), %v1171_v0  ;;  %v1177_v8 = vld [vmem:[%s1379_s1 + $0x30] sm:$0xff] (!%p139_p2)   ;;  %v1178_v9 = vld [vmem:[%s1379_s1 + $0x38] sm:$0xff] (!%p139_p2)   ;;  %v530_v25 = vshrl.u32 (!%p139_p2), %v529_v24, 7  ;;  %v528_v27 = vld [vmem:[%s1380_s2] sm:$0x3] (!%p139_p2) }
   0x8   : > { %1101 = vmatprep.subr.bf16.mxu0 (!%p139_p2), %v1172_v1  ;;  %1148 = vmatprep.subr.bf16.mxu1 (!%p139_p2), %v1172_v1 }
   0x9   : > { %v531_v26 = vsub.s32 (!%p139_p2), 0, %v530_v25  ;;  %v567_v28 = vsub.s32 (!%p139_p2), 1, %v530_v25 }
   0xb   : > { %1102 = vmatpush3.bf16.msra.mxu0 (!%p139_p2), %v1172_v1  ;;  %1156 = vmatpush3.bf16.msra.mxu1 (!%p139_p2), %v1172_v1  ;;  %v1284_v29 = vrot.slane (!%p139_p2), %v528_v27, %v531_v26  ;;  %v1286_v30 = vrot.slane (!%p139_p2), %v528_v27, %v567_v28 }
   0xc   : > { %1103 = vmatprep.subr.bf16.mxu0 (!%p139_p2), %v1173_v2  ;;  %1149 = vmatprep.subr.bf16.mxu1 (!%p139_p2), %v1173_v2 }
   0xd   : > { %s1383_s16 = smov (!%p163_p3, %s886_s16), 63 }
   0xe   : > { %s887_s21 = sshll.u32 %s1383_s16, 2 }
   0xf   : > { %s1248_s24 = scalar_lea.vmem %s1378_s0, %s887_s21  ;;  %1104 = vmatpush3.bf16.msra.mxu0 %v1173_v2  ;;  %1157 = vmatpush3.bf16.msra.mxu1 %v1173_v2  ;;  %s1311_s13 = scalar_lea.vmem %s1381_s3, %s887_s21 }
  0x10   : > { %v1179_v4 = vld [vmem:[%s1248_s24] sm:$0xff]   ;;  %1105 = vmatprep.subr.bf16.mxu0 %v1174_v3  ;;  %1150 = vmatprep.subr.bf16.mxu1 %v1174_v3  ;;  %v1181_v10 = vld [vmem:[%s1248_s24 + $0x8] sm:$0xff]   ;;  %v1183_v12 = vld [vmem:[%s1248_s24 + $0x10] sm:$0xff]  }
  0x11   : > { %v1180_v5 = vld [vmem:[%s1248_s24 + $0x40] sm:$0xff]   ;;  %1115 = vmatprep.mubr.bf16.mxu0 %v1179_v4  ;;  %v1182_v11 = vld [vmem:[%s1248_s24 + $0x48] sm:$0xff]   ;;  %v1184_v13 = vld [vmem:[%s1248_s24 + $0x50] sm:$0xff]  }
  0x12   : > { %1131 = vmatprep.mubr.bf16.mxu1 %v1180_v5  ;;  %v1185_v14 = vld [vmem:[%s1248_s24 + $0x18] sm:$0xff]   ;;  %v1187_v16 = vld [vmem:[%s1248_s24 + $0x20] sm:$0xff]   ;;  %v1189_v18 = vld [vmem:[%s1248_s24 + $0x28] sm:$0xff]  }
  0x13   : > { %1106 = vmatpush3.bf16.msra.mxu0 %v1174_v3  ;;  %1158 = vmatpush3.bf16.msra.mxu1 %v1174_v3  ;;  %v1186_v15 = vld [vmem:[%s1248_s24 + $0x58] sm:$0xff]   ;;  %v1188_v17 = vld [vmem:[%s1248_s24 + $0x60] sm:$0xff]   ;;  %v1190_v19 = vld [vmem:[%s1248_s24 + $0x68] sm:$0xff]  }
  0x14   : > { %1107 = vmatprep.subr.bf16.mxu0 %v1175_v6  ;;  %1151 = vmatprep.subr.bf16.mxu1 %v1175_v6  ;;  %v1191_v20 = vld [vmem:[%s1248_s24 + $0x30] sm:$0xff]   ;;  %v1193_v22 = vld [vmem:[%s1248_s24 + $0x38] sm:$0xff]  }
  0x15   : > { %v1192_v21 = vld [vmem:[%s1248_s24 + $0x70] sm:$0xff]   ;;  %v1194_v23 = vld [vmem:[%s1248_s24 + $0x78] sm:$0xff]  }
  0x17   : > { %1108 = vmatpush3.bf16.msra.mxu0 %v1175_v6  ;;  %1159 = vmatpush3.bf16.msra.mxu1 %v1175_v6 }
  0x18   : > { %1109 = vmatprep.subr.bf16.mxu0 %v1176_v7  ;;  %1152 = vmatprep.subr.bf16.mxu1 %v1176_v7 }
  0x1b   : > { %1110 = vmatpush3.bf16.msra.mxu0 %v1176_v7  ;;  %1160 = vmatpush3.bf16.msra.mxu1 %v1176_v7 }
  0x1c   : > { %1111 = vmatprep.subr.bf16.mxu0 %v1177_v8  ;;  %1153 = vmatprep.subr.bf16.mxu1 %v1177_v8 }
  0x1f   : > { %1112 = vmatpush3.bf16.msra.mxu0 %v1177_v8  ;;  %1161 = vmatpush3.bf16.msra.mxu1 %v1177_v8 }
  0x20   : > { %1113 = vmatprep.subr.bf16.mxu0 %v1178_v9  ;;  %1154 = vmatprep.subr.bf16.mxu1 %v1178_v9 }
  0x23   : > { %1114 = vmatpush3.bf16.msra.mxu0 %v1178_v9  ;;  %1162 = vmatpush3.bf16.msra.mxu1 %v1178_v9 }
  0x26   : > { %1116 = vmatmul.mubr.bf16.vlgmr.msra.gmra.mrb[0].mxu0 %v1181_v10  ;;  %1132 = vmatmul.mubr.bf16.vlgmr.msra.gmra.mrb[0].mxu1 %v1182_v11 }
  0x27   : > { %1119 = vmatprep.mubr.bf16.mxu0 %v1183_v12  ;;  %1135 = vmatprep.mubr.bf16.mxu1 %v1184_v13 }
  0x2e   : > { %1120 = vmatmul.mubr.bf16.gmra.mrb[4].mxu0 %v1185_v14  ;;  %1136 = vmatmul.mubr.bf16.gmra.mrb[4].mxu1 %v1186_v15 }
  0x2f   : > { %1123 = vmatprep.mubr.bf16.mxu0 %v1187_v16  ;;  %1139 = vmatprep.mubr.bf16.mxu1 %v1188_v17 }
  0x36   : > { %1124 = vmatmul.mubr.bf16.gmra.mrb[8].mxu0 %v1189_v18  ;;  %1140 = vmatmul.mubr.bf16.gmra.mrb[8].mxu1 %v1190_v19 }
  0x37   : > { %1127 = vmatprep.mubr.bf16.mxu0 %v1191_v20  ;;  %1143 = vmatprep.mubr.bf16.mxu1 %v1192_v21 }
  0x3e   : > { %1128 = vmatmul.mubr.bf16.gmra.mrb[12].mxu0 %v1193_v22  ;;  %1144 = vmatmul.mubr.bf16.gmra.mrb[12].mxu1 %v1194_v23 }
  0xf9   : > { %v1117_v31 = vpop.f32.mrb[0].mxu0  ;;  %v1133_v32 = vpop.f32.mrb[0].mxu1 }
  0xfa   : > { %v535_v33 = vmul.f32 %v1117_v31, %v1284_v29  ;;  %v551_v34 = vmul.f32 %v1133_v32, %v1284_v29  ;;  %v401_v35 = vpop.f32.mrb[1].mxu0  ;;  %v465_v36 = vpop.f32.mrb[1].mxu1 }
  0xfb   : > { %v533_v37 = vmul.f32 %v1284_v29, %v401_v35  ;;  %v549_v38 = vmul.f32 %v1284_v29, %v465_v36  ;;  %v1118_v39 = vpop.f32.mrb[2].mxu0  ;;  %v1134_v40 = vpop.f32.mrb[2].mxu1 }
  0xfc   : > { %v571_v41 = vadd.f32 %v1286_v30, %v535_v33  ;;  %v587_v42 = vadd.f32 %v1286_v30, %v551_v34  ;;  %v536_v43 = vmul.f32 %v1118_v39, %v1284_v29  ;;  %v552_v44 = vmul.f32 %v1134_v40, %v1284_v29  ;;  %v404_v45 = vpop.f32.mrb[3].mxu0  ;;  %v468_v46 = vpop.f32.mrb[3].mxu1 }
  0xfd   : > { %v569_v47 = vadd.f32 %v1286_v30, %v533_v37  ;;  %v585_v48 = vadd.f32 %v1286_v30, %v549_v38  ;;  %v534_v49 = vmul.f32 %v1284_v29, %v404_v45  ;;  %v550_v50 = vmul.f32 %v1284_v29, %v468_v46 }
  0xfe   : > { %v603_v51 = vmul.f32 0.2, %v571_v41  ;;  %v619_v52 = vmul.f32 0.2, %v587_v42  ;;  %v572_v53 = vadd.f32 %v1286_v30, %v536_v43  ;;  %v588_v54 = vadd.f32 %v1286_v30, %v552_v44 }
  0xff   : > { %v601_v55 = vmul.f32 0.2, %v569_v47  ;;  %v617_v56 = vmul.f32 0.2, %v585_v48  ;;  %v570_v57 = vadd.f32 %v1286_v30, %v534_v49  ;;  %v586_v58 = vadd.f32 %v1286_v30, %v550_v50 }
 0x100   : > { %v635_v59 = vmax.f32 %v571_v41, %v603_v51  ;;  %v651_v60 = vmax.f32 %v587_v42, %v619_v52  ;;  %v604_v61 = vmul.f32 0.2, %v572_v53  ;;  %v620_v62 = vmul.f32 0.2, %v588_v54 }
 0x101   : > { %v633_v63 = vmax.f32 %v569_v47, %v601_v55  ;;  %v649_v0 = vmax.f32 %v585_v48, %v617_v56  ;;  %v602_v1 = vmul.f32 0.2, %v570_v57  ;;  %v618_v2 = vmul.f32 0.2, %v586_v58  ;;  %v1121_v3 = vpop.f32.mrb[4].mxu0  ;;  %v1137_v4 = vpop.f32.mrb[4].mxu1 }
 0x102   : > { %v636_v5 = vmax.f32 %v572_v53, %v604_v61  ;;  %v652_v6 = vmax.f32 %v588_v54, %v620_v62  ;;  %v539_v7 = vmul.f32 %v1121_v3, %v1284_v29  ;;  %v555_v8 = vmul.f32 %v1137_v4, %v1284_v29  ;;  %v417_v9 = vpop.f32.mrb[5].mxu0  ;;  %v481_v10 = vpop.f32.mrb[5].mxu1 }
 0x103   : > { %v634_v11 = vmax.f32 %v570_v57, %v602_v1  ;;  %v650_v12 = vmax.f32 %v586_v58, %v618_v2  ;;  %v537_v13 = vmul.f32 %v1284_v29, %v417_v9  ;;  %v553_v14 = vmul.f32 %v1284_v29, %v481_v10  ;;  %v1122_v15 = vpop.f32.mrb[6].mxu0  ;;  %v1138_v16 = vpop.f32.mrb[6].mxu1 }
 0x104   : > { %v988_v17 = vpack.c.bf16 %v636_v5, %v635_v59  ;;  %v1028_v18 = vpack.c.bf16 %v652_v6, %v651_v60  ;;  %v575_v19 = vadd.f32 %v1286_v30, %v539_v7  ;;  %v591_v20 = vadd.f32 %v1286_v30, %v555_v8  ;;  %v420_v21 = vpop.f32.mrb[7].mxu0  ;;  %v484_v22 = vpop.f32.mrb[7].mxu1 }
 0x105   : > { %v983_v23 = vpack.c.bf16 %v634_v11, %v633_v63  ;;  %v1023_v24 = vpack.c.bf16 %v650_v12, %v649_v0  ;;  %v573_v25 = vadd.f32 %v1286_v30, %v537_v13  ;;  %v589_v26 = vadd.f32 %v1286_v30, %v553_v14 }
 0x106   : > { %1060 = vst [vmem:[%s1311_s13 + $0x8] sm:$0xff] %v988_v17   ;;  %1068 = vst [vmem:[%s1311_s13 + $0x48] sm:$0xff] %v1028_v18   ;;  %v607_v27 = vmul.f32 0.2, %v575_v19  ;;  %v623_v28 = vmul.f32 0.2, %v591_v20  ;;  %v540_v31 = vmul.f32 %v1122_v15, %v1284_v29  ;;  %v556_v32 = vmul.f32 %v1138_v16, %v1284_v29 }
 0x107   : > { %984 = vst [vmem:[%s1311_s13] sm:$0xff] %v983_v23   ;;  %1067 = vst [vmem:[%s1311_s13 + $0x40] sm:$0xff] %v1023_v24   ;;  %v605_v33 = vmul.f32 0.2, %v573_v25  ;;  %v538_v34 = vmul.f32 %v1284_v29, %v420_v21  ;;  %v554_v35 = vmul.f32 %v1284_v29, %v484_v22  ;;  %v621_v37 = vmul.f32 0.2, %v589_v26 }
 0x108   : > { %v639_v36 = vmax.f32 %v575_v19, %v607_v27  ;;  %v576_v38 = vadd.f32 %v1286_v30, %v540_v31  ;;  %v592_v39 = vadd.f32 %v1286_v30, %v556_v32  ;;  %v655_v40 = vmax.f32 %v591_v20, %v623_v28 }
 0x109   : > { %v637_v41 = vmax.f32 %v573_v25, %v605_v33  ;;  %v574_v42 = vadd.f32 %v1286_v30, %v538_v34  ;;  %v590_v43 = vadd.f32 %v1286_v30, %v554_v35  ;;  %v1125_v44 = vpop.f32.mrb[8].mxu0  ;;  %v1141_v45 = vpop.f32.mrb[8].mxu1  ;;  %v653_v0 = vmax.f32 %v589_v26, %v621_v37 }
 0x10a   : > { %v608_v46 = vmul.f32 0.2, %v576_v38  ;;  %v624_v47 = vmul.f32 0.2, %v592_v39  ;;  %v543_v48 = vmul.f32 %v1125_v44, %v1284_v29  ;;  %v559_v49 = vmul.f32 %v1141_v45, %v1284_v29  ;;  %v433_v50 = vpop.f32.mrb[9].mxu0  ;;  %v497_v51 = vpop.f32.mrb[9].mxu1 }
 0x10b   : > { %v606_v52 = vmul.f32 0.2, %v574_v42  ;;  %v622_v53 = vmul.f32 0.2, %v590_v43  ;;  %v541_v54 = vmul.f32 %v1284_v29, %v433_v50  ;;  %v557_v55 = vmul.f32 %v1284_v29, %v497_v51  ;;  %v1126_v56 = vpop.f32.mrb[10].mxu0  ;;  %v1142_v57 = vpop.f32.mrb[10].mxu1 }
 0x10c   : > { %v640_v58 = vmax.f32 %v576_v38, %v608_v46  ;;  %v656_v59 = vmax.f32 %v592_v39, %v624_v47  ;;  %v579_v60 = vadd.f32 %v1286_v30, %v543_v48  ;;  %v595_v61 = vadd.f32 %v1286_v30, %v559_v49  ;;  %v436_v62 = vpop.f32.mrb[11].mxu0  ;;  %v500_v63 = vpop.f32.mrb[11].mxu1 }
 0x10d   : > { %v638_v1 = vmax.f32 %v574_v42, %v606_v52  ;;  %v654_v2 = vmax.f32 %v590_v43, %v622_v53  ;;  %v577_v3 = vadd.f32 %v1286_v30, %v541_v54  ;;  %v593_v6 = vadd.f32 %v1286_v30, %v557_v55 }
 0x10e   : > { %v998_v4 = vpack.c.bf16 %v640_v58, %v639_v36  ;;  %v1038_v5 = vpack.c.bf16 %v656_v59, %v655_v40  ;;  %v611_v9 = vmul.f32 0.2, %v579_v60  ;;  %v627_v10 = vmul.f32 0.2, %v595_v61 }
 0x10f   : > { %v993_v7 = vpack.c.bf16 %v638_v1, %v637_v41  ;;  %v1033_v8 = vpack.c.bf16 %v654_v2, %v653_v0  ;;  %v544_v11 = vmul.f32 %v1126_v56, %v1284_v29  ;;  %v560_v12 = vmul.f32 %v1142_v57, %v1284_v29 }
 0x110   : > { %1062 = vst [vmem:[%s1311_s13 + $0x18] sm:$0xff] %v998_v4   ;;  %1070 = vst [vmem:[%s1311_s13 + $0x58] sm:$0xff] %v1038_v5   ;;  %v609_v13 = vmul.f32 0.2, %v577_v3  ;;  %v542_v14 = vmul.f32 %v1284_v29, %v436_v62  ;;  %v558_v15 = vmul.f32 %v1284_v29, %v500_v63  ;;  %v625_v18 = vmul.f32 0.2, %v593_v6 }
 0x111   : > { %1061 = vst [vmem:[%s1311_s13 + $0x10] sm:$0xff] %v993_v7   ;;  %1069 = vst [vmem:[%s1311_s13 + $0x50] sm:$0xff] %v1033_v8   ;;  %v1129_v16 = vpop.f32.mrb[12].mxu0  ;;  %v1145_v17 = vpop.f32.mrb[12].mxu1  ;;  %v580_v19 = vadd.f32 %v1286_v30, %v544_v11  ;;  %v596_v20 = vadd.f32 %v1286_v30, %v560_v12  ;;  %v643_v32 = vmax.f32 %v579_v60, %v611_v9 }
 0x112   : > { %v547_v21 = vmul.f32 %v1129_v16, %v1284_v29  ;;  %v449_v22 = vpop.f32.mrb[13].mxu0  ;;  %v513_v23 = vpop.f32.mrb[13].mxu1  ;;  %v578_v24 = vadd.f32 %v1286_v30, %v542_v14  ;;  %v594_v25 = vadd.f32 %v1286_v30, %v558_v15  ;;  %v563_v26 = vmul.f32 %v1145_v17, %v1284_v29 }
 0x113   : > { %v545_v27 = vmul.f32 %v1284_v29, %v449_v22  ;;  %v1130_v28 = vpop.f32.mrb[14].mxu0  ;;  %v1146_v31 = vpop.f32.mrb[14].mxu1  ;;  %v659_v33 = vmax.f32 %v595_v61, %v627_v10  ;;  %v612_v34 = vmul.f32 0.2, %v580_v19  ;;  %v628_v35 = vmul.f32 0.2, %v596_v20 }
 0x114   : > { %v452_v36 = vpop.f32.mrb[15].mxu0  ;;  %v516_v37 = vpop.f32.mrb[15].mxu1  ;;  %v641_v38 = vmax.f32 %v577_v3, %v609_v13  ;;  %v610_v39 = vmul.f32 0.2, %v578_v24  ;;  %v626_v40 = vmul.f32 0.2, %v594_v25  ;;  %v561_v41 = vmul.f32 %v1284_v29, %v513_v23 }
 0x115   : > { %v657_v42 = vmax.f32 %v593_v6, %v625_v18  ;;  %v644_v43 = vmax.f32 %v580_v19, %v612_v34  ;;  %v660_v44 = vmax.f32 %v596_v20, %v628_v35  ;;  %v583_v45 = vadd.f32 %v1286_v30, %v547_v21 }
 0x116   : > { %v642_v46 = vmax.f32 %v578_v24, %v610_v39  ;;  %v658_v47 = vmax.f32 %v594_v25, %v626_v40  ;;  %v599_v48 = vadd.f32 %v1286_v30, %v563_v26  ;;  %v581_v49 = vadd.f32 %v1286_v30, %v545_v27 }
 0x117   : > { %v1008_v50 = vpack.c.bf16 %v644_v43, %v643_v32  ;;  %v1048_v51 = vpack.c.bf16 %v660_v44, %v659_v33  ;;  %v597_v54 = vadd.f32 %v1286_v30, %v561_v41  ;;  %v548_v55 = vmul.f32 %v1130_v28, %v1284_v29 }
 0x118   : > { %v1003_v52 = vpack.c.bf16 %v642_v46, %v641_v38  ;;  %v1043_v53 = vpack.c.bf16 %v658_v47, %v657_v42  ;;  %v564_v56 = vmul.f32 %v1146_v31, %v1284_v29  ;;  %v546_v57 = vmul.f32 %v1284_v29, %v452_v36 }
 0x119   : > { %1064 = vst [vmem:[%s1311_s13 + $0x28] sm:$0xff] %v1008_v50   ;;  %1072 = vst [vmem:[%s1311_s13 + $0x68] sm:$0xff] %v1048_v51   ;;  %v562_v58 = vmul.f32 %v1284_v29, %v516_v37  ;;  %v615_v59 = vmul.f32 0.2, %v583_v45  ;;  %v631_v60 = vmul.f32 0.2, %v599_v48  ;;  %v584_v62 = vadd.f32 %v1286_v30, %v548_v55 }
 0x11a   : > { %1063 = vst [vmem:[%s1311_s13 + $0x20] sm:$0xff] %v1003_v52   ;;  %1071 = vst [vmem:[%s1311_s13 + $0x60] sm:$0xff] %v1043_v53   ;;  %v613_v61 = vmul.f32 0.2, %v581_v49  ;;  %v600_v63 = vadd.f32 %v1286_v30, %v564_v56  ;;  %v582_v0 = vadd.f32 %v1286_v30, %v546_v57  ;;  %v629_v2 = vmul.f32 0.2, %v597_v54 }
 0x11b   : > { %v598_v1 = vadd.f32 %v1286_v30, %v562_v58  ;;  %v616_v3 = vmul.f32 0.2, %v584_v62  ;;  %v647_v29 = vmax.f32 %v583_v45, %v615_v59  ;;  %v663_v6 = vmax.f32 %v599_v48, %v631_v60 }
 0x11c   : > { %v632_v4 = vmul.f32 0.2, %v600_v63  ;;  %v614_v5 = vmul.f32 0.2, %v582_v0  ;;  %v645_v8 = vmax.f32 %v581_v49, %v613_v61  ;;  %v661_v12 = vmax.f32 %v597_v54, %v629_v2 }
 0x11d   : > { %v630_v7 = vmul.f32 0.2, %v598_v1  ;;  %v648_v9 = vmax.f32 %v584_v62, %v616_v3 }
 0x11e   : > { %v664_v10 = vmax.f32 %v600_v63, %v632_v4  ;;  %v646_v11 = vmax.f32 %v582_v0, %v614_v5 }
 0x11f   : > { %v662_v13 = vmax.f32 %v598_v1, %v630_v7  ;;  %v1018_v14 = vpack.c.bf16 %v648_v9, %v647_v29 }
 0x120   : > { %v1058_v15 = vpack.c.bf16 %v664_v10, %v663_v6  ;;  %v1013_v30 = vpack.c.bf16 %v646_v11, %v645_v8 }
 0x121   : > { %v1053_v16 = vpack.c.bf16 %v662_v13, %v661_v12  ;;  %1066 = vst [vmem:[%s1311_s13 + $0x38] sm:$0xff] %v1018_v14  }
 0x122   : > { %1074 = vst [vmem:[%s1311_s13 + $0x78] sm:$0xff] %v1058_v15   ;;  %1065 = vst [vmem:[%s1311_s13 + $0x30] sm:$0xff] %v1013_v30  }
 0x123   : > { %1073 = vst [vmem:[%s1311_s13 + $0x70] sm:$0xff] %v1053_v16  }
 0x124 PF: > { %s13_s12 = sadd.s32 1, %s1201_s12  }
 0x125   : > { %p10_p4 = scmp.ge.s32.totalorder %s13_s12, 4  }
 0x127   :  { %12 = sbr.rel (!%p10_p4) target bundleno = 1 (0x1), region = 62 }

// kernel: dnet_baw_forward.8
= control target key start
LH: loop header
LB: loop body
LE: loop exit
PB: predicated region body
PF: predicated region fallthrough
CT: control target
= control target key end

     0   :  { %s736_s12 = smov 0   ;;  %s818_s0 = inlined_call_operand.vmem [shape: bf16[128,256], index: 0, kind: input, shape index: {}]   ;;  %s819_s1 = inlined_call_operand.vmem [shape: bf16[256,128], index: 1, kind: input, shape index: {}]   ;;  %s820_s2 = inlined_call_operand.vmem [shape: f32[2,128], index: 2, kind: input, shape index: {}]   ;;  %s821_s3 = inlined_call_operand.vmem [shape: bf16[128,128], index: 3, kind: output, shape index: {}]  }
   0x1 LB: > { %s540_s13 = sadd.s32 4294967295, %s714_s12   ;;  %p544_p0 = scmp.ge.s32.totalorder %s714_s12, 1  ;;  %s714_s12 = sphi %s736_s12, %s13_s12  }
   0x2   : > { %p139_p1 = scmp.lt.s32.totalorder %s714_s12, 3 }
   0x4   : > { %p140_p2 = pnand %p544_p0, %p139_p1 }
   0x5   : > { %v680_v0 = vld [vmem:[%s819_s1 + $0x40] sm:$0xff] (!%p140_p2)   ;;  %s545_s16 = sshll.u32 (!%p140_p2), %s540_s13, 3  ;;  %v682_v2 = vld [vmem:[%s819_s1 + $0x48] sm:$0xff] (!%p140_p2)   ;;  %v684_v4 = vld [vmem:[%s819_s1 + $0x50] sm:$0xff] (!%p140_p2)   ;;  %v420_v24 = vlaneseq (!%p140_p2) }
   0x6   : > { %143 = sbr.rel (%p140_p2) target bundleno = 271 (0x10f), region = 32  ;;  %v681_v1 = vld [vmem:[%s819_s1] sm:$0xff] (!%p140_p2)   ;;  %616 = vmatprep.subr.bf16.mxu0 (!%p140_p2), %v680_v0  ;;  %656 = vmatprep.subr.bf16.mxu1 (!%p140_p2), %v680_v0  ;;  %v683_v3 = vld [vmem:[%s819_s1 + $0x8] sm:$0xff] (!%p140_p2)   ;;  %p165_p3 = scmp.lt.s32.totalorder (!%p140_p2), %s545_s16, 15  ;;  %v685_v5 = vld [vmem:[%s819_s1 + $0x10] sm:$0xff] (!%p140_p2)  }
   0x7   : > { %617 = vmatpush3.bf16.msra.mxu0 (!%p140_p2), %v681_v1  ;;  %664 = vmatpush3.bf16.msra.mxu1 (!%p140_p2), %v681_v1  ;;  %v686_v6 = vld [vmem:[%s819_s1 + $0x58] sm:$0xff] (!%p140_p2)   ;;  %v688_v8 = vld [vmem:[%s819_s1 + $0x60] sm:$0xff] (!%p140_p2)   ;;  %v690_v10 = vld [vmem:[%s819_s1 + $0x68] sm:$0xff] (!%p140_p2)   ;;  %v421_v25 = vshrl.u32 (!%p140_p2), %v420_v24, 7 }
   0x8   : > { %618 = vmatprep.subr.bf16.mxu0 (!%p140_p2), %v682_v2  ;;  %657 = vmatprep.subr.bf16.mxu1 (!%p140_p2), %v682_v2  ;;  %v687_v7 = vld [vmem:[%s819_s1 + $0x18] sm:$0xff] (!%p140_p2)   ;;  %v689_v9 = vld [vmem:[%s819_s1 + $0x20] sm:$0xff] (!%p140_p2)   ;;  %v691_v13 = vld [vmem:[%s819_s1 + $0x28] sm:$0xff] (!%p140_p2)  }
   0x9   : > { %v692_v14 = vld [vmem:[%s819_s1 + $0x70] sm:$0xff] (!%p140_p2)   ;;  %v694_v16 = vld [vmem:[%s819_s1 + $0x78] sm:$0xff] (!%p140_p2)   ;;  %v422_v26 = vsub.s32 (!%p140_p2), 0, %v421_v25  ;;  %v419_v27 = vld [vmem:[%s820_s2] sm:$0x3] (!%p140_p2)  ;;  %v434_v28 = vsub.s32 (!%p140_p2), 1, %v421_v25 }
   0xa   : > { %v693_v15 = vld [vmem:[%s819_s1 + $0x30] sm:$0xff] (!%p140_p2)   ;;  %v695_v17 = vld [vmem:[%s819_s1 + $0x38] sm:$0xff] (!%p140_p2)  }
   0xb   : > { %619 = vmatpush3.bf16.msra.mxu0 (!%p140_p2), %v683_v3  ;;  %665 = vmatpush3.bf16.msra.mxu1 (!%p140_p2), %v683_v3  ;;  %v423_v31 = vrot.slane (!%p140_p2), %v419_v27, %v422_v26  ;;  %v435_v38 = vrot.slane (!%p140_p2), %v419_v27, %v434_v28 }
   0xc   : > { %620 = vmatprep.subr.bf16.mxu0 (!%p140_p2), %v684_v4  ;;  %658 = vmatprep.subr.bf16.mxu1 (!%p140_p2), %v684_v4 }
   0xd   : > { %s823_s16 = smov (!%p165_p3, %s545_s16), 15 }
   0xe   : > { %s584_s4 = sshll.u32 %s823_s16, 3  ;;  %s549_s28 = sshll.u32 %s823_s16, 2 }
   0xf   : > { %621 = vmatpush3.bf16.msra.mxu0 %v685_v5  ;;  %666 = vmatpush3.bf16.msra.mxu1 %v685_v5  ;;  %s777_s9 = scalar_lea.vmem %s818_s0, %s584_s4  ;;  %s175_s4 = scalar_lea.vmem %s821_s3, %s549_s28 }
  0x10   : > { %622 = vmatprep.subr.bf16.mxu0 %v686_v6  ;;  %659 = vmatprep.subr.bf16.mxu1 %v686_v6  ;;  %v698_v11 = vld [vmem:[%s777_s9 + $0x4] ss:$8 sps:$4 sm:$0xff]   ;;  %v696_v18 = vld [vmem:[%s777_s9] ss:$8 sps:$4 sm:$0xff]   ;;  %v702_v20 = vld [vmem:[%s777_s9 + $0x14] ss:$8 sps:$4 sm:$0xff]  }
  0x11   : > { %v701_v12 = vld [vmem:[%s777_s9 + $0x24] ss:$8 sps:$4 sm:$0xff]   ;;  %386 = vmatprep.mubr.bf16.mxu0 %v698_v11  ;;  %v699_v19 = vld [vmem:[%s777_s9 + $0x20] ss:$8 sps:$4 sm:$0xff]   ;;  %v704_v21 = vld [vmem:[%s777_s9 + $0x34] ss:$8 sps:$4 sm:$0xff]  }
  0x12   : > { %402 = vmatprep.mubr.bf16.mxu1 %v701_v12  ;;  %v706_v22 = vld [vmem:[%s777_s9 + $0x10] ss:$8 sps:$4 sm:$0xff]  }
  0x13   : > { %623 = vmatpush3.bf16.msra.mxu0 %v687_v7  ;;  %667 = vmatpush3.bf16.msra.mxu1 %v687_v7  ;;  %v707_v23 = vld [vmem:[%s777_s9 + $0x30] ss:$8 sps:$4 sm:$0xff]  }
  0x14   : > { %624 = vmatprep.subr.bf16.mxu0 %v688_v8  ;;  %660 = vmatprep.subr.bf16.mxu1 %v688_v8 }
  0x17   : > { %625 = vmatpush3.bf16.msra.mxu0 %v689_v9  ;;  %668 = vmatpush3.bf16.msra.mxu1 %v689_v9 }
  0x18   : > { %626 = vmatprep.subr.bf16.mxu0 %v690_v10  ;;  %661 = vmatprep.subr.bf16.mxu1 %v690_v10 }
  0x1b   : > { %627 = vmatpush3.bf16.msra.mxu0 %v691_v13  ;;  %669 = vmatpush3.bf16.msra.mxu1 %v691_v13 }
  0x1c   : > { %628 = vmatprep.subr.bf16.mxu0 %v692_v14  ;;  %662 = vmatprep.subr.bf16.mxu1 %v692_v14 }
  0x1f   : > { %629 = vmatpush3.bf16.msra.mxu0 %v693_v15  ;;  %670 = vmatpush3.bf16.msra.mxu1 %v693_v15 }
  0x20   : > { %630 = vmatprep.subr.bf16.mxu0 %v694_v16  ;;  %663 = vmatprep.subr.bf16.mxu1 %v694_v16 }
  0x23   : > { %631 = vmatpush3.bf16.msra.mxu0 %v695_v17  ;;  %671 = vmatpush3.bf16.msra.mxu1 %v695_v17 }
  0x26   : > { %387 = vmatmul.mubr.bf16.vlgmr.msra.gmra.mrb[0].mxu0 %v696_v18  ;;  %403 = vmatmul.mubr.bf16.vlgmr.msra.gmra.mrb[0].mxu1 %v699_v19 }
  0x27   : > { %394 = vmatprep.mubr.bf16.mxu0 %v702_v20  ;;  %410 = vmatprep.mubr.bf16.mxu1 %v704_v21 }
  0x2e   : > { %395 = vmatmul.mubr.bf16.gmra.mrb[4].mxu0 %v706_v22  ;;  %411 = vmatmul.mubr.bf16.gmra.mrb[4].mxu1 %v707_v23 }
  0xf9   : > { %v632_v29 = vpop.f32.mrb[0].mxu0  ;;  %v644_v30 = vpop.f32.mrb[0].mxu1 }
  0xfa   : > { %v633_v32 = vpop.f32.mrb[1].mxu0  ;;  %v645_v33 = vpop.f32.mrb[1].mxu1 }
  0xfb   : > { %v634_v34 = vadd.f32 %v633_v32, %v632_v29  ;;  %v646_v35 = vadd.f32 %v645_v33, %v644_v30  ;;  %v635_v36 = vpop.f32.mrb[2].mxu0  ;;  %v647_v37 = vpop.f32.mrb[2].mxu1 }
  0xfc   : > { %v636_v39 = vpop.f32.mrb[3].mxu0  ;;  %v648_v40 = vpop.f32.mrb[3].mxu1 }
  0xfd   : > { %v424_v41 = vmul.f32 %v634_v34, %v423_v31  ;;  %v428_v42 = vmul.f32 %v646_v35, %v423_v31  ;;  %v637_v43 = vadd.f32 %v636_v39, %v635_v36  ;;  %v649_v44 = vadd.f32 %v648_v40, %v647_v37 }
  0xff   : > { %v425_v45 = vmul.f32 %v637_v43, %v423_v31  ;;  %v429_v46 = vmul.f32 %v649_v44, %v423_v31  ;;  %v436_v47 = vadd.f32 %v435_v38, %v424_v41  ;;  %v440_v48 = vadd.f32 %v435_v38, %v428_v42 }
 0x101   : > { %v437_v49 = vadd.f32 %v435_v38, %v425_v45  ;;  %v441_v50 = vadd.f32 %v435_v38, %v429_v46  ;;  %v638_v51 = vpop.f32.mrb[4].mxu0  ;;  %v650_v52 = vpop.f32.mrb[4].mxu1 }
 0x102   : > { %v639_v53 = vpop.f32.mrb[5].mxu0  ;;  %v651_v54 = vpop.f32.mrb[5].mxu1 }
 0x103   : > { %v596_v55 = vpack.c.bf16 %v437_v49, %v436_v47  ;;  %v606_v56 = vpack.c.bf16 %v441_v50, %v440_v48  ;;  %v640_v57 = vadd.f32 %v639_v53, %v638_v51  ;;  %v652_v58 = vadd.f32 %v651_v54, %v650_v52  ;;  %v641_v59 = vpop.f32.mrb[6].mxu0  ;;  %v653_v60 = vpop.f32.mrb[6].mxu1 }
 0x104   : > { %v642_v61 = vpop.f32.mrb[7].mxu0  ;;  %v654_v62 = vpop.f32.mrb[7].mxu1 }
 0x105   : > { %597 = vst [vmem:[%s175_s4] sm:$0xff] %v596_v55   ;;  %614 = vst [vmem:[%s175_s4 + $0x10] sm:$0xff] %v606_v56   ;;  %v426_v63 = vmul.f32 %v640_v57, %v423_v31  ;;  %v430_v0 = vmul.f32 %v652_v58, %v423_v31  ;;  %v643_v1 = vadd.f32 %v642_v61, %v641_v59 }
 0x106   : > { %v655_v2 = vadd.f32 %v654_v62, %v653_v60 }
 0x107   : > { %v427_v3 = vmul.f32 %v643_v1, %v423_v31  ;;  %v438_v5 = vadd.f32 %v435_v38, %v426_v63  ;;  %v442_v6 = vadd.f32 %v435_v38, %v430_v0 }
 0x108   : > { %v431_v4 = vmul.f32 %v655_v2, %v423_v31 }
 0x109   : > { %v439_v7 = vadd.f32 %v435_v38, %v427_v3 }
 0x10a   : > { %v443_v8 = vadd.f32 %v435_v38, %v431_v4 }
 0x10b   : > { %v601_v9 = vpack.c.bf16 %v439_v7, %v438_v5 }
 0x10c   : > { %v611_v10 = vpack.c.bf16 %v443_v8, %v442_v6 }
 0x10d   : > { %613 = vst [vmem:[%s175_s4 + $0x8] sm:$0xff] %v601_v9  }
 0x10e   : > { %615 = vst [vmem:[%s175_s4 + $0x18] sm:$0xff] %v611_v10  }
 0x10f PF: > { %s13_s12 = sadd.s32 1, %s714_s12  }
 0x110   : > { %p10_p4 = scmp.ge.s32.totalorder %s13_s12, 4  }
 0x112   :  { %12 = sbr.rel (!%p10_p4) target bundleno = 1 (0x1), region = 62 }

// kernel: dnet_baw_forward.9
= control target key start
LH: loop header
LB: loop body
LE: loop exit
PB: predicated region body
PF: predicated region fallthrough
CT: control target
= control target key end

     0   :  { %s5428_s26 = smov 0   ;;  %s5972_s0 = inlined_call_operand.vmem [shape: bf16[2,16,512], index: 0, kind: input, shape index: {}]   ;;  %s5973_s1 = inlined_call_operand.vmem [shape: f32[2,1,16], index: 1, kind: input, shape index: {}]   ;;  %s5974_s2 = inlined_call_operand.vmem [shape: bf16[512,64], index: 2, kind: input, shape index: {}]   ;;  %s5975_s3 = inlined_call_operand.vmem [shape: f32[2,64], index: 3, kind: input, shape index: {}]   ;;  %s5976_s4 = inlined_call_operand.vmem [shape: f32[64,16], index: 4, kind: input, shape index: {}]   ;;  %s5977_s5 = inlined_call_operand.vmem [shape: f32[2,16], index: 5, kind: input, shape index: {}]   ;;  %s5978_s6 = inlined_call_operand.vmem [shape: f32[9,16,16], index: 6, kind: input, shape index: {}]   ;;  %s5979_s7 = inlined_call_operand.vmem [shape: f32[9,16,16], index: 7, kind: input, shape index: {}]   ;;  %s5980_s8 = inlined_call_operand.vmem [shape: f32[2,16], index: 8, kind: input, shape index: {}]   ;;  %s5981_s9 = inlined_call_operand.vmem [shape: f32[9,16,64], index: 9, kind: input, shape index: {}]   ;;  %s5982_s10 = inlined_call_operand.vmem [shape: f32[2,64], index: 10, kind: input, shape index: {}]   ;;  %s5983_s11 = inlined_call_operand.vmem [shape: f32[16,64], index: 11, kind: input, shape index: {}]   ;;  %s5984_s12 = inlined_call_operand.vmem [shape: f32[64,64], index: 12, kind: input, shape index: {}]   ;;  %s5985_s13 = inlined_call_operand.vmem [shape: f32[2,64], index: 13, kind: input, shape index: {}]   ;;  %s5986_s14 = inlined_call_operand.vmem [shape: f32[16,64], index: 14, kind: input, shape index: {}]   ;;  %s5987_s15 = inlined_call_operand.<no memory space> [shape: f32[1,1], index: 15, kind: input, shape index: {}]   ;;  %s5988_s16 = inlined_call_operand.vmem [shape: f32[2,1,1], index: 16, kind: output, shape index: {0}]   ;;  %s5989_s17 = inlined_call_operand.vmem [shape: f32[2,1,1], index: 17, kind: output, shape index: {1}]  }
   0x1   :  { %5990 = sst [smem:[#allocation3_spill]] %s5972_s0  ;;  %v23_v0 = vstv %s5987_s15 }
   0x2   :  { %5991 = sst [smem:[#allocation4_spill]] %s5973_s1  ;;  %24 = vst [vmem:[#allocation2] sm:$0x1] %v23_v0 }
   0x3 LB: > { %s4375_s27 = sadd.s32 4294967295, %s5330_s26   ;;  %p4379_p0 = scmp.ge.s32.totalorder %s5330_s26, 1  ;;  %s5330_s26 = sphi %s5428_s26, %s30_s26  }
   0x4   : > { %p500_p1 = scmp.lt.s32.totalorder %s5330_s26, 3 }
   0x6   : > { %p501_p2 = pnand %p4379_p0, %p500_p1 }
   0x7   : > { %v5278_v1 = vld [vmem:[%s5974_s2 + $0x40] sm:$0xff] (!%p501_p2)   ;;  %v5282_v5 = vld [vmem:[%s5974_s2 + $0x48] sm:$0xff] (!%p501_p2)   ;;  %v5286_v9 = vld [vmem:[%s5974_s2 + $0x50] sm:$0xff] (!%p501_p2)   ;;  %p556_p3 = scmp.lt.s32.totalorder (!%p501_p2), %s4375_s27, 1  ;;  %s5992_s1 = sld [smem:[#allocation3_spill]] (!%p501_p2)  ;;  %v934_v49 = vlaneseq (!%p501_p2)  ;;  %vm954_vm0 = vcmask (!%p501_p2), 523264  }
   0x8   : > { %504 = sbr.rel (%p501_p2) target bundleno = 1918 (0x77e), region = 84  ;;  %v5279_v2 = vld [vmem:[%s5974_s2 + $0xc0] sm:$0xff] (!%p501_p2)   ;;  %4548 = vmatprep.subr.bf16.mxu0 (!%p501_p2), %v5278_v1  ;;  %v5283_v6 = vld [vmem:[%s5974_s2 + $0xc8] sm:$0xff] (!%p501_p2)   ;;  %v5287_v10 = vld [vmem:[%s5974_s2 + $0xd0] sm:$0xff] (!%p501_p2)   ;;  %vm1055_vm1 = vcmask (!%p501_p2), 130048   ;;  %s5993_s23 = sld [smem:[#allocation4_spill]] (!%p501_p2) }
   0x9   : > { %v5280_v3 = vld [vmem:[%s5974_s2] sm:$0xff] (!%p501_p2)   ;;  %4570 = vmatprep.subr.bf16.mxu1 (!%p501_p2), %v5279_v2  ;;  %v5284_v7 = vld [vmem:[%s5974_s2 + $0x8] sm:$0xff] (!%p501_p2)   ;;  %v5288_v11 = vld [vmem:[%s5974_s2 + $0x10] sm:$0xff] (!%p501_p2)   ;;  %v935_v50 = vshrl.u32 (!%p501_p2), %v934_v49, 7  ;;  %vm5333_vm2 = vmmov (!%p501_p2), 0   ;;  %vm4269_vm3 = vcmask (!%p501_p2), 0  }
   0xa   : > { %v5281_v4 = vld [vmem:[%s5974_s2 + $0x80] sm:$0xff] (!%p501_p2)   ;;  %4549 = vmatpush3.bf16.msra.mxu0 (!%p501_p2), %v5280_v3  ;;  %v5285_v8 = vld [vmem:[%s5974_s2 + $0x88] sm:$0xff] (!%p501_p2)   ;;  %v5289_v12 = vld [vmem:[%s5974_s2 + $0x90] sm:$0xff] (!%p501_p2)  }
   0xb   : > { %4571 = vmatpush3.bf16.msra.mxu1 (!%p501_p2), %v5281_v4  ;;  %4550 = vmatprep.subr.bf16.mxu0 (!%p501_p2), %v5282_v5  ;;  %v5290_v13 = vld [vmem:[%s5974_s2 + $0x58] sm:$0xff] (!%p501_p2)   ;;  %v5294_v17 = vld [vmem:[%s5974_s2 + $0x60] sm:$0xff] (!%p501_p2)   ;;  %v5298_v21 = vld [vmem:[%s5974_s2 + $0x68] sm:$0xff] (!%p501_p2)   ;;  %v5566_v51 = vsub.s32 (!%p501_p2), 0, %v935_v50  ;;  %v5571_v56 = vsub.s32 (!%p501_p2), 1, %v935_v50 }
   0xc   : > { %4572 = vmatprep.subr.bf16.mxu1 (!%p501_p2), %v5283_v6  ;;  %v5291_v14 = vld [vmem:[%s5974_s2 + $0xd8] sm:$0xff] (!%p501_p2)   ;;  %v5295_v18 = vld [vmem:[%s5974_s2 + $0xe0] sm:$0xff] (!%p501_p2)   ;;  %v5299_v22 = vld [vmem:[%s5974_s2 + $0xe8] sm:$0xff] (!%p501_p2)  }
   0xd   : > { %v5292_v15 = vld [vmem:[%s5974_s2 + $0x18] sm:$0xff] (!%p501_p2)   ;;  %v5296_v19 = vld [vmem:[%s5974_s2 + $0x20] sm:$0xff] (!%p501_p2)   ;;  %v5300_v23 = vld [vmem:[%s5974_s2 + $0x28] sm:$0xff] (!%p501_p2)  }
   0xe   : > { %4551 = vmatpush3.bf16.msra.mxu0 (!%p501_p2), %v5284_v7  ;;  %v5293_v16 = vld [vmem:[%s5974_s2 + $0x98] sm:$0xff] (!%p501_p2)   ;;  %v5297_v20 = vld [vmem:[%s5974_s2 + $0xa0] sm:$0xff] (!%p501_p2)   ;;  %v5301_v24 = vld [vmem:[%s5974_s2 + $0xa8] sm:$0xff] (!%p501_p2)  }
   0xf   : > { %4573 = vmatpush3.bf16.msra.mxu1 %v5285_v8  ;;  %4552 = vmatprep.subr.bf16.mxu0 %v5286_v9  ;;  %s5995_s27 = smov (!%p556_p3, %s4375_s27), 1  ;;  %v5302_v25 = vld [vmem:[%s5974_s2 + $0x70] sm:$0xff]   ;;  %v5306_v29 = vld [vmem:[%s5974_s2 + $0x78] sm:$0xff]   ;;  %v946_v37 = vld [vmem:[%s5976_s4] sm:$0xff] }
  0x10   : > { %4574 = vmatprep.subr.bf16.mxu1 %v5287_v10  ;;  %v5303_v26 = vld [vmem:[%s5974_s2 + $0xf0] sm:$0xff]   ;;  %s4547_s24 = sshll.u32 %s5995_s27, 5  ;;  %v5307_v30 = vld [vmem:[%s5974_s2 + $0xf8] sm:$0xff]   ;;  %v947_v38 = vld [vmem:[%s5976_s4 + $0x8] sm:$0xff]  ;;  %s563_s25 = scalar_lea.vmem %s5993_s23, %s5995_s27 }
  0x11   : > { %v5304_v27 = vld [vmem:[%s5974_s2 + $0x30] sm:$0xff]   ;;  %s560_s20 = scalar_lea.vmem %s5992_s1, %s4547_s24  ;;  %v5308_v31 = vld [vmem:[%s5974_s2 + $0x38] sm:$0xff]   ;;  %v5056_v39 = vpack.c.bf16 %v947_v38, %v946_v37  ;;  %v950_v43 = vld [vmem:[%s5976_s4 + $0x20] sm:$0xff]  ;;  %s569_s1 = scalar_lea.vmem %s5989_s17, %s5995_s27 }
  0x12   : > { %4553 = vmatpush3.bf16.msra.mxu0 %v5288_v11  ;;  %v5305_v28 = vld [vmem:[%s5974_s2 + $0xb0] sm:$0xff]   ;;  %v5309_v32 = vld [vmem:[%s5974_s2 + $0xb8] sm:$0xff]   ;;  %v951_v44 = vld [vmem:[%s5976_s4 + $0x28] sm:$0xff] }
  0x13   : > { %4575 = vmatpush3.bf16.msra.mxu1 %v5289_v12  ;;  %4554 = vmatprep.subr.bf16.mxu0 %v5290_v13  ;;  %v5310_v33 = vld [vmem:[%s560_s20] ss:$16 sps:$4 sm:$0xff]   ;;  %v5312_v34 = vld [vmem:[%s560_s20 + $0x4] ss:$16 sps:$4 sm:$0xff]   ;;  %v5313_v35 = vld [vmem:[%s560_s20 + $0x8] ss:$16 sps:$4 sm:$0xff]   ;;  %v5064_v45 = vpack.c.bf16 %v951_v44, %v950_v43 }
  0x14   : > { %4576 = vmatprep.subr.bf16.mxu1 %v5291_v14  ;;  %v5315_v36 = vld [vmem:[%s560_s20 + $0xc] ss:$16 sps:$4 sm:$0xff]   ;;  %883 = vmatprep.mubr.bf16.mxu0 %v5312_v34  ;;  %v948_v40 = vld [vmem:[%s5976_s4 + $0x10] sm:$0xff]  ;;  %v933_v53 = vld [vmem:[%s5975_s3] sm:$0x3] }
  0x15   : > { %924 = vmatprep.mubr.bf16.mxu1 %v5315_v36  ;;  %v949_v41 = vld [vmem:[%s5976_s4 + $0x18] sm:$0xff]  ;;  %v952_v46 = vld [vmem:[%s5976_s4 + $0x30] sm:$0xff]  ;;  %v937_v61 = vrot.slane %v933_v53, %v5566_v51  ;;  %v943_v3 = vrot.slane %v933_v53, %v5571_v56  ;;  %v5591_v11 = vld [vmem:[%s5978_s6] sm:$0xff] }
  0x16   : > { %4555 = vmatpush3.bf16.msra.mxu0 %v5292_v15  ;;  %v5060_v42 = vpack.c.bf16 %v949_v41, %v948_v40  ;;  %v953_v47 = vld [vmem:[%s5976_s4 + $0x38] sm:$0xff]  ;;  %v5586_v10 = vld [vmem:[%s5978_s6 + $0x10] sm:$0xff]  ;;  %v1036_v12 = vld [vmem:[%s5977_s5] sm:$0x3] }
  0x17   : > { %4577 = vmatpush3.bf16.msra.mxu1 %v5293_v16  ;;  %4556 = vmatprep.subr.bf16.mxu0 %v5294_v17  ;;  %v5068_v48 = vpack.c.bf16 %v953_v47, %v952_v46  ;;  %v1040_v13 = vrot.slane %v1036_v12, %v5566_v51  ;;  %v1046_v14 = vrot.slane %v1036_v12, %v5571_v56  ;;  %v5646_v34 = vld [vmem:[%s5978_s6 + $0x38] sm:$0xff]  ;;  %v5660_v36 = vld [vmem:[%s5978_s6 + $0x48] sm:$0xff]  ;;  %v5665_v37 = vld [vmem:[%s5978_s6 + $0x50] sm:$0xff] }
  0x18   : > { %4578 = vmatprep.subr.bf16.mxu1 %v5295_v18  ;;  %v5674_v38 = vld [vmem:[%s5978_s6 + $0x58] sm:$0xff]  ;;  %v5688_v40 = vld [vmem:[%s5978_s6 + $0x68] sm:$0xff]  ;;  %v5693_v41 = vld [vmem:[%s5978_s6 + $0x70] sm:$0xff] }
  0x19   : > { %v5707_v43 = vld [vmem:[%s5978_s6 + $0x80] sm:$0xff]  ;;  %v5716_v44 = vld [vmem:[%s5978_s6 + $0x88] sm:$0xff]  ;;  %v4460_v12 = vld [vmem:[%s5979_s7 + $0x50] sm:$0xff] }
  0x1a   : > { %4557 = vmatpush3.bf16.msra.mxu0 %v5296_v19  ;;  %v1138_v46 = vld [vmem:[%s5979_s7 + $0x8] sm:$0xff] }
  0x1b   : > { %4579 = vmatpush3.bf16.msra.mxu1 %v5297_v20  ;;  %4558 = vmatprep.subr.bf16.mxu0 %v5298_v21  ;;  %v4437_v49 = vld [vmem:[%s5979_s7 + $0x28] sm:$0xff] }
  0x1c   : > { %4580 = vmatprep.subr.bf16.mxu1 %v5299_v22 }
  0x1e   : > { %4559 = vmatpush3.bf16.msra.mxu0 %v5300_v23 }
  0x1f   : > { %4581 = vmatpush3.bf16.msra.mxu1 %v5301_v24  ;;  %4560 = vmatprep.subr.bf16.mxu0 %v5302_v25  ;;  %v4426_v24 = vld [vmem:[%s5979_s7 + $0x10] sm:$0xff]  ;;  %v4427_v25 = vld [vmem:[%s5979_s7 + $0x18] sm:$0xff] }
  0x20   : > { %4582 = vmatprep.subr.bf16.mxu1 %v5303_v26 }
  0x22   : > { %4561 = vmatpush3.bf16.msra.mxu0 %v5304_v27 }
  0x23   : > { %4583 = vmatpush3.bf16.msra.mxu1 %v5305_v28  ;;  %4562 = vmatprep.subr.bf16.mxu0 %v5306_v29  ;;  %v5080_v28 = vpack.c.bf16 %v4427_v25, %v4426_v24  ;;  %v5611_v29 = vld [vmem:[%s5978_s6 + $0x18] sm:$0xff]  ;;  %v4484_v25 = vld [vmem:[%s5979_s7 + $0x80] sm:$0xff] }
  0x24   : > { %4584 = vmatprep.subr.bf16.mxu1 %v5307_v30  ;;  %v5616_v30 = vld [vmem:[%s5978_s6 + $0x8] sm:$0xff] }
  0x26   : > { %4563 = vmatpush3.bf16.msra.mxu0 %v5308_v31  ;;  %v5621_v31 = vld [vmem:[%s5978_s6 + $0x20] sm:$0xff] }
  0x27   : > { %4585 = vmatpush3.bf16.msra.mxu1 %v5309_v32  ;;  %v5632_v32 = vld [vmem:[%s5978_s6 + $0x28] sm:$0xff] }
  0x28   : > { %5057 = vmatprep.subr.bf16.mxu1 %v5056_v39 }
  0x29   : > { %884 = vmatmul.mubr.bf16.vlgmr.msra.gmra.mrb[0].mxu0 %v5310_v33  ;;  %v5637_v33 = vld [vmem:[%s5978_s6 + $0x30] sm:$0xff] }
  0x2a   : > { %925 = vmatmul.mubr.bf16.vlgmr.msra.gmra.mrb[0].mxu1 %v5313_v35  ;;  %4782 = vmatprep.mubr.msk.f32.mxu0 %vm1055_vm1, %v5591_v11  ;;  %v5651_v35 = vld [vmem:[%s5978_s6 + $0x40] sm:$0xff] }
  0x2b   : > { %5059 = vmatpush3.bf16.msra.mxu1 %v5056_v39  ;;  %v5679_v39 = vld [vmem:[%s5978_s6 + $0x60] sm:$0xff] }
  0x2c   : > { %5061 = vmatprep.subr.bf16.mxu1 %v5060_v42 }
  0x2f   : > { %5063 = vmatpush3.bf16.msra.mxu1 %v5060_v42  ;;  %v5702_v42 = vld [vmem:[%s5978_s6 + $0x78] sm:$0xff] }
  0x30   : > { %5065 = vmatprep.subr.bf16.mxu1 %v5064_v45 }
  0x33   : > { %5067 = vmatpush3.bf16.msra.mxu1 %v5064_v45  ;;  %v1137_v45 = vld [vmem:[%s5979_s7] sm:$0xff] }
  0x34   : > { %5069 = vmatprep.subr.bf16.mxu1 %v5068_v48  ;;  %v5084_v47 = vpack.c.bf16 %v1138_v46, %v1137_v45 }
  0x37   : > { %5071 = vmatpush3.bf16.msra.mxu1 %v5068_v48  ;;  %v4436_v48 = vld [vmem:[%s5979_s7 + $0x20] sm:$0xff] }
  0xfc   : > { %v4564_v52 = vpop.f32.mrb[0].mxu0 }
  0xfd   : > { %v4586_v54 = vpop.f32.mrb[0].mxu1  ;;  %v4565_v55 = vpop.f32.mrb[1].mxu0 }
  0xfe   : > { %v4566_v57 = vadd.f32 %v4565_v55, %v4564_v52  ;;  %v4587_v58 = vpop.f32.mrb[1].mxu1  ;;  %v4567_v59 = vpop.f32.mrb[2].mxu0  ;;  %v5092_v55 = vpack.c.bf16 %v4437_v49, %v4436_v48 }
  0xff   : > { %v4588_v60 = vadd.f32 %v4587_v58, %v4586_v54  ;;  %v4589_v62 = vpop.f32.mrb[2].mxu1  ;;  %v4568_v63 = vpop.f32.mrb[3].mxu0 }
 0x100   : > { %v4569_v0 = vadd.f32 %v4568_v63, %v4567_v59  ;;  %v4590_v1 = vpop.f32.mrb[3].mxu1  ;;  %v4444_v59 = vld [vmem:[%s5979_s7 + $0x30] sm:$0xff] }
 0x101   : > { %v927_v2 = vadd.f32 %v4588_v60, %v4566_v57  ;;  %v4591_v4 = vadd.f32 %v4590_v1, %v4589_v62  ;;  %v4445_v60 = vld [vmem:[%s5979_s7 + $0x38] sm:$0xff] }
 0x102   : > { %v5100_v62 = vpack.c.bf16 %v4445_v60, %v4444_v59  ;;  %v4500_v60 = vld [vmem:[%s5981_s9 + $0x20] sm:$0xff] }
 0x103   : > { %v938_v5 = vmul.f32 %v937_v61, %v927_v2  ;;  %v930_v6 = vadd.f32 %v4591_v4, %v4569_v0  ;;  %v4452_v2 = vld [vmem:[%s5979_s7 + $0x40] sm:$0xff] }
 0x105   : > { %v5575_v7 = vadd.f32 %v943_v3, %v938_v5  ;;  %v939_v8 = vmul.f32 %v937_v61, %v930_v6 }
 0x107   : > { %v5577_v9 = vadd.f32 %v943_v3, %v939_v8  ;;  %4775 = vmatprep.mubr.msk.f32.mxu1 %vm954_vm0, %v5575_v7  ;;  %v4453_v3 = vld [vmem:[%s5979_s7 + $0x48] sm:$0xff] }
 0x108   : > { %v5108_v5 = vpack.c.bf16 %v4453_v3, %v4452_v2  ;;  %v4506_v3 = vld [vmem:[%s5981_s9 + $0x30] sm:$0xff] }
 0x109   : > { %4776 = vmatmul.mubr.msk.f32.vlgmr.msra.gmra.mrb[4].mxu1 %vm954_vm0, %v5577_v9 }
 0x10a   : > { %4789 = vmatprep.mubr.msk.f32.mxu1 %vm1055_vm1, %v5586_v10 }
 0x1dc   : > { %v4777_v15 = vpop.f32.mrb[4].mxu1 }
 0x1dd   : > { %v1042_v16 = vmul.f32 %v4777_v15, %v1040_v13  ;;  %v1027_v17 = vpop.f32.mrb[5].mxu1 }
 0x1de   : > { %v1041_v18 = vmul.f32 %v1040_v13, %v1027_v17  ;;  %v4461_v13 = vld [vmem:[%s5979_s7 + $0x58] sm:$0xff] }
 0x1df   : > { %v1048_v19 = vadd.f32 %v1046_v14, %v1042_v16  ;;  %v5116_v15 = vpack.c.bf16 %v4461_v13, %v4460_v12  ;;  %v4512_v13 = vld [vmem:[%s5981_s9 + $0x40] sm:$0xff] }
 0x1e0   : > { %v1047_v20 = vadd.f32 %v1046_v14, %v1041_v18 }
 0x1e1   : > { %v1050_v21 = vmul.f32 0.2, %v1048_v19 }
 0x1e2   : > { %v1049_v22 = vmul.f32 0.2, %v1047_v20 }
 0x1e3   : > { %v1052_v23 = vmax.f32 %v1048_v19, %v1050_v21  ;;  %v4468_v19 = vld [vmem:[%s5979_s7 + $0x60] sm:$0xff] }
 0x1e4   : > { %v1051_v26 = vmax.f32 %v1047_v20, %v1049_v22  ;;  %v4469_v20 = vld [vmem:[%s5979_s7 + $0x68] sm:$0xff]  ;;  %v4476_v22 = vld [vmem:[%s5979_s7 + $0x70] sm:$0xff] }
 0x1e5   : > { %v5124_v21 = vpack.c.bf16 %v4469_v20, %v4468_v19  ;;  %v4518_v20 = vld [vmem:[%s5981_s9 + $0x50] sm:$0xff] }
 0x1e6   : > { %v5072_v27 = vpack.c.bf16 %v1052_v23, %v1051_v26  ;;  %v4477_v23 = vld [vmem:[%s5979_s7 + $0x78] sm:$0xff]  ;;  %v4485_v26 = vld [vmem:[%s5979_s7 + $0x88] sm:$0xff] }
 0x1e7   : > { %v5132_v24 = vpack.c.bf16 %v4477_v23, %v4476_v22 }
 0x1e8   : > { %5073 = vmatprep.subr.bf16.mxu0 %v5072_v27  ;;  %5077 = vmatprep.subr.bf16.mxu1 %v5072_v27 }
 0x1e9   : > { %5075 = vmatpush3.bf16.msra.mxu0 %v5072_v27  ;;  %5079 = vmatpush3.bf16.msra.mxu1 %v5072_v27 }
 0x1ea   : > { %5089 = vmatprep.subr.bf16.mxu0 %v5072_v27  ;;  %5081 = vmatprep.subr.bf16.mxu1 %v5080_v28 }
 0x1ec   : > { %4790 = vmatmul.mubr.msk.f32.vlgmr.msra.gmra.mrb[6].mxu1 %vm1055_vm1, %v5611_v29  ;;  %4783 = vmatmul.mubr.msk.f32.vlgmr.msra.gmra.mrb[4].mxu0 %vm1055_vm1, %v5616_v30 }
 0x1ed   : > { %5091 = vmatpush3.bf16.msra.mxu0 %v5072_v27  ;;  %4810 = vmatprep.mubr.msk.f32.mxu0 %vm1055_vm1, %v5621_v31 }
 0x1ee   : > { %5097 = vmatprep.subr.bf16.mxu0 %v5072_v27  ;;  %5083 = vmatpush3.bf16.msra.mxu1 %v5080_v28  ;;  %v2578_v28 = vld [vmem:[%s5980_s8] sm:$0x3] }
 0x1ef   : > { %5085 = vmatprep.subr.bf16.mxu1 %v5084_v47  ;;  %v2582_v45 = vrot.slane %v2578_v28, %v5566_v51  ;;  %v2588_v46 = vrot.slane %v2578_v28, %v5571_v56  ;;  %v4525_v28 = vld [vmem:[%s5981_s9 + $0x68] sm:$0xff] }
 0x1f0   : > { %4811 = vmatmul.mubr.msk.f32.vlgmr.msra.gmra.mrb[6].mxu0 %vm1055_vm1, %v5632_v32 }
 0x1f1   : > { %5099 = vmatpush3.bf16.msra.mxu0 %v5072_v27  ;;  %4824 = vmatprep.mubr.msk.f32.mxu0 %vm1055_vm1, %v5637_v33 }
 0x1f2   : > { %5105 = vmatprep.subr.bf16.mxu0 %v5072_v27 }
 0x1f4   : > { %4825 = vmatmul.mubr.msk.f32.vlgmr.msra.gmra.mrb[8].mxu0 %vm1055_vm1, %v5646_v34 }
 0x1f5   : > { %5107 = vmatpush3.bf16.msra.mxu0 %v5072_v27  ;;  %4838 = vmatprep.mubr.msk.f32.mxu0 %vm1055_vm1, %v5651_v35 }
 0x1f6   : > { %5113 = vmatprep.subr.bf16.mxu0 %v5072_v27 }
 0x1f8   : > { %4839 = vmatmul.mubr.msk.f32.vlgmr.msra.gmra.mrb[10].mxu0 %vm1055_vm1, %v5660_v36 }
 0x1f9   : > { %5115 = vmatpush3.bf16.msra.mxu0 %v5072_v27  ;;  %4852 = vmatprep.mubr.msk.f32.mxu0 %vm1055_vm1, %v5665_v37 }
 0x1fa   : > { %5121 = vmatprep.subr.bf16.mxu0 %v5072_v27 }
 0x1fc   : > { %4853 = vmatmul.mubr.msk.f32.vlgmr.msra.gmra.mrb[12].mxu0 %vm1055_vm1, %v5674_v38 }
 0x1fd   : > { %5123 = vmatpush3.bf16.msra.mxu0 %v5072_v27  ;;  %4866 = vmatprep.mubr.msk.f32.mxu0 %vm1055_vm1, %v5679_v39 }
 0x1fe   : > { %5129 = vmatprep.subr.bf16.mxu0 %v5072_v27 }
 0x200   : > { %4867 = vmatmul.mubr.msk.f32.vlgmr.msra.gmra.mrb[14].mxu0 %vm1055_vm1, %v5688_v40 }
 0x201   : > { %5131 = vmatpush3.bf16.msra.mxu0 %v5072_v27  ;;  %4880 = vmatprep.mubr.msk.f32.mxu0 %vm1055_vm1, %v5693_v41 }
 0x202   : > { %5137 = vmatprep.subr.bf16.mxu0 %v5072_v27 }
 0x204   : > { %4881 = vmatmul.mubr.msk.f32.vlgmr.msra.gmra.mrb[16].mxu0 %vm1055_vm1, %v5702_v42 }
 0x205   : > { %5139 = vmatpush3.bf16.msra.mxu0 %v5072_v27  ;;  %4894 = vmatprep.mubr.msk.f32.mxu0 %vm1055_vm1, %v5707_v43  ;;  %v5140_v27 = vpack.c.bf16 %v4485_v26, %v4484_v25 }
 0x208   : > { %4895 = vmatmul.mubr.msk.f32.vlgmr.msra.gmra.mrb[18].mxu0 %vm1055_vm1, %v5716_v44 }
 0x209   : > { %4908 = vmatprep.mubr.msk.f32.mxu0 %vm1055_vm1, %v5591_v11 }
 0x2bf   : > { %v4791_v50 = vpop.f32.mrb[6].mxu1  ;;  %v4784_v52 = vpop.f32.mrb[4].mxu0 }
 0x2c0   : > { %v1214_v53 = vpop.f32.mrb[7].mxu1  ;;  %v1128_v54 = vpop.f32.mrb[5].mxu0 }
 0x2c1   : > { %4796 = vmatprep.mubr.msk.f32.mxu1 %vm1055_vm1, %v1214_v53 }
 0x2c2   : > { %4797 = vmatmul.mubr.msk.f32.vlgmr.msra.gmra.mrb[8].mxu1 %vm1055_vm1, %v4791_v50 }
 0x2c3   : > { %5087 = vmatpush3.bf16.msra.mxu1 %v5084_v47  ;;  %4803 = vmatprep.mubr.msk.f32.mxu1 %vm1055_vm1, %v1128_v54  ;;  %v4812_v57 = vpop.f32.mrb[6].mxu0 }
 0x2c4   : > { %5093 = vmatprep.subr.bf16.mxu1 %v5092_v55  ;;  %v1463_v58 = vpop.f32.mrb[7].mxu0 }
 0x2c7   : > { %v4826_v61 = vpop.f32.mrb[8].mxu0 }
 0x2c8   : > { %v1633_v63 = vpop.f32.mrb[9].mxu0 }
 0x2ca   : > { %4804 = vmatmul.mubr.msk.f32.vlgmr.msra.gmra.mrb[8].mxu1 %vm1055_vm1, %v4784_v52 }
 0x2cb   : > { %5095 = vmatpush3.bf16.msra.mxu1 %v5092_v55  ;;  %4817 = vmatprep.mubr.msk.f32.mxu1 %vm1055_vm1, %v1463_v58  ;;  %v4840_v0 = vpop.f32.mrb[10].mxu0 }
 0x2cc   : > { %5101 = vmatprep.subr.bf16.mxu1 %v5100_v62  ;;  %v1803_v1 = vpop.f32.mrb[11].mxu0 }
 0x2cf   : > { %v4854_v4 = vpop.f32.mrb[12].mxu0 }
 0x2d0   : > { %v1973_v6 = vpop.f32.mrb[13].mxu0 }
 0x2d2   : > { %4818 = vmatmul.mubr.msk.f32.vlgmr.msra.gmra.mrb[8].mxu1 %vm1055_vm1, %v4812_v57 }
 0x2d3   : > { %5103 = vmatpush3.bf16.msra.mxu1 %v5100_v62  ;;  %4831 = vmatprep.mubr.msk.f32.mxu1 %vm1055_vm1, %v1633_v63  ;;  %v4868_v8 = vpop.f32.mrb[14].mxu0 }
 0x2d4   : > { %5109 = vmatprep.subr.bf16.mxu1 %v5108_v5  ;;  %v2143_v11 = vpop.f32.mrb[15].mxu0 }
 0x2d7   : > { %v4882_v14 = vpop.f32.mrb[16].mxu0 }
 0x2d8   : > { %v2313_v16 = vpop.f32.mrb[17].mxu0 }
 0x2da   : > { %4832 = vmatmul.mubr.msk.f32.vlgmr.msra.gmra.mrb[8].mxu1 %vm1055_vm1, %v4826_v61  ;;  %v4501_v61 = vld [vmem:[%s5981_s9 + $0x28] sm:$0xff] }
 0x2db   : > { %5111 = vmatpush3.bf16.msra.mxu1 %v5108_v5  ;;  %4845 = vmatprep.mubr.msk.f32.mxu1 %vm1055_vm1, %v1803_v1  ;;  %v4896_v17 = vpop.f32.mrb[18].mxu0 }
 0x2dc   : > { %5117 = vmatprep.subr.bf16.mxu1 %v5116_v15  ;;  %v2483_v18 = vpop.f32.mrb[19].mxu0 }
 0x2e2   : > { %4846 = vmatmul.mubr.msk.f32.vlgmr.msra.gmra.mrb[8].mxu1 %vm1055_vm1, %v4840_v0  ;;  %v5164_v0 = vpack.c.bf16 %v4501_v61, %v4500_v60 }
 0x2e3   : > { %5119 = vmatpush3.bf16.msra.mxu1 %v5116_v15  ;;  %4859 = vmatprep.mubr.msk.f32.mxu1 %vm1055_vm1, %v1973_v6 }
 0x2e4   : > { %5125 = vmatprep.subr.bf16.mxu1 %v5124_v21 }
 0x2ea   : > { %4860 = vmatmul.mubr.msk.f32.vlgmr.msra.gmra.mrb[8].mxu1 %vm1055_vm1, %v4854_v4  ;;  %v4507_v4 = vld [vmem:[%s5981_s9 + $0x38] sm:$0xff] }
 0x2eb   : > { %5127 = vmatpush3.bf16.msra.mxu1 %v5124_v21  ;;  %4873 = vmatprep.mubr.msk.f32.mxu1 %vm1055_vm1, %v2143_v11  ;;  %v5172_v6 = vpack.c.bf16 %v4507_v4, %v4506_v3  ;;  %v4519_v21 = vld [vmem:[%s5981_s9 + $0x58] sm:$0xff] }
 0x2ec   : > { %5133 = vmatprep.subr.bf16.mxu1 %v5132_v24  ;;  %v5188_v23 = vpack.c.bf16 %v4519_v21, %v4518_v20  ;;  %v4227_v21 = vld [vmem:[%s5985_s13] sm:$0x3] }
 0x2f2   : > { %4874 = vmatmul.mubr.msk.f32.vlgmr.msra.gmra.mrb[8].mxu1 %vm1055_vm1, %v4868_v8 }
 0x2f3   : > { %5135 = vmatpush3.bf16.msra.mxu1 %v5132_v24  ;;  %4887 = vmatprep.mubr.msk.f32.mxu1 %vm1055_vm1, %v2313_v16 }
 0x2f4   : > { %5141 = vmatprep.subr.bf16.mxu1 %v5140_v27 }
 0x2fa   : > { %4888 = vmatmul.mubr.msk.f32.vlgmr.msra.gmra.mrb[8].mxu1 %vm1055_vm1, %v4882_v14  ;;  %v4513_v14 = vld [vmem:[%s5981_s9 + $0x48] sm:$0xff] }
 0x2fb   : > { %5143 = vmatpush3.bf16.msra.mxu1 %v5140_v27  ;;  %4901 = vmatprep.mubr.msk.f32.mxu1 %vm1055_vm1, %v2483_v18  ;;  %v5180_v16 = vpack.c.bf16 %v4513_v14, %v4512_v13  ;;  %v4524_v27 = vld [vmem:[%s5981_s9 + $0x60] sm:$0xff] }
 0x2fc   : > { %v4246_v14 = vld [vmem:[#allocation2] sm:$0x1] }
 0x302   : > { %4902 = vmatmul.mubr.msk.f32.vlgmr.msra.gmra.mrb[8].mxu1 %vm1055_vm1, %v4896_v17 }
 0x3d5   : > { %v4903_v47 = vpop.f32.mrb[8].mxu1 }
 0x3d6   : > { %v2584_v48 = vmul.f32 %v4903_v47, %v2582_v45  ;;  %v2567_v49 = vpop.f32.mrb[9].mxu1  ;;  %v4531_v47 = vld [vmem:[%s5981_s9 + $0x78] sm:$0xff] }
 0x3d7   : > { %v2583_v50 = vmul.f32 %v2582_v45, %v2567_v49  ;;  %v5196_v45 = vpack.c.bf16 %v4525_v28, %v4524_v27  ;;  %v4536_v49 = vld [vmem:[%s5981_s9 + $0x80] sm:$0xff] }
 0x3d8   : > { %v2590_v52 = vadd.f32 %v2588_v46, %v2584_v48 }
 0x3d9   : > { %v2589_v53 = vadd.f32 %v2588_v46, %v2583_v50  ;;  %v4530_v46 = vld [vmem:[%s5981_s9 + $0x70] sm:$0xff]  ;;  %v4537_v50 = vld [vmem:[%s5981_s9 + $0x88] sm:$0xff] }
 0x3da   : > { %v2592_v54 = vmul.f32 0.2, %v2590_v52  ;;  %v5204_v48 = vpack.c.bf16 %v4531_v47, %v4530_v46 }
 0x3db   : > { %v2591_v55 = vmul.f32 0.2, %v2589_v53 }
 0x3dc   : > { %v2594_v57 = vmax.f32 %v2590_v52, %v2592_v54  ;;  %v5212_v52 = vpack.c.bf16 %v4537_v50, %v4536_v49  ;;  %v4061_v54 = vld [vmem:[%s5984_s12 + $0x18] sm:$0xff] }
 0x3dd   : > { %v2593_v58 = vmax.f32 %v2589_v53, %v2591_v55  ;;  %v4060_v53 = vld [vmem:[%s5984_s12 + $0x10] sm:$0xff] }
 0x3de   : > { %v5223_v55 = vpack.c.bf16 %v4061_v54, %v4060_v53 }
 0x3df   : > { %v5144_v59 = vpack.c.bf16 %v2594_v57, %v2593_v58  ;;  %v4062_v57 = vld [vmem:[%s5984_s12 + $0x20] sm:$0xff]  ;;  %v4063_v58 = vld [vmem:[%s5984_s12 + $0x28] sm:$0xff] }
 0x3e1   : > { %5145 = vmatprep.subr.bf16.mxu0 %v5144_v59 }
 0x3e2   : > { %5147 = vmatpush3.bf16.msra.mxu0 %v5144_v59 }
 0x3e3   : > { %5149 = vmatprep.subr.bf16.mxu0 %v5144_v59 }
 0x3e5   : > { %4909 = vmatmul.mubr.msk.f32.vlgmr.msra.gmra.mrb[20].mxu0 %vm1055_vm1, %v5616_v30 }
 0x3e6   : > { %5151 = vmatpush3.bf16.msra.mxu0 %v5144_v59  ;;  %4915 = vmatprep.mubr.msk.f32.mxu0 %vm1055_vm1, %v5586_v10  ;;  %v4492_v10 = vld [vmem:[%s5981_s9 + $0x10] sm:$0xff] }
 0x3e7   : > { %5161 = vmatprep.subr.bf16.mxu0 %v5144_v59 }
 0x3e9   : > { %4916 = vmatmul.mubr.msk.f32.vlgmr.msra.gmra.mrb[22].mxu0 %vm1055_vm1, %v5611_v29  ;;  %v4493_v29 = vld [vmem:[%s5981_s9 + $0x18] sm:$0xff] }
 0x3ea   : > { %5163 = vmatpush3.bf16.msra.mxu0 %v5144_v59  ;;  %4936 = vmatprep.mubr.msk.f32.mxu0 %vm1055_vm1, %v5621_v31  ;;  %v5152_v30 = vpack.c.bf16 %v4493_v29, %v4492_v10  ;;  %v2670_v31 = vld [vmem:[%s5981_s9] sm:$0xff]  ;;  %v4064_v10 = vld [vmem:[%s5984_s12 + $0x30] sm:$0xff]  ;;  %v4065_v29 = vld [vmem:[%s5984_s12 + $0x38] sm:$0xff] }
 0x3eb   : > { %5169 = vmatprep.subr.bf16.mxu0 %v5144_v59 }
 0x3ec   : > { %5153 = vmatprep.subr.bf16.mxu1 %v5152_v30 }
 0x3ed   : > { %4937 = vmatmul.mubr.msk.f32.vlgmr.msra.gmra.mrb[24].mxu0 %vm1055_vm1, %v5632_v32  ;;  %5155 = vmatpush3.bf16.msra.mxu1 %v5152_v30  ;;  %v2671_v32 = vld [vmem:[%s5981_s9 + $0x8] sm:$0xff]  ;;  %v5231_v30 = vpack.c.bf16 %v4065_v29, %v4064_v10 }
 0x3ee   : > { %5171 = vmatpush3.bf16.msra.mxu0 %v5144_v59  ;;  %4950 = vmatprep.mubr.msk.f32.mxu0 %vm1055_vm1, %v5637_v33  ;;  %v5156_v33 = vpack.c.bf16 %v2671_v32, %v2670_v31  ;;  %v4039_v31 = vld [vmem:[%s5982_s10] sm:$0x3] }
 0x3ef   : > { %5177 = vmatprep.subr.bf16.mxu0 %v5144_v59  ;;  %v4043_v32 = vrot.slane %v4039_v31, %v5566_v51 }
 0x3f0   : > { %5157 = vmatprep.subr.bf16.mxu1 %v5156_v33 }
 0x3f1   : > { %4951 = vmatmul.mubr.msk.f32.vlgmr.msra.gmra.mrb[26].mxu0 %vm1055_vm1, %v5646_v34  ;;  %v4067_v34 = vld [vmem:[%s5983_s11] sm:$0xff] }
 0x3f2   : > { %5179 = vmatpush3.bf16.msra.mxu0 %v5144_v59  ;;  %4964 = vmatprep.mubr.msk.f32.mxu0 %vm1055_vm1, %v5651_v35  ;;  %v4068_v35 = vld [vmem:[%s5983_s11 + $0x8] sm:$0xff] }
 0x3f3   : > { %5185 = vmatprep.subr.bf16.mxu0 %v5144_v59 }
 0x3f5   : > { %4965 = vmatmul.mubr.msk.f32.vlgmr.msra.gmra.mrb[28].mxu0 %vm1055_vm1, %v5660_v36  ;;  %v4058_v36 = vld [vmem:[%s5984_s12] sm:$0xff] }
 0x3f6   : > { %5187 = vmatpush3.bf16.msra.mxu0 %v5144_v59  ;;  %4978 = vmatprep.mubr.msk.f32.mxu0 %vm1055_vm1, %v5665_v37  ;;  %v5332_v37 = vmov 0.0|0.0  }
 0x3f7   : > { %5193 = vmatprep.subr.bf16.mxu0 %v5144_v59 }
 0x3f9   : > { %4979 = vmatmul.mubr.msk.f32.vlgmr.msra.gmra.mrb[30].mxu0 %vm1055_vm1, %v5674_v38  ;;  %v5217_v38 = vpack.c.bf16 %v4068_v35, %v4067_v34 }
 0x3fa   : > { %5195 = vmatpush3.bf16.msra.mxu0 %v5144_v59  ;;  %4992 = vmatprep.mubr.msk.f32.mxu0 %vm1055_vm1, %v5679_v39  ;;  %v5334_v39 = vmov 0.0  }
 0x3fb   : > { %5201 = vmatprep.subr.bf16.mxu0 %v5144_v59 }
 0x3fd   : > { %4993 = vmatmul.mubr.msk.f32.vlgmr.msra.gmra.mrb[32].mxu0 %vm1055_vm1, %v5688_v40  ;;  %v4059_v40 = vld [vmem:[%s5984_s12 + $0x8] sm:$0xff] }
 0x3fe   : > { %5203 = vmatpush3.bf16.msra.mxu0 %v5144_v59  ;;  %5006 = vmatprep.mubr.msk.f32.mxu0 %vm1055_vm1, %v5693_v41  ;;  %v5219_v41 = vpack.c.bf16 %v4059_v40, %v4058_v36 }
 0x3ff   : > { %5209 = vmatprep.subr.bf16.mxu0 %v5144_v59 }
 0x401   : > { %5007 = vmatmul.mubr.msk.f32.vlgmr.msra.gmra.mrb[34].mxu0 %vm1055_vm1, %v5702_v42  ;;  %v4066_v42 = vld [vmem:[%s563_s25] sm:$0x1]  ;;  %s566_s25 = scalar_lea.vmem %s5988_s16, %s5995_s27 }
 0x402   : > { %5211 = vmatpush3.bf16.msra.mxu0 %v5144_v59  ;;  %5020 = vmatprep.mubr.msk.f32.mxu0 %vm1055_vm1, %v5707_v43  ;;  %v5227_v59 = vpack.c.bf16 %v4063_v58, %v4062_v57 }
 0x403   : > { %5216 = vmatprep.subr.bf16.mxu0 %v5332_v37 }
 0x405   : > { %5021 = vmatmul.mubr.msk.f32.vlgmr.msra.gmra.mrb[36].mxu0 %vm1055_vm1, %v5716_v44 }
 0x406   : > { %5034 = vmatprep.mubr.msk.f32.mxu0 %vm5333_vm2, %v5334_v39  ;;  %5218 = vmatpush3.bf16.msra.mxu0 %v5217_v38 }
 0x407   : > { %5220 = vmatprep.subr.bf16.mxu0 %v5219_v41 }
 0x409   : > { %5035 = vmatmul.mubr.msk.f32.vlgmr.msra.gmra.mrb[38].mxu0 %vm1055_vm1, %v4066_v42 }
 0x40a   : > { %5222 = vmatpush3.bf16.msra.mxu0 %v5219_v41 }
 0x40b   : > { %5224 = vmatprep.subr.bf16.mxu0 %v5223_v55 }
 0x40e   : > { %5226 = vmatpush3.bf16.msra.mxu0 %v5223_v55 }
 0x40f   : > { %5228 = vmatprep.subr.bf16.mxu0 %v5227_v59 }
 0x412   : > { %5230 = vmatpush3.bf16.msra.mxu0 %v5227_v59 }
 0x413   : > { %5232 = vmatprep.subr.bf16.mxu0 %v5231_v30 }
 0x416   : > { %5234 = vmatpush3.bf16.msra.mxu0 %v5231_v30 }
 0x4b8   : > { %v4910_v43 = vpop.f32.mrb[20].mxu0 }
 0x4b9   : > { %v2661_v44 = vpop.f32.mrb[21].mxu0 }
 0x4bc   : > { %v4917_v62 = vpop.f32.mrb[22].mxu0 }
 0x4bd   : > { %v2738_v63 = vpop.f32.mrb[23].mxu0 }
 0x4be   : > { %4922 = vmatprep.mubr.msk.f32.mxu1 %vm1055_vm1, %v2738_v63 }
 0x4bf   : > { %4923 = vmatmul.mubr.msk.f32.vlgmr.msra.gmra.mrb[10].mxu1 %vm1055_vm1, %v4917_v62  ;;  %v4245_v62 = vld [vmem:[%s5986_s14 + $0x8] sm:$0xff] }
 0x4c0   : > { %5159 = vmatpush3.bf16.msra.mxu1 %v5156_v33  ;;  %4929 = vmatprep.mubr.msk.f32.mxu1 %vm1055_vm1, %v2661_v44  ;;  %v4938_v1 = vpop.f32.mrb[24].mxu0  ;;  %v4049_v33 = vrot.slane %v4039_v31, %v5571_v56  ;;  %v4244_v44 = vld [vmem:[%s5986_s14] sm:$0xff] }
 0x4c1   : > { %5165 = vmatprep.subr.bf16.mxu1 %v5164_v0  ;;  %v2978_v2 = vpop.f32.mrb[25].mxu0 }
 0x4c4   : > { %v4952_v5 = vpop.f32.mrb[26].mxu0 }
 0x4c5   : > { %v3139_v8 = vpop.f32.mrb[27].mxu0 }
 0x4c7   : > { %4930 = vmatmul.mubr.msk.f32.vlgmr.msra.gmra.mrb[10].mxu1 %vm1055_vm1, %v4910_v43 }
 0x4c8   : > { %5167 = vmatpush3.bf16.msra.mxu1 %v5164_v0  ;;  %4943 = vmatprep.mubr.msk.f32.mxu1 %vm1055_vm1, %v2978_v2  ;;  %v4966_v11 = vpop.f32.mrb[28].mxu0 }
 0x4c9   : > { %5173 = vmatprep.subr.bf16.mxu1 %v5172_v6  ;;  %v3300_v12 = vpop.f32.mrb[29].mxu0 }
 0x4cc   : > { %v4980_v15 = vpop.f32.mrb[30].mxu0 }
 0x4cd   : > { %v3461_v17 = vpop.f32.mrb[31].mxu0 }
 0x4cf   : > { %4944 = vmatmul.mubr.msk.f32.vlgmr.msra.gmra.mrb[10].mxu1 %vm1055_vm1, %v4938_v1 }
 0x4d0   : > { %5175 = vmatpush3.bf16.msra.mxu1 %v5172_v6  ;;  %4957 = vmatprep.mubr.msk.f32.mxu1 %vm1055_vm1, %v3139_v8  ;;  %v4994_v18 = vpop.f32.mrb[32].mxu0 }
 0x4d1   : > { %5181 = vmatprep.subr.bf16.mxu1 %v5180_v16  ;;  %v3622_v19 = vpop.f32.mrb[33].mxu0 }
 0x4d4   : > { %v5008_v22 = vpop.f32.mrb[34].mxu0 }
 0x4d5   : > { %v3783_v24 = vpop.f32.mrb[35].mxu0 }
 0x4d7   : > { %4958 = vmatmul.mubr.msk.f32.vlgmr.msra.gmra.mrb[10].mxu1 %vm1055_vm1, %v4952_v5 }
 0x4d8   : > { %5183 = vmatpush3.bf16.msra.mxu1 %v5180_v16  ;;  %4971 = vmatprep.mubr.msk.f32.mxu1 %vm1055_vm1, %v3300_v12  ;;  %v5022_v25 = vpop.f32.mrb[36].mxu0 }
 0x4d9   : > { %5189 = vmatprep.subr.bf16.mxu1 %v5188_v23  ;;  %v3944_v26 = vpop.f32.mrb[37].mxu0 }
 0x4dc   : > { %v4138_v1 = vpop.f32.mrb[38].mxu0 }
 0x4dd   : > { %v5036_v2 = vpop.f32.mrb[39].mxu0 }
 0x4df   : > { %4972 = vmatmul.mubr.msk.f32.vlgmr.msra.gmra.mrb[10].mxu1 %vm1055_vm1, %v4966_v11 }
 0x4e0   : > { %5191 = vmatpush3.bf16.msra.mxu1 %v5188_v23  ;;  %4985 = vmatprep.mubr.msk.f32.mxu1 %vm1055_vm1, %v3461_v17  ;;  %v4231_v23 = vrot.slane %v4227_v21, %v5566_v51 }
 0x4e1   : > { %5197 = vmatprep.subr.bf16.mxu1 %v5196_v45 }
 0x4e7   : > { %4986 = vmatmul.mubr.msk.f32.vlgmr.msra.gmra.mrb[10].mxu1 %vm1055_vm1, %v4980_v15 }
 0x4e8   : > { %5199 = vmatpush3.bf16.msra.mxu1 %v5196_v45  ;;  %4999 = vmatprep.mubr.msk.f32.mxu1 %vm1055_vm1, %v3622_v19 }
 0x4e9   : > { %5205 = vmatprep.subr.bf16.mxu1 %v5204_v48 }
 0x4ef   : > { %5000 = vmatmul.mubr.msk.f32.vlgmr.msra.gmra.mrb[10].mxu1 %vm1055_vm1, %v4994_v18 }
 0x4f0   : > { %5207 = vmatpush3.bf16.msra.mxu1 %v5204_v48  ;;  %5013 = vmatprep.mubr.msk.f32.mxu1 %vm1055_vm1, %v3783_v24 }
 0x4f1   : > { %5213 = vmatprep.subr.bf16.mxu1 %v5212_v52 }
 0x4f7   : > { %5014 = vmatmul.mubr.msk.f32.vlgmr.msra.gmra.mrb[10].mxu1 %vm1055_vm1, %v5008_v22  ;;  %v4145_v22 = vrot.slane %v4138_v1, %v5566_v51 }
 0x4f8   : > { %5215 = vmatpush3.bf16.msra.mxu1 %v5212_v52  ;;  %5027 = vmatprep.mubr.msk.f32.mxu1 %vm1055_vm1, %v3944_v26  ;;  %v4237_v26 = vrot.slane %v4227_v21, %v5571_v56 }
 0x4ff   : > { %5028 = vmatmul.mubr.msk.f32.vlgmr.msra.gmra.mrb[10].mxu1 %vm1055_vm1, %v5022_v25 }
 0x5d2   : > { %v5029_v34 = vpop.f32.mrb[10].mxu1 }
 0x5d3   : > { %v4045_v35 = vmul.f32 %v5029_v34, %v4043_v32  ;;  %v4028_v36 = vpop.f32.mrb[11].mxu1 }
 0x5d4   : > { %v4044_v37 = vmul.f32 %v4043_v32, %v4028_v36 }
 0x5d5   : > { %v4051_v38 = vadd.f32 %v4049_v33, %v4045_v35 }
 0x5d6   : > { %v4050_v39 = vadd.f32 %v4049_v33, %v4044_v37 }
 0x5d7   : > { %v4053_v40 = vadd.f32 %v4051_v38, %v5577_v9 }
 0x5d8   : > { %v4052_v41 = vadd.f32 %v4050_v39, %v5575_v7 }
 0x5d9   : > { %v4055_v42 = vmul.f32 0.2, %v4053_v40 }
 0x5da   : > { %v4054_v43 = vmul.f32 0.2, %v4052_v41 }
 0x5db   : > { %v4057_v60 = vmax.f32 %v4053_v40, %v4055_v42 }
 0x5dc   : > { %v4056_v61 = vmax.f32 %v4052_v41, %v4054_v43 }
 0x5dd   : > { %v4272_v7 = vmul.f32 %v4245_v62, %v4057_v60 }
 0x5de   : > { %5053 = vmatprep.mubr.msk.f32.mxu0 %vm954_vm0, %v4056_v61  ;;  %v4271_v63 = vmul.f32 %v4244_v44, %v4056_v61 }
 0x5df   : > { %5054 = vmatmul.mubr.msk.f32.vlgmr.msra.gmra.mrb[40].mxu0 %vm954_vm0, %v4057_v60  ;;  %v4276_v0 = vsel %vm954_vm0, %v4272_v7, 0.0 }
 0x5e0   : > { %v4273_v9 = vsel %vm954_vm0, %v4271_v63, 0.0 }
 0x5e1   : > { %4274 = vadd.xlane.f32.xlu1 %v4273_v9 }
 0x5e5   : > { %4277 = vadd.xlane.f32.xlu1 %v4276_v0 }
 0x66e   : > { %v4275_v3 = vpop.xlane.xlu1 %4274 }
 0x672   : > { %v4278_v4 = vpop.xlane.xlu1 %4277 }
 0x673   : > { %v4279_v5 = vadd.f32 %v4278_v4, %v4275_v3 }
 0x675   : > { %v4280_v6 = vrot.slane %v4279_v5, 4 }
 0x677   : > { %v4281_v8 = vadd.f32 %v4280_v6, %v4279_v5 }
 0x679   : > { %v4282_v11 = vrot.slane %v4281_v8, 2 }
 0x67b   : > { %v4283_v12 = vadd.f32 %v4282_v11, %v4281_v8 }
 0x67d   : > { %v4284_v13 = vrot.slane %v4283_v12, 1 }
 0x67f   : > { %v4285_v15 = vadd.f32 %v4284_v13, %v4283_v12 }
 0x681   : > { %v4286_v16 = vadd.f32 %v4285_v15, %v4246_v14 }
 0x683   : > { %v4544_v17 = vmul.f32 -1.442695, %v4286_v16 }
 0x685   : > { %5316 = vpow2.f32 %v4544_v17 }
 0x68f   : > { %v5317_v18 = vpop.eup %5316 }
 0x690   : > { %v4290_v19 = vadd.f32 1.0, %v5317_v18 }
 0x692   : > { %5318 = vrcp.f32 %v4290_v19 }
 0x69c   : > { %v5319_v20 = vpop.eup %5318 }
 0x69d   : > { %4293 = vst.msk [vmem:[%s569_s1] sm:$0x1] %vm4269_vm3, %v5319_v20 }
 0x6b2   : > { %v5055_v24 = vpop.f32.mrb[40].mxu0 }
 0x6b3   : > { %v4224_v25 = vadd.f32 %v5055_v24, %v4145_v22  ;;  %v4218_v27 = vpop.f32.mrb[41].mxu0 }
 0x6b4   : > { %v4219_v28 = vadd.f32 %v4218_v27, %v4145_v22 }
 0x6b5   : > { %v4233_v45 = vmul.f32 %v4231_v23, %v4224_v25 }
 0x6b6   : > { %v4232_v46 = vmul.f32 %v4231_v23, %v4219_v28 }
 0x6b7   : > { %v4239_v47 = vadd.f32 %v4237_v26, %v4233_v45 }
 0x6b8   : > { %v4238_v48 = vadd.f32 %v4237_v26, %v4232_v46 }
 0x6b9   : > { %v4241_v49 = vmul.f32 0.2, %v4239_v47 }
 0x6ba   : > { %v4240_v50 = vmul.f32 0.2, %v4238_v48 }
 0x6bb   : > { %v4243_v53 = vmax.f32 %v4239_v47, %v4241_v49 }
 0x6bc   : > { %v4242_v52 = vmax.f32 %v4238_v48, %v4240_v50 }
 0x6bd   : > { %v4248_v57 = vmul.f32 %v4245_v62, %v4243_v53 }
 0x6be   : > { %v4247_v54 = vmul.f32 %v4244_v44, %v4242_v52 }
 0x6bf   : > { %v4252_v51 = vsel %vm954_vm0, %v4248_v57, 0.0 }
 0x6c0   : > { %v4249_v55 = vsel %vm954_vm0, %v4247_v54, 0.0 }
 0x6c1   : > { %4250 = vadd.xlane.f32.xlu0 %v4249_v55 }
 0x6c5   : > { %4253 = vadd.xlane.f32.xlu0 %v4252_v51 }
 0x74e   : > { %v4251_v56 = vpop.xlane.xlu0 %4250 }
 0x752   : > { %v4254_v58 = vpop.xlane.xlu0 %4253 }
 0x753   : > { %v4255_v59 = vadd.f32 %v4254_v58, %v4251_v56 }
 0x755   : > { %v4256_v10 = vrot.slane %v4255_v59, 4 }
 0x757   : > { %v4257_v29 = vadd.f32 %v4256_v10, %v4255_v59 }
 0x759   : > { %v4258_v30 = vrot.slane %v4257_v29, 2 }
 0x75b   : > { %v4259_v31 = vadd.f32 %v4258_v30, %v4257_v29 }
 0x75d   : > { %v4260_v32 = vrot.slane %v4259_v31, 1 }
 0x75f   : > { %v4261_v33 = vadd.f32 %v4260_v32, %v4259_v31 }
 0x761   : > { %v4262_v34 = vadd.f32 %v4261_v33, %v4246_v14 }
 0x763   : > { %v4543_v35 = vmul.f32 -1.442695, %v4262_v34 }
 0x765   : > { %5320 = vpow2.f32 %v4543_v35 }
 0x76f   : > { %v5321_v36 = vpop.eup %5320 }
 0x770   : > { %v4266_v37 = vadd.f32 1.0, %v5321_v36 }
 0x772   : > { %5322 = vrcp.f32 %v4266_v37 }
 0x77c   : > { %v5323_v38 = vpop.eup %5322 }
 0x77d   : > { %4270 = vst.msk [vmem:[%s566_s25] sm:$0x1] %vm4269_vm3, %v5323_v38 }
 0x77e PF: > { %s30_s26 = sadd.s32 1, %s5330_s26  }
 0x77f   : > { %p27_p4 = scmp.ge.s32.totalorder %s30_s26, 4  }
 0x781   :  { %29 = sbr.rel (!%p27_p4) target bundleno = 3 (0x3), region = 153 }

</bundles_post_ra>
